<compile_context>
chip_gen: v6e
topology: v6e:2x2x1
jax: 0.10.0
libtpu: 0.0.40
codegen_flags: <defaults>
</compile_context>

<pallas_src>
import jax
import jax.numpy as jnp
from jax.experimental import pallas as pl
from jax.experimental.pallas import tpu as pltpu

# Module-implied sizes (state_dim -> 512 -> 1024 -> action_space).
STATE_DIM = 16
HIDDEN1 = 512
HIDDEN2 = 1024
ACTION_SPACE = 8

# Padded / tiling sizes for lane-dense layout and batched grid.
K_PAD = 128          # x / W1 contraction dim padded 16 -> 128 (zeros)
N_PAD = 128          # W3 / logits / output columns padded 8 -> 128
BATCH_TILE = 128     # rows per grid step (MXU M dimension)
BATCH = 256          # demo batch: grid length 2 -> both v7x TensorCores

_NEG_BIG = -1e9      # bias for padded logit columns -> softmax prob exactly 0


def policy_kernel(x_ref, w1_ref, b1_ref, w2_ref, b2_ref, w3_ref, b3_ref, o_ref):
    # x tile: (BATCH_TILE, K_PAD) f32; weights: bf16; biases: f32.
    x = x_ref[...].astype(jnp.bfloat16)

    # fc1 + ReLU  (bf16 x bf16 -> f32 accumulate)
    h1 = jnp.dot(x, w1_ref[...], preferred_element_type=jnp.float32) + b1_ref[...]
    h1 = jnp.maximum(h1, 0.0).astype(jnp.bfloat16)

    # fc2 + ReLU
    h2 = jnp.dot(h1, w2_ref[...], preferred_element_type=jnp.float32) + b2_ref[...]
    h2 = jnp.maximum(h2, 0.0).astype(jnp.bfloat16)

    # fc3 (lane-dense: 128 output columns; padded columns carry bias -1e9)
    logits = jnp.dot(h2, w3_ref[...], preferred_element_type=jnp.float32) + b3_ref[...]

    # Numerically stable softmax over the last axis (== PyTorch dim=1 on 2D input).
    # Padded columns: exp(-1e9 - m) == 0, so they contribute nothing to the sum.
    m = jnp.max(logits, axis=-1, keepdims=True)
    e = jnp.exp(logits - m)
    denom = jnp.sum(e, axis=-1, keepdims=True)
    o_ref[...] = e * pl.reciprocal(denom, approx=True)


def policy_forward(x, w1p, b1, w2p, b2, w3p, b3p):
    """x: (batch, STATE_DIM) f32.  w*p/b*p: padded kernel params (see prepare_kernel_params)."""
    batch = x.shape[0]
    bp = pl.cdiv(batch, BATCH_TILE) * BATCH_TILE
    # Zero-pad batch to a multiple of BATCH_TILE and K to K_PAD lanes.
    xp = jnp.zeros((bp, K_PAD), jnp.float32).at[:batch, : x.shape[1]].set(x)

    grid = (bp // BATCH_TILE,)
    out = pl.pallas_call(
        policy_kernel,
        out_shape=jax.ShapeDtypeStruct((bp, N_PAD), jnp.float32),
        grid=grid,
        in_specs=[
            pl.BlockSpec((BATCH_TILE, K_PAD), lambda i: (i, 0)),   # x tile per step
            pl.BlockSpec((K_PAD, HIDDEN1), lambda i: (0, 0)),      # W1 (resident)
            pl.BlockSpec((1, HIDDEN1), lambda i: (0, 0)),          # b1
            pl.BlockSpec((HIDDEN1, HIDDEN2), lambda i: (0, 0)),    # W2 (resident)
            pl.BlockSpec((1, HIDDEN2), lambda i: (0, 0)),          # b2
            pl.BlockSpec((HIDDEN2, N_PAD), lambda i: (0, 0)),      # W3 (resident)
            pl.BlockSpec((1, N_PAD), lambda i: (0, 0)),            # b3
        ],
        out_specs=pl.BlockSpec((BATCH_TILE, N_PAD), lambda i: (i, 0)),
        compiler_params=pltpu.CompilerParams(
            dimension_semantics=("parallel",),
        ),
    )(xp, w1p, b1, w2p, b2, w3p, b3p)
    return out[:batch, :ACTION_SPACE]


def xavier_uniform(key, fan_in, fan_out):
    # PyTorch xavier_uniform_ on Linear weight (out, in): limit = sqrt(6/(fan_in+fan_out)).
    # Stored transposed as (in, out); same distribution.
    limit = jnp.sqrt(6.0 / (fan_in + fan_out))
    return jax.random.uniform(key, (fan_in, fan_out), jnp.float32, -limit, limit)


def init_params(key):
    """Logical (unpadded, f32) parameters matching the PyTorch module."""
    k1, k2, k3 = jax.random.split(key, 3)
    w1 = xavier_uniform(k1, STATE_DIM, HIDDEN1)
    b1 = jnp.zeros((1, HIDDEN1), jnp.float32)
    w2 = xavier_uniform(k2, HIDDEN1, HIDDEN2)
    b2 = jnp.zeros((1, HIDDEN2), jnp.float32)
    w3 = xavier_uniform(k3, HIDDEN2, ACTION_SPACE)
    b3 = jnp.zeros((1, ACTION_SPACE), jnp.float32)
    return w1, b1, w2, b2, w3, b3


def prepare_kernel_params(w1, b1, w2, b2, w3, b3):
    """Cast weights to bf16 and pad to lane-dense kernel layouts (done once, offline)."""
    w1p = (
        jnp.zeros((K_PAD, HIDDEN1), jnp.bfloat16)
        .at[:STATE_DIM, :]
        .set(w1.astype(jnp.bfloat16))
    )
    w2p = w2.astype(jnp.bfloat16)
    w3p = (
        jnp.zeros((HIDDEN2, N_PAD), jnp.bfloat16)
        .at[:, :ACTION_SPACE]
        .set(w3.astype(jnp.bfloat16))
    )
    b3p = (
        jnp.full((1, N_PAD), _NEG_BIG, jnp.float32)
        .at[:, :ACTION_SPACE]
        .set(b3)
    )
    return w1p, b1, w2p, b2, w3p, b3p


def reference_forward_f32(x, w1, b1, w2, b2, w3, b3):
    """Pure-f32 reference (exact module semantics)."""
    h1 = jnp.maximum(x @ w1 + b1, 0.0)
    h2 = jnp.maximum(h1 @ w2 + b2, 0.0)
    return jax.nn.softmax(h2 @ w3 + b3, axis=1)


def reference_forward_mixed(x, w1, b1, w2, b2, w3, b3):
    """Reference with the same bf16-input / f32-accumulate precision as the kernel."""
    bf = jnp.bfloat16
    h1 = jnp.dot(x.astype(bf), w1.astype(bf), preferred_element_type=jnp.float32) + b1
    h1 = jnp.maximum(h1, 0.0)
    h2 = jnp.dot(h1.astype(bf), w2.astype(bf), preferred_element_type=jnp.float32) + b2
    h2 = jnp.maximum(h2, 0.0)
    logits = jnp.dot(h2.astype(bf), w3.astype(bf), preferred_element_type=jnp.float32) + b3
    return jax.nn.softmax(logits, axis=1)


if __name__ == "__main__":
    key = jax.random.PRNGKey(0)
    kx, kp = jax.random.split(key)
    x = jax.random.normal(kx, (BATCH, STATE_DIM), jnp.float32)
    params = init_params(kp)
    kernel_params = prepare_kernel_params(*params)

    out = policy_forward(x, *kernel_params)
    out = jax.block_until_ready(out)

    assert out.shape == (BATCH, ACTION_SPACE)

    # Tight check vs. a reference using the same bf16-weight precision as the kernel.
    ref_mixed = reference_forward_mixed(x, *params)
    assert jnp.allclose(out, ref_mixed, atol=5e-3, rtol=1e-2)

    # Loose check vs. the exact f32 module (bf16 weights are an intentional trade-off).
    ref_f32 = reference_forward_f32(x, *params)
    assert jnp.allclose(out, ref_f32, atol=3e-2)

    # Softmax rows sum to ~1 (approx reciprocal introduces tiny error).
    assert jnp.allclose(jnp.sum(out, axis=1), jnp.ones((BATCH,)), atol=1e-2)

    print("KERNEL_OK")
</pallas_src>

<mosaic_0001>
module attributes {stable_mosaic.version = 11 : i64} {
  func.func @policy_kernel(%arg0: i32, %arg1: memref<128x128xf32, #tpu.memory_space<vmem>>, %arg2: memref<128x512xbf16, #tpu.memory_space<vmem>>, %arg3: memref<1x512xf32, #tpu.memory_space<vmem>>, %arg4: memref<512x1024xbf16, #tpu.memory_space<vmem>>, %arg5: memref<1x1024xf32, #tpu.memory_space<vmem>>, %arg6: memref<1024x128xbf16, #tpu.memory_space<vmem>>, %arg7: memref<1x128xf32, #tpu.memory_space<vmem>>, %arg8: memref<128x128xf32, #tpu.memory_space<vmem>>) attributes {dimension_semantics = [#tpu.dimension_semantics<parallel>], iteration_bounds = array<i64: 2>, scalar_prefetch = 0 : i64, scratch_operands = 0 : i64, tpu.core_type = #tpu.core_type<tc>, window_params = [{transform_indices = @transform_0, window_bounds = array<i64: 128, 128>}, {pipeline_mode = #tpu.pipeline_mode<synchronous>, transform_indices = @transform_1, window_bounds = array<i64: 128, 512>}, {pipeline_mode = #tpu.pipeline_mode<synchronous>, transform_indices = @transform_2, window_bounds = array<i64: 1, 512>}, {pipeline_mode = #tpu.pipeline_mode<synchronous>, transform_indices = @transform_3, window_bounds = array<i64: 512, 1024>}, {pipeline_mode = #tpu.pipeline_mode<synchronous>, transform_indices = @transform_4, window_bounds = array<i64: 1, 1024>}, {pipeline_mode = #tpu.pipeline_mode<synchronous>, transform_indices = @transform_5, window_bounds = array<i64: 1024, 128>}, {pipeline_mode = #tpu.pipeline_mode<synchronous>, transform_indices = @transform_6, window_bounds = array<i64: 1, 128>}, {transform_indices = @transform_7, window_bounds = array<i64: 128, 128>}]} {
    %c0 = arith.constant 0 : index
    %c0_0 = arith.constant 0 : index
    %0 = vector.load %arg1[%c0, %c0_0] : memref<128x128xf32, #tpu.memory_space<vmem>>, vector<128x128xf32>
    %1 = arith.truncf %0 : vector<128x128xf32> to vector<128x128xbf16>
    %c0_1 = arith.constant 0 : index
    %c0_2 = arith.constant 0 : index
    %2 = vector.load %arg2[%c0_1, %c0_2] : memref<128x512xbf16, #tpu.memory_space<vmem>>, vector<128x512xbf16>
    %cst = arith.constant dense<0.000000e+00> : vector<128x512xf32>
    %3 = tpu.matmul %1, %2, %cst {dimension_numbers = #tpu.dot_dimension_numbers<[1], [0], [0], [1], [0, 0, 1, 1], [], []>} : vector<128x128xbf16>, vector<128x512xbf16>, vector<128x512xf32> -> vector<128x512xf32>
    %c0_3 = arith.constant 0 : index
    %c0_4 = arith.constant 0 : index
    %4 = vector.load %arg3[%c0_3, %c0_4] : memref<1x512xf32, #tpu.memory_space<vmem>>, vector<1x512xf32>
    %5 = vector.broadcast %4 : vector<1x512xf32> to vector<128x512xf32>
    %6 = arith.addf %3, %5 : vector<128x512xf32>
    %cst_5 = arith.constant 0.000000e+00 : f32
    %7 = vector.broadcast %cst_5 : f32 to vector<128x512xf32>
    %8 = arith.maximumf %6, %7 : vector<128x512xf32>
    %9 = arith.truncf %8 : vector<128x512xf32> to vector<128x512xbf16>
    %c0_6 = arith.constant 0 : index
    %c0_7 = arith.constant 0 : index
    %10 = vector.load %arg4[%c0_6, %c0_7] : memref<512x1024xbf16, #tpu.memory_space<vmem>>, vector<512x1024xbf16>
    %cst_8 = arith.constant dense<0.000000e+00> : vector<128x1024xf32>
    %11 = tpu.matmul %9, %10, %cst_8 {dimension_numbers = #tpu.dot_dimension_numbers<[1], [0], [0], [1], [0, 0, 1, 1], [], []>} : vector<128x512xbf16>, vector<512x1024xbf16>, vector<128x1024xf32> -> vector<128x1024xf32>
    %c0_9 = arith.constant 0 : index
    %c0_10 = arith.constant 0 : index
    %12 = vector.load %arg5[%c0_9, %c0_10] : memref<1x1024xf32, #tpu.memory_space<vmem>>, vector<1x1024xf32>
    %13 = vector.broadcast %12 : vector<1x1024xf32> to vector<128x1024xf32>
    %14 = arith.addf %11, %13 : vector<128x1024xf32>
    %cst_11 = arith.constant 0.000000e+00 : f32
    %15 = vector.broadcast %cst_11 : f32 to vector<128x1024xf32>
    %16 = arith.maximumf %14, %15 : vector<128x1024xf32>
    %17 = arith.truncf %16 : vector<128x1024xf32> to vector<128x1024xbf16>
    %c0_12 = arith.constant 0 : index
    %c0_13 = arith.constant 0 : index
    %18 = vector.load %arg6[%c0_12, %c0_13] : memref<1024x128xbf16, #tpu.memory_space<vmem>>, vector<1024x128xbf16>
    %cst_14 = arith.constant dense<0.000000e+00> : vector<128x128xf32>
    %19 = tpu.matmul %17, %18, %cst_14 {dimension_numbers = #tpu.dot_dimension_numbers<[1], [0], [0], [1], [0, 0, 1, 1], [], []>} : vector<128x1024xbf16>, vector<1024x128xbf16>, vector<128x128xf32> -> vector<128x128xf32>
    %c0_15 = arith.constant 0 : index
    %c0_16 = arith.constant 0 : index
    %20 = vector.load %arg7[%c0_15, %c0_16] : memref<1x128xf32, #tpu.memory_space<vmem>>, vector<1x128xf32>
    %21 = vector.broadcast %20 : vector<1x128xf32> to vector<128x128xf32>
    %22 = arith.addf %19, %21 : vector<128x128xf32>
    %cst_17 = arith.constant dense<0xFF800000> : vector<128xf32>
    %23 = vector.multi_reduction <maximumf>, %22, %cst_17 [1] : vector<128x128xf32> to vector<128xf32>
    %24 = vector.shape_cast %23 : vector<128xf32> to vector<128x1xf32>
    %25 = vector.broadcast %24 : vector<128x1xf32> to vector<128x128xf32>
    %26 = arith.subf %22, %25 : vector<128x128xf32>
    %27 = math.exp %26 : vector<128x128xf32>
    %cst_18 = arith.constant dense<0.000000e+00> : vector<128xf32>
    %28 = vector.multi_reduction <add>, %27, %cst_18 [1] : vector<128x128xf32> to vector<128xf32>
    %29 = vector.shape_cast %28 : vector<128xf32> to vector<128x1xf32>
    %30 = tpu.reciprocal %29 {approx = true} : vector<128x1xf32> -> vector<128x1xf32>
    %31 = vector.broadcast %30 : vector<128x1xf32> to vector<128x128xf32>
    %32 = arith.mulf %27, %31 : vector<128x128xf32>
    %c0_19 = arith.constant 0 : index
    %c0_20 = arith.constant 0 : index
    %33 = vector.load %arg8[%c0_19, %c0_20] : memref<128x128xf32, #tpu.memory_space<vmem>>, vector<128x128xf32>
    tpu.vector_store %arg8[%c0_19, %c0_20], %32 {strides = array<i32>} : memref<128x128xf32, #tpu.memory_space<vmem>>, vector<128x128xf32>,
    return
  }
  func.func @transform_0(%arg0: i32) -> (i32, i32) {
    %c0_i32 = arith.constant 0 : i32
    %c0_i32_0 = arith.constant 0 : i32
    return %arg0, %c0_i32 : i32, i32
  }
  func.func @transform_1(%arg0: i32) -> (i32, i32) {
    %c0_i32 = arith.constant 0 : i32
    %c0_i32_0 = arith.constant 0 : i32
    %c0_i32_1 = arith.constant 0 : i32
    return %c0_i32, %c0_i32_0 : i32, i32
  }
  func.func @transform_2(%arg0: i32) -> (i32, i32) {
    %c0_i32 = arith.constant 0 : i32
    %c0_i32_0 = arith.constant 0 : i32
    %c0_i32_1 = arith.constant 0 : i32
    return %c0_i32, %c0_i32_0 : i32, i32
  }
  func.func @transform_3(%arg0: i32) -> (i32, i32) {
    %c0_i32 = arith.constant 0 : i32
    %c0_i32_0 = arith.constant 0 : i32
    %c0_i32_1 = arith.constant 0 : i32
    return %c0_i32, %c0_i32_0 : i32, i32
  }
  func.func @transform_4(%arg0: i32) -> (i32, i32) {
    %c0_i32 = arith.constant 0 : i32
    %c0_i32_0 = arith.constant 0 : i32
    %c0_i32_1 = arith.constant 0 : i32
    return %c0_i32, %c0_i32_0 : i32, i32
  }
  func.func @transform_5(%arg0: i32) -> (i32, i32) {
    %c0_i32 = arith.constant 0 : i32
    %c0_i32_0 = arith.constant 0 : i32
    %c0_i32_1 = arith.constant 0 : i32
    return %c0_i32, %c0_i32_0 : i32, i32
  }
  func.func @transform_6(%arg0: i32) -> (i32, i32) {
    %c0_i32 = arith.constant 0 : i32
    %c0_i32_0 = arith.constant 0 : i32
    %c0_i32_1 = arith.constant 0 : i32
    return %c0_i32, %c0_i32_0 : i32, i32
  }
  func.func @transform_7(%arg0: i32) -> (i32, i32) {
    %c0_i32 = arith.constant 0 : i32
    %c0_i32_0 = arith.constant 0 : i32
    return %arg0, %c0_i32 : i32, i32
  }
}

</mosaic_0001>

<bundles_post_ra>
// kernel: tpu_custom_call.1
= control target key start
LH: loop header
LB: loop body
LE: loop exit
PB: predicated region body
PF: predicated region fallthrough
CT: control target
= control target key end

     0   :  { %s7505_s0 = inlined_call_operand.hbm [shape: f32[256,128], index: 0, kind: input, shape index: {}]   ;;  %s7506_s1 = inlined_call_operand.hbm [shape: bf16[128,512], index: 1, kind: input, shape index: {}]   ;;  %s7507_s2 = inlined_call_operand.hbm [shape: f32[1,512], index: 2, kind: input, shape index: {}]   ;;  %s7508_s3 = inlined_call_operand.hbm [shape: bf16[512,1024], index: 3, kind: input, shape index: {}]   ;;  %s7509_s4 = inlined_call_operand.hbm [shape: f32[1,1024], index: 4, kind: input, shape index: {}]   ;;  %s7510_s5 = inlined_call_operand.hbm [shape: bf16[1024,128], index: 5, kind: input, shape index: {}]   ;;  %s7511_s6 = inlined_call_operand.vmem [shape: f32[1,128], index: 6, kind: input, shape index: {}]   ;;  %s7512_s7 = inlined_call_operand.hbm [shape: f32[256,128], index: 7, kind: output, shape index: {}]  }
   0x1   :  { %7524 = sst [smem:[#allocation48_spill]] %s7506_s1 }
   0x2   :  { %12 = vsyncpa [#allocation3], 0 }
   0x3   :  { %14 = vsyncpa [#allocation3 + $0x1], 0 }
   0x4   :  { %15 = vsyncpa [#allocation6], 0 }
   0x5   :  { %16 = vsyncpa [#allocation9], 0 }
   0x6   :  { %17 = vsyncpa [#allocation12], 0 }
   0x7   :  { %18 = vsyncpa [#allocation4], 0 }
   0x8   :  { %20 = vsyncpa [#allocation4 + $0x1], 0  ;;  %s6019_s24 = smov 0   ;;  %s6021_s25 = smov 0  }
   0x9   :  { %s6023_s26 = smov 0   ;;  %s6025_s27 = smov 0  }
   0xa LB: > { %s5961_s28 = smov [#allocation5]   ;;  %s6040_s30 = sadd.s32 4294967295, %s5959_s27   ;;  %s5959_s27 = sphi %s6025_s27, %s7631_s27   ;;  %s5955_s26 = sphi %s6023_s26, %s7630_s26   ;;  %s5951_s25 = sphi %s6021_s25, %s7629_s25   ;;  %s5947_s24 = sphi %s6019_s24, %s7628_s24  }
   0xb   : > { %s221_s29 = sshll.u32 %s5961_s28, 4  ;;  %p4806_p0 = scmp.ge.s32.totalorder %s5959_s27, 1  ;;  %s222_s29 = int_to_ptr.vmem [resolvable:$true] %s221_s29 }
   0xc   : > { %p7513_p1 = scmp.eq.s32.totalorder %s6040_s30, 0  ;;  %p209_p2 = scmp.lt.s32.totalorder %s5959_s27, 3 }
   0xd   : > { %s5962_s9 = smov [#allocation8]   ;;  %s5963_s12 = smov [#allocation7]  }
   0xe   : > { %p6045_p3 = pnand %p4806_p0, %p209_p2  ;;  %s245_s10 = sshll.u32 %s5962_s9, 4  ;;  %s6058_s10 = int_to_ptr.vmem [resolvable:$true] %s245_s10 }
   0xf   : > { %s6060_s13 = sshll.u32 %s5963_s12, 4  ;;  %s5736_s15 = scalar_lea.vmem %s222_s29, 4096  ;;  %s236_s13 = int_to_ptr.vmem [resolvable:$true] %s6060_s13 }
  0x10   : > { %s7525_s8 = scalar_select %p6045_p3, 1, 0 }
  0x11   : > { %p5464_p5 = pneg %p6045_p3  ;;  %p5737_p8 = scmp.ne.s32.totalorder %s222_s29, %s5736_s15 }
  0x12   : > { %p5744_p11 = scmp.lt.s32.totalorder %s222_s29, %s222_s29  ;;  %p5745_p12 = scmp.lt.s32.totalorder %s5736_s15, %s5736_s15 }
  0x13   : > { %p6054_p6 = pnand %p5464_p5, %p7513_p1 }
  0x14   : > { %p5746_p13 = por %p5745_p12, %p5744_p11 }
  0x15   : > { %p6064_p7 = pneg %p6054_p6 }
  0x17   : > { %p5739_p9 = pnand %p5737_p8, %p6064_p7 }
  0x19   : > { %p5740_p10 = pneg %p5739_p9 }
  0x1b   : > { %p5747_p0 = pnand %p5746_p13, %p5740_p10 }
  0x1d   : > { %5750 = shalt.err (!%p5747_p0)
}
  0x1e   : > { %s5964_s16 = smov 256   ;;  %s5965_s17 = smov 16  }
  0x1f   : > { %s7528_s1 = sld [smem:[#allocation48_spill]]  ;;  %s5762_s20 = scalar_lea.vmem %s6058_s10, 32768 }
  0x20   : > { %p5763_p2 = scmp.ne.s32.totalorder %s6058_s10, %s5762_s20  ;;  %p5770_p9 = scmp.lt.s32.totalorder %s6058_s10, %s6058_s10 }
  0x21   : > { %p5771_p10 = scmp.lt.s32.totalorder %s5762_s20, %s5762_s20 }
  0x22   : > { %p5765_p5 = pnand %p5763_p2, %p6064_p7 }
  0x23   : > { %p5772_p11 = por %p5771_p10, %p5770_p9 }
  0x24   : > { %p5766_p8 = pneg %p5765_p5 }
  0x25   : > { %5467 = dma.hbm_to_vmem [thread:$0]  (!%p6054_p6), %s7528_s1, 4096, %s222_s29, [#allocation6], %s5964_s16, %s5964_s16, %s5965_s17  }
  0x26   : > { %p5773_p12 = pnand %p5772_p11, %p5766_p8 }
  0x28   : > { %5776 = shalt.err (!%p5773_p12)
}
  0x29   : > { %s5966_s21 = smov 512   ;;  %s5967_s22 = smov 32  }
  0x2a   : > { %5473 = dma.hbm_to_vmem [thread:$0]  (!%p6054_p6), %s7508_s3, 32768, %s6058_s10, [#allocation9], %s5966_s21, %s5966_s21, %s5967_s22  }
  0x2b   : > { %s5788_s29 = scalar_lea.vmem %s236_s13, 64  ;;  %p5796_p5 = scmp.lt.s32.totalorder %s236_s13, %s236_s13 }
  0x2c   : > { %p5789_p13 = scmp.ne.s32.totalorder %s236_s13, %s5788_s29  ;;  %p5797_p8 = scmp.lt.s32.totalorder %s5788_s29, %s5788_s29 }
  0x2e   : > { %p5791_p0 = pnand %p5789_p13, %p6064_p7  ;;  %p5798_p9 = por %p5797_p8, %p5796_p5 }
  0x30   : > { %p5792_p2 = pneg %p5791_p0 }
  0x32   : > { %p5799_p10 = pnand %p5798_p9, %p5792_p2 }
  0x34   : > { %5802 = shalt.err (!%p5799_p10)
}
  0x35   : > { %5470 = dma.hbm_to_vmem [thread:$0]  (!%p6054_p6), %s7507_s2, 64, %s236_s13, [#allocation6]  }
  0x36   : > { %s5968_s15 = smov [#allocation10]   ;;  %s5969_s16 = smov [#allocation11]  }
  0x37   : > { %s259_s10 = sshll.u32 %s5968_s15, 4  ;;  %s269_s17 = sshll.u32 %s5969_s16, 4  ;;  %s260_s10 = int_to_ptr.vmem [resolvable:$true] %s259_s10  ;;  %s270_s17 = int_to_ptr.vmem [resolvable:$true] %s269_s17 }
  0x38   : > { %s5814_s18 = scalar_lea.vmem %s260_s10, 128  ;;  %p5822_p0 = scmp.lt.s32.totalorder %s260_s10, %s260_s10 }
  0x39   : > { %p5815_p11 = scmp.ne.s32.totalorder %s260_s10, %s5814_s18  ;;  %p5823_p2 = scmp.lt.s32.totalorder %s5814_s18, %s5814_s18 }
  0x3b   : > { %p5817_p12 = pnand %p5815_p11, %p6064_p7  ;;  %p5824_p5 = por %p5823_p2, %p5822_p0 }
  0x3d   : > { %p5818_p13 = pneg %p5817_p12 }
  0x3f   : > { %p5825_p8 = pnand %p5824_p5, %p5818_p13 }
  0x41   : > { %5828 = shalt.err (!%p5825_p8)
}
  0x42   : > { %5476 = dma.hbm_to_vmem [thread:$0]  (!%p6054_p6), %s7509_s4, 128, %s260_s10, [#allocation9]  }
  0x43   : > { %s5840_s13 = scalar_lea.vmem %s270_s17, 8192  ;;  %p5848_p11 = scmp.lt.s32.totalorder %s270_s17, %s270_s17 }
  0x44   : > { %p5841_p9 = scmp.ne.s32.totalorder %s270_s17, %s5840_s13  ;;  %p5849_p12 = scmp.lt.s32.totalorder %s5840_s13, %s5840_s13 }
  0x46   : > { %p5843_p10 = pnand %p5841_p9, %p6064_p7  ;;  %p5850_p1 = por %p5849_p12, %p5848_p11 }
  0x48   : > { %p5844_p4 = pneg %p5843_p10 }
  0x4a   : > { %p5851_p3 = pnand %p5850_p1, %p5844_p4 }
  0x4c   : > { %5854 = shalt.err (!%p5851_p3)
}
  0x4d   : > { %s5970_s21 = smov 64   ;;  %s5971_s14 = smov 4  }
  0x4e   : > { %5479 = dma.hbm_to_vmem [thread:$0]  (!%p6054_p6), %s7510_s5, 8192, %s270_s17, [#allocation12], %s5970_s21, %s5970_s21, %s5971_s14  }
  0x4f   : > { %s4805_s28 = sadd.s32 4294967294, %s5959_s27   ;;  %s6111_s29 = sadd.s32 1, %s5959_s27  }
  0x50   : > { %s33_s9 = sadd.s32 1, %s5955_s26  ;;  %s30_s12 = ssub.s32 %s5959_s27, %s6111_s29 }
  0x51   : > { %p40_p1 = scmp.ne.s32.totalorder %s5955_s26, %s5951_s25  ;;  %p31_p3 = scmp.eq.s32.totalorder %s30_s12, 0 }
  0x52   : > { %p41_p4 = scmp.eq.s32.totalorder %s5959_s27, 0  ;;  %p46_p7 = scmp.ne.s32.totalorder %s5951_s25, %s5947_s24 }
  0x53   : > { %p196_p13 = scmp.eq.s32.totalorder %s6040_s30, 1  ;;  %p7529_p2 = scmp.eq.s32.totalorder %s6040_s30, 0 }
  0x54   : > { %s6123_s15 = scalar_select %p31_p3, %s5955_s26, %s33_s9  }
  0x55   : > { %p42_p0 = por %p41_p4, %p40_p1  ;;  %p6127_p5 = por %p7529_p2, %p46_p7 }
  0x56   : > { %p6131_p6 = por %p196_p13, %p40_p1  ;;  %p202_p8 = scmp.eq.s32.totalorder %s4805_s28, 1 }
  0x57   : > { %s7530_s11 = scalar_select %p6127_p5, 1, 0 }
  0x58   : > { %s7531_s10 = scalar_select %p6131_p6, 1, 0 }
  0x59   : > { %p5493_p9 = scmp.lt.s32.totalorder %s5959_s27, 2  ;;  %s286_s16 = sand.u32 1, %s5955_s26  }
  0x5a   : > { %p6137_p10 = por %p202_p8, %p46_p7  ;;  %s4813_s18 = sshll.u32 %s286_s16, 7 }
  0x5b   : > { %s5182_s19 = sshll.u32 %s5959_s27, 11  ;;  %s290_s14 = scalar_lea.vmem [#allocation2], %s4813_s18 }
  0x5c   : > { %s7532_s17 = scalar_select %p6137_p10, 1, 0 }
  0x5d   : > { %s6145_s21 = scalar_lea.hbm %s7505_s0, %s5182_s19  ;;  %s297_s22 = sshll.u32 %s290_s14, 4  ;;  %s6151_s22 = int_to_ptr.vmem [resolvable:$true] %s297_s22 }
  0x5e   : > { %p6147_p11 = pnand %p5493_p9, %p42_p0  ;;  %s6153_s28 = scalar_lea.sflag [#allocation3], %s286_s16 }
  0x5f   : > { %s5855_s9 = scalar_lea.hbm %s6145_s21, 2048  ;;  %s5860_s18 = scalar_lea.hbm %s7505_s0, 4096 }
  0x60   : > { %p5856_p12 = scmp.ne.s32.totalorder %s6145_s21, %s5855_s9  ;;  %p5857_p1 = pneg %p6147_p11 }
  0x61   : > { %p5861_p7 = scmp.lt.s32.totalorder %s6145_s21, %s7505_s0  ;;  %p5862_p13 = scmp.lt.s32.totalorder %s5860_s18, %s5855_s9 }
  0x62   : > { %p5858_p3 = pnand %p5857_p1, %p5856_p12 }
  0x63   : > { %p5863_p0 = por %p5862_p13, %p5861_p7 }
  0x64   : > { %p5859_p4 = pneg %p5858_p3 }
  0x66   : > { %p5864_p2 = pnand %p5863_p0, %p5859_p4 }
  0x68   : > { %5867 = shalt.err (!%p5864_p2)
}
  0x69   : > { %s5868_s16 = scalar_lea.vmem %s6151_s22, 2048  ;;  %s5972_s14 = smov [#allocation2]  }
  0x6a   : > { %p5869_p8 = scmp.ne.s32.totalorder %s6151_s22, %s5868_s16  ;;  %s5873_s1 = sshll.u32 %s5972_s14, 4  ;;  %s5874_s1 = int_to_ptr.vmem [resolvable:$false] %s5873_s1 }
  0x6b   : > { %s5875_s12 = scalar_lea.vmem %s5874_s1, 4096  ;;  %p5876_p3 = scmp.lt.s32.totalorder %s6151_s22, %s5874_s1 }
  0x6c   : > { %p5871_p9 = pnand %p5869_p8, %p5857_p1  ;;  %p5877_p10 = scmp.lt.s32.totalorder %s5875_s12, %s5868_s16 }
  0x6e   : > { %p5872_p12 = pneg %p5871_p9  ;;  %p5878_p6 = por %p5877_p10, %p5876_p3 }
  0x70   : > { %p5879_p5 = pnand %p5878_p6, %p5872_p12 }
  0x72   : > { %5882 = shalt.err (!%p5879_p5)
}
  0x73   : > { %s5973_s9 = smov 128   ;;  %s5974_s19 = smov 8  }
  0x74   : > { %5483 = dma.hbm_to_vmem [thread:$0]  (!%p6147_p11), %s6145_s21, 2048, %s6151_s22, %s6153_s28, %s5973_s9, %s5973_s9, %s5974_s19  }
  0x75   : > { %p7534_p1 = scmp.ne.s32.totalorder %s7525_s8, 0 }
  0x77   : > { %309 = sbr.rel (%p7534_p1) target bundleno = 1361 (0x551), region = 48 }
  0x7c   : > { %s6177_s18 = sand.u32 1, %s5951_s25   ;;  %p7535_p5 = scmp.ne.s32.totalorder %s7530_s11, 0 }
  0x7d   : > { %s4817_s1 = sshll.u32 %s6177_s18, 7  ;;  %s312_s20 = scalar_lea.sflag [#allocation3], %s6177_s18 }
  0x7e   : > { %s6183_s13 = scalar_lea.vmem [#allocation2], %s4817_s1 }
  0x7f   : > { %5926 = dma.done.wait (%p7535_p5), %s312_s20, 2048  }
  0x80   : > { %5928 = vsyncadd (%p7535_p5), %s312_s20, 4294965248  ;;  %p7536_p6 = scmp.eq.s32.totalorder %s6040_s30, 0 }
  0x82   : > { %5930 = dma.done.wait (%p7536_p6), [#allocation6], 4160   ;;  %p7537_p10 = pmov %p7536_p6 }
  0x83   : > { %p7538_p11 = pmov %p7536_p6 }
  0x84   : > { %5932 = vsyncadd (%p7537_p10), [#allocation6], 4294963136 }
  0x85   : > { %5934 = dma.done.wait (%p7538_p11), [#allocation9], 32896   ;;  %p7539_p4 = pmov %p7536_p6 }
  0x87   : > { %5936 = vsyncadd (%p7539_p4), [#allocation9], 4294934400  ;;  %p7540_p7 = pmov %p7539_p4 }
  0x88   : > { %p7541_p13 = pmov %p7539_p4 }
  0x89   : > { %5938 = dma.done.wait (%p7540_p7), [#allocation12], 8192  }
  0x8a   : > { %5940 = vsyncadd (%p7541_p13), [#allocation12], 4294959104  ;;  %v5975_v0 = vmov 0   ;;  %v5548_v1 = vld [vmem:[#allocation5 + $0xe4] ss:$16 sps:$4 sm:$0xff]   ;;  %v370_v38 = vld [vmem:[%s6183_s13 + $0x8] sm:$0xff] }
  0x8b   : > { %639 = vmatprep.mubr.bf16.mxu0 %v5975_v0  ;;  %752 = vmatprep.mubr.bf16.mxu1 %v5975_v0  ;;  %v5550_v2 = vld [vmem:[#allocation5 + $0xec] ss:$16 sps:$4 sm:$0xff]   ;;  %v5552_v3 = vld [vmem:[#allocation5 + $0xe0] ss:$16 sps:$4 sm:$0xff]   ;;  %v5553_v4 = vld [vmem:[#allocation5 + $0xe8] ss:$16 sps:$4 sm:$0xff]  }
  0x8c   : > { %607 = vmatprep.subr.bf16.mxu0 %v5548_v1  ;;  %720 = vmatprep.subr.bf16.mxu1 %v5550_v2  ;;  %v5554_v5 = vld [vmem:[#allocation5 + $0xc4] ss:$16 sps:$4 sm:$0xff]   ;;  %v5556_v6 = vld [vmem:[#allocation5 + $0xcc] ss:$16 sps:$4 sm:$0xff]   ;;  %v5558_v7 = vld [vmem:[#allocation5 + $0xc0] ss:$16 sps:$4 sm:$0xff]  }
  0x8d   : > { %608 = vmatpush1.bf16.msra.mxu0 %v5552_v3  ;;  %721 = vmatpush1.bf16.msra.mxu1 %v5553_v4  ;;  %v5559_v8 = vld [vmem:[#allocation5 + $0xc8] ss:$16 sps:$4 sm:$0xff]   ;;  %v5560_v9 = vld [vmem:[#allocation5 + $0xa4] ss:$16 sps:$4 sm:$0xff]   ;;  %v5562_v10 = vld [vmem:[#allocation5 + $0xac] ss:$16 sps:$4 sm:$0xff]  }
  0x8e   : > { %609 = vmatprep.subr.bf16.mxu0 %v5554_v5  ;;  %722 = vmatprep.subr.bf16.mxu1 %v5556_v6  ;;  %v5564_v11 = vld [vmem:[#allocation5 + $0xa0] ss:$16 sps:$4 sm:$0xff]   ;;  %v5565_v12 = vld [vmem:[#allocation5 + $0xa8] ss:$16 sps:$4 sm:$0xff]   ;;  %v5566_v13 = vld [vmem:[#allocation5 + $0x84] ss:$16 sps:$4 sm:$0xff]  }
  0x8f   : > { %v5568_v14 = vld [vmem:[#allocation5 + $0x8c] ss:$16 sps:$4 sm:$0xff]   ;;  %v5570_v15 = vld [vmem:[#allocation5 + $0x80] ss:$16 sps:$4 sm:$0xff]   ;;  %v5571_v16 = vld [vmem:[#allocation5 + $0x88] ss:$16 sps:$4 sm:$0xff]  }
  0x90   : > { %v5572_v17 = vld [vmem:[#allocation5 + $0x64] ss:$16 sps:$4 sm:$0xff]   ;;  %v5574_v18 = vld [vmem:[#allocation5 + $0x6c] ss:$16 sps:$4 sm:$0xff]   ;;  %v5576_v19 = vld [vmem:[#allocation5 + $0x60] ss:$16 sps:$4 sm:$0xff]  }
  0x91   : > { %610 = vmatpush1.bf16.msra.mxu0 %v5558_v7  ;;  %723 = vmatpush1.bf16.msra.mxu1 %v5559_v8  ;;  %v5577_v20 = vld [vmem:[#allocation5 + $0x68] ss:$16 sps:$4 sm:$0xff]   ;;  %v5578_v21 = vld [vmem:[#allocation5 + $0x44] ss:$16 sps:$4 sm:$0xff]   ;;  %v5580_v22 = vld [vmem:[#allocation5 + $0x4c] ss:$16 sps:$4 sm:$0xff]  }
  0x92   : > { %611 = vmatprep.subr.bf16.mxu0 %v5560_v9  ;;  %724 = vmatprep.subr.bf16.mxu1 %v5562_v10  ;;  %v5582_v23 = vld [vmem:[#allocation5 + $0x40] ss:$16 sps:$4 sm:$0xff]   ;;  %v5583_v24 = vld [vmem:[#allocation5 + $0x48] ss:$16 sps:$4 sm:$0xff]   ;;  %v5584_v25 = vld [vmem:[#allocation5 + $0x24] ss:$16 sps:$4 sm:$0xff]  }
  0x93   : > { %v5586_v26 = vld [vmem:[#allocation5 + $0x2c] ss:$16 sps:$4 sm:$0xff]   ;;  %v5588_v27 = vld [vmem:[#allocation5 + $0x20] ss:$16 sps:$4 sm:$0xff]   ;;  %v5589_v28 = vld [vmem:[#allocation5 + $0x28] ss:$16 sps:$4 sm:$0xff]  }
  0x94   : > { %v5590_v29 = vld [vmem:[#allocation5 + $0x4] ss:$16 sps:$4 sm:$0xff]   ;;  %v5592_v30 = vld [vmem:[#allocation5 + $0xc] ss:$16 sps:$4 sm:$0xff]   ;;  %v5594_v31 = vld [vmem:[#allocation5] ss:$16 sps:$4 sm:$0xff]  }
  0x95   : > { %612 = vmatpush1.bf16.msra.mxu0 %v5564_v11  ;;  %725 = vmatpush1.bf16.msra.mxu1 %v5565_v12  ;;  %v985_v32 = vld [vmem:[#allocation8 + $0x1c0] sm:$0xff]  ;;  %v371_v54 = vld [vmem:[%s6183_s13 + $0x10] sm:$0xff]  ;;  %v372_v55 = vld [vmem:[%s6183_s13 + $0x18] sm:$0xff]  ;;  %s7422_s21 = scalar_lea.vmem [#allocation13], %s4817_s1  ;;  %s5183_s22 = sshll.u32 %s6040_s30, 11 }
  0x96   : > { %613 = vmatprep.subr.bf16.mxu0 %v5566_v13  ;;  %726 = vmatprep.subr.bf16.mxu1 %v5568_v14  ;;  %v989_v33 = vld [vmem:[#allocation8 + $0x1e0] sm:$0xff]  ;;  %v386_v61 = vpack.c.bf16 %v372_v55, %v371_v54  ;;  %s4684_s23 = sshll.u32 %s7422_s21, 4  ;;  %s7458_s14 = scalar_lea.hbm %s7512_s7, %s5183_s22  ;;  %s7460_s23 = int_to_ptr.vmem [resolvable:$true] %s4684_s23 }
  0x97   : > { %v1113_v34 = vld [vmem:[#allocation8 + $0x5c0] sm:$0xff]  ;;  %v4913_v39 = vcombine.high %v985_v32, %v989_v33  ;;  %v4912_v46 = vcombine.low %v985_v32, %v989_v33  ;;  %s4671_s12 = scalar_lea.sflag [#allocation4], %s6177_s18  ;;  %s5883_s9 = scalar_lea.vmem %s7460_s23, 2048 }
  0x98   : > { %v1117_v35 = vld [vmem:[#allocation8 + $0x5e0] sm:$0xff]  ;;  %p5884_p0 = scmp.ne.s32.totalorder %s7460_s23, %s5883_s9  ;;  %p7625_p2 = scmp.ne.s32.totalorder %s7531_s10, 0 }
  0x99   : > { %614 = vmatpush1.bf16.msra.mxu0 %v5570_v15  ;;  %727 = vmatpush1.bf16.msra.mxu1 %v5571_v16  ;;  %v5595_v36 = vld [vmem:[#allocation5 + $0x8] ss:$16 sps:$4 sm:$0xff]   ;;  %v369_v37 = vld [vmem:[%s6183_s13] sm:$0xff]  ;;  %v5041_v40 = vcombine.high %v1113_v34, %v1117_v35  ;;  %v5040_v47 = vcombine.low %v1113_v34, %v1117_v35  ;;  %s5976_s30 = smov [#allocation13]  }
  0x9a   : > { %615 = vmatprep.subr.bf16.mxu0 %v5572_v17  ;;  %728 = vmatprep.subr.bf16.mxu1 %v5574_v18  ;;  %v977_v41 = vld [vmem:[#allocation8 + $0x180] sm:$0xff]  ;;  %v385_v42 = vpack.c.bf16 %v370_v38, %v369_v37  ;;  %p5885_p8 = pnand %p5884_p0, %p7625_p2  ;;  %s5887_s19 = sshll.u32 %s5976_s30, 4  ;;  %s5888_s19 = int_to_ptr.vmem [resolvable:$false] %s5887_s19 }
  0x9b   : > { %v981_v43 = vld [vmem:[#allocation8 + $0x1a0] sm:$0xff]  ;;  %s5889_s1 = scalar_lea.vmem %s5888_s19, 4096  ;;  %p5890_p12 = scmp.lt.s32.totalorder %s7460_s23, %s5888_s19 }
  0x9c   : > { %v1105_v44 = vld [vmem:[#allocation8 + $0x580] sm:$0xff]  ;;  %v4905_v48 = vcombine.high %v977_v41, %v981_v43  ;;  %v4904_v56 = vcombine.low %v977_v41, %v981_v43  ;;  %p5886_p9 = pneg %p5885_p8  ;;  %p5891_p3 = scmp.lt.s32.totalorder %s5889_s1, %s5883_s9 }
  0x9d   : > { %616 = vmatpush1.bf16.msra.mxu0 %v5576_v19  ;;  %729 = vmatpush1.bf16.msra.mxu1 %v5577_v20  ;;  %v1109_v45 = vld [vmem:[#allocation8 + $0x5a0] sm:$0xff] }
  0x9e   : > { %617 = vmatprep.subr.bf16.mxu0 %v5578_v21  ;;  %730 = vmatprep.subr.bf16.mxu1 %v5580_v22  ;;  %v5033_v49 = vcombine.high %v1105_v44, %v1109_v45  ;;  %v969_v50 = vld [vmem:[#allocation8 + $0x140] sm:$0xff]  ;;  %v5032_v57 = vcombine.low %v1105_v44, %v1109_v45  ;;  %p5892_p1 = por %p5891_p3, %p5890_p12 }
  0x9f   : > { %v973_v51 = vld [vmem:[#allocation8 + $0x160] sm:$0xff] }
  0xa0   : > { %v1097_v52 = vld [vmem:[#allocation8 + $0x540] sm:$0xff]  ;;  %v4897_v58 = vcombine.high %v969_v50, %v973_v51  ;;  %v4896_v2 = vcombine.low %v969_v50, %v973_v51  ;;  %p5893_p5 = pnand %p5892_p1, %p5886_p9 }
  0xa1   : > { %618 = vmatpush1.bf16.msra.mxu0 %v5582_v23  ;;  %731 = vmatpush1.bf16.msra.mxu1 %v5583_v24  ;;  %v1101_v53 = vld [vmem:[#allocation8 + $0x560] sm:$0xff] }
  0xa2   : > { %619 = vmatprep.subr.bf16.mxu0 %v5584_v25  ;;  %732 = vmatprep.subr.bf16.mxu1 %v5586_v26  ;;  %v5025_v59 = vcombine.high %v1097_v52, %v1101_v53  ;;  %v961_v60 = vld [vmem:[#allocation8 + $0x100] sm:$0xff]  ;;  %v5024_v3 = vcombine.low %v1097_v52, %v1101_v53 }
  0xa3   : > { %v965_v62 = vld [vmem:[#allocation8 + $0x120] sm:$0xff] }
  0xa4   : > { %v1089_v63 = vld [vmem:[#allocation8 + $0x500] sm:$0xff]  ;;  %v4889_v5 = vcombine.high %v961_v60, %v965_v62  ;;  %v4888_v12 = vcombine.low %v961_v60, %v965_v62 }
  0xa5   : > { %620 = vmatpush1.bf16.msra.mxu0 %v5588_v27  ;;  %733 = vmatpush1.bf16.msra.mxu1 %v5589_v28  ;;  %v1093_v1 = vld [vmem:[#allocation8 + $0x520] sm:$0xff]  ;;  %v375_v27 = vld [vmem:[%s6183_s13 + $0x30] sm:$0xff]  ;;  %v376_v28 = vld [vmem:[%s6183_s13 + $0x38] sm:$0xff] }
  0xa6   : > { %621 = vmatprep.subr.bf16.mxu0 %v5590_v29  ;;  %734 = vmatprep.subr.bf16.mxu1 %v5592_v30  ;;  %v373_v4 = vld [vmem:[%s6183_s13 + $0x20] sm:$0xff]  ;;  %v5017_v6 = vcombine.high %v1089_v63, %v1093_v1  ;;  %v374_v11 = vld [vmem:[%s6183_s13 + $0x28] sm:$0xff]  ;;  %v5016_v13 = vcombine.low %v1089_v63, %v1093_v1 }
  0xa7   : > { %v953_v7 = vld [vmem:[#allocation8 + $0xc0] sm:$0xff]  ;;  %v387_v20 = vpack.c.bf16 %v374_v11, %v373_v4 }
  0xa8   : > { %v957_v8 = vld [vmem:[#allocation8 + $0xe0] sm:$0xff] }
  0xa9   : > { %622 = vmatpush1.bf16.msra.mxu0 %v5594_v31  ;;  %735 = vmatpush1.bf16.msra.mxu1 %v5595_v36  ;;  %v1081_v9 = vld [vmem:[#allocation8 + $0x4c0] sm:$0xff]  ;;  %v4881_v18 = vcombine.high %v953_v7, %v957_v8  ;;  %v4880_v21 = vcombine.low %v953_v7, %v957_v8 }
  0xaa   : > { %2507 = vmatprep.subr.bf16.mxu0 %v4913_v39  ;;  %2620 = vmatprep.subr.bf16.mxu1 %v5041_v40  ;;  %v1085_v10 = vld [vmem:[#allocation8 + $0x4e0] sm:$0xff]  ;;  %v388_v39 = vpack.c.bf16 %v376_v28, %v375_v27 }
  0xab   : > { %v945_v14 = vld [vmem:[#allocation8 + $0x80] sm:$0xff]  ;;  %v5009_v19 = vcombine.high %v1081_v9, %v1085_v10  ;;  %v5008_v22 = vcombine.low %v1081_v9, %v1085_v10 }
  0xac   : > { %640 = vmatmul.mubr.bf16.vlgmr.msra.gmra.mxu0 %v385_v42  ;;  %753 = vmatmul.mubr.bf16.vlgmr.msra.gmra.mxu1 %v385_v42  ;;  %v949_v15 = vld [vmem:[#allocation8 + $0xa0] sm:$0xff] }
  0xad   : > { %649 = vmatprep.mubr.bf16.mxu0 %v5975_v0  ;;  %762 = vmatprep.mubr.bf16.mxu1 %v5975_v0  ;;  %v1073_v16 = vld [vmem:[#allocation8 + $0x480] sm:$0xff]  ;;  %v4873_v29 = vcombine.high %v945_v14, %v949_v15  ;;  %v4872_v31 = vcombine.low %v945_v14, %v949_v15 }
  0xae   : > { %2508 = vmatpush1.bf16.msra.mxu0 %v4912_v46  ;;  %2621 = vmatpush1.bf16.msra.mxu1 %v5040_v47  ;;  %v1077_v17 = vld [vmem:[#allocation8 + $0x4a0] sm:$0xff] }
  0xaf   : > { %2509 = vmatprep.subr.bf16.mxu0 %v4905_v48  ;;  %2622 = vmatprep.subr.bf16.mxu1 %v5033_v49  ;;  %v937_v23 = vld [vmem:[#allocation8 + $0x40] sm:$0xff]  ;;  %v5001_v30 = vcombine.high %v1073_v16, %v1077_v17  ;;  %v5000_v32 = vcombine.low %v1073_v16, %v1077_v17 }
  0xb0   : > { %v941_v24 = vld [vmem:[#allocation8 + $0x60] sm:$0xff] }
  0xb1   : > { %v1065_v25 = vld [vmem:[#allocation8 + $0x440] sm:$0xff]  ;;  %v4865_v37 = vcombine.high %v937_v23, %v941_v24  ;;  %v4864_v40 = vcombine.low %v937_v23, %v941_v24 }
  0xb2   : > { %2510 = vmatpush1.bf16.msra.mxu0 %v4904_v56  ;;  %2623 = vmatpush1.bf16.msra.mxu1 %v5032_v57  ;;  %v1069_v26 = vld [vmem:[#allocation8 + $0x460] sm:$0xff] }
  0xb3   : > { %2511 = vmatprep.subr.bf16.mxu0 %v4897_v58  ;;  %2624 = vmatprep.subr.bf16.mxu1 %v5025_v59  ;;  %v929_v33 = vld [vmem:[#allocation8] sm:$0xff]  ;;  %v4993_v38 = vcombine.high %v1065_v25, %v1069_v26  ;;  %v4992_v41 = vcombine.low %v1065_v25, %v1069_v26 }
  0xb4   : > { %650 = vmatmul.mubr.bf16.gmra.mxu0 %v386_v61  ;;  %763 = vmatmul.mubr.bf16.gmra.mxu1 %v386_v61  ;;  %v933_v34 = vld [vmem:[#allocation8 + $0x20] sm:$0xff] }
  0xb5   : > { %659 = vmatprep.mubr.bf16.mxu0 %v5975_v0  ;;  %772 = vmatprep.mubr.bf16.mxu1 %v5975_v0  ;;  %v1057_v35 = vld [vmem:[#allocation8 + $0x400] sm:$0xff]  ;;  %v4857_v48 = vcombine.high %v929_v33, %v933_v34  ;;  %v4856_v50 = vcombine.low %v929_v33, %v933_v34  ;;  %v384_v33 = vld [vmem:[%s6183_s13 + $0x78] sm:$0xff] }
  0xb6   : > { %2512 = vmatpush1.bf16.msra.mxu0 %v4896_v2  ;;  %2625 = vmatpush1.bf16.msra.mxu1 %v5024_v3  ;;  %v1061_v36 = vld [vmem:[#allocation8 + $0x420] sm:$0xff]  ;;  %v379_v2 = vld [vmem:[%s6183_s13 + $0x50] sm:$0xff]  ;;  %v380_v3 = vld [vmem:[%s6183_s13 + $0x58] sm:$0xff] }
  0xb7   : > { %2513 = vmatprep.subr.bf16.mxu0 %v4889_v5  ;;  %2626 = vmatprep.subr.bf16.mxu1 %v5017_v6  ;;  %v1049_v42 = vld [vmem:[#allocation8 + $0x3c0] sm:$0xff]  ;;  %v4985_v49 = vcombine.high %v1057_v35, %v1061_v36  ;;  %v4984_v51 = vcombine.low %v1057_v35, %v1061_v36  ;;  %v390_v14 = vpack.c.bf16 %v380_v3, %v379_v2  ;;  %v427_v3 = vlaneseq }
  0xb8   : > { %v1053_v43 = vld [vmem:[#allocation8 + $0x3e0] sm:$0xff] }
  0xb9   : > { %v1177_v44 = vld [vmem:[#allocation8 + $0x7c0] sm:$0xff]  ;;  %v4977_v56 = vcombine.high %v1049_v42, %v1053_v43  ;;  %v4976_v59 = vcombine.low %v1049_v42, %v1053_v43 }
  0xba   : > { %2514 = vmatpush1.bf16.msra.mxu0 %v4888_v12  ;;  %2627 = vmatpush1.bf16.msra.mxu1 %v5016_v13  ;;  %v1181_v45 = vld [vmem:[#allocation8 + $0x7e0] sm:$0xff] }
  0xbb   : > { %2515 = vmatprep.subr.bf16.mxu0 %v4881_v18  ;;  %2628 = vmatprep.subr.bf16.mxu1 %v5009_v19  ;;  %v377_v46 = vld [vmem:[%s6183_s13 + $0x40] sm:$0xff]  ;;  %v378_v47 = vld [vmem:[%s6183_s13 + $0x48] sm:$0xff]  ;;  %v5105_v57 = vcombine.high %v1177_v44, %v1181_v45  ;;  %v5104_v60 = vcombine.low %v1177_v44, %v1181_v45 }
  0xbc   : > { %660 = vmatmul.mubr.bf16.gmra.mxu0 %v387_v20  ;;  %773 = vmatmul.mubr.bf16.gmra.mxu1 %v387_v20  ;;  %v1041_v52 = vld [vmem:[#allocation8 + $0x380] sm:$0xff]  ;;  %v389_v58 = vpack.c.bf16 %v378_v47, %v377_v46 }
  0xbd   : > { %669 = vmatprep.mubr.bf16.mxu0 %v5975_v0  ;;  %782 = vmatprep.mubr.bf16.mxu1 %v5975_v0  ;;  %v1045_v53 = vld [vmem:[#allocation8 + $0x3a0] sm:$0xff] }
  0xbe   : > { %2516 = vmatpush1.bf16.msra.mxu0 %v4880_v21  ;;  %2629 = vmatpush1.bf16.msra.mxu1 %v5008_v22  ;;  %v1169_v54 = vld [vmem:[#allocation8 + $0x780] sm:$0xff]  ;;  %v4969_v4 = vcombine.high %v1041_v52, %v1045_v53  ;;  %v4968_v6 = vcombine.low %v1041_v52, %v1045_v53 }
  0xbf   : > { %2517 = vmatprep.subr.bf16.mxu0 %v4873_v29  ;;  %2630 = vmatprep.subr.bf16.mxu1 %v5001_v30  ;;  %v1173_v55 = vld [vmem:[#allocation8 + $0x7a0] sm:$0xff] }
  0xc0   : > { %v1033_v61 = vld [vmem:[#allocation8 + $0x340] sm:$0xff]  ;;  %v5097_v5 = vcombine.high %v1169_v54, %v1173_v55  ;;  %v5096_v7 = vcombine.low %v1169_v54, %v1173_v55 }
  0xc1   : > { %v1037_v62 = vld [vmem:[#allocation8 + $0x360] sm:$0xff] }
  0xc2   : > { %2518 = vmatpush1.bf16.msra.mxu0 %v4872_v31  ;;  %2631 = vmatpush1.bf16.msra.mxu1 %v5000_v32  ;;  %v1161_v63 = vld [vmem:[#allocation8 + $0x740] sm:$0xff]  ;;  %v4961_v12 = vcombine.high %v1033_v61, %v1037_v62  ;;  %v4960_v15 = vcombine.low %v1033_v61, %v1037_v62  ;;  %v383_v32 = vld [vmem:[%s6183_s13 + $0x70] sm:$0xff] }
  0xc3   : > { %2519 = vmatprep.subr.bf16.mxu0 %v4865_v37  ;;  %2632 = vmatprep.subr.bf16.mxu1 %v4993_v38  ;;  %v1165_v1 = vld [vmem:[#allocation8 + $0x760] sm:$0xff]  ;;  %v392_v34 = vpack.c.bf16 %v384_v33, %v383_v32  ;;  %v6241_v62 = vld [vmem:[#allocation8 + $0x5e8] sm:$0xff] }
  0xc4   : > { %670 = vmatmul.mubr.bf16.gmra.mxu0 %v388_v39  ;;  %783 = vmatmul.mubr.bf16.gmra.mxu1 %v388_v39  ;;  %v1025_v8 = vld [vmem:[#allocation8 + $0x300] sm:$0xff]  ;;  %v5089_v13 = vcombine.high %v1161_v63, %v1165_v1  ;;  %v5088_v16 = vcombine.low %v1161_v63, %v1165_v1 }
  0xc5   : > { %679 = vmatprep.mubr.bf16.mxu0 %v5975_v0  ;;  %792 = vmatprep.mubr.bf16.mxu1 %v5975_v0  ;;  %v1029_v9 = vld [vmem:[#allocation8 + $0x320] sm:$0xff] }
  0xc6   : > { %2520 = vmatpush1.bf16.msra.mxu0 %v4864_v40  ;;  %2633 = vmatpush1.bf16.msra.mxu1 %v4992_v41  ;;  %v1153_v10 = vld [vmem:[#allocation8 + $0x700] sm:$0xff]  ;;  %v4953_v23 = vcombine.high %v1025_v8, %v1029_v9  ;;  %v4952_v25 = vcombine.low %v1025_v8, %v1029_v9  ;;  %v425_v9 = vld [vmem:[#allocation7] sm:$0xf] }
  0xc7   : > { %2521 = vmatprep.subr.bf16.mxu0 %v4857_v48  ;;  %2634 = vmatprep.subr.bf16.mxu1 %v4985_v49  ;;  %v1157_v11 = vld [vmem:[#allocation8 + $0x720] sm:$0xff] }
  0xc8   : > { %v1017_v17 = vld [vmem:[#allocation8 + $0x2c0] sm:$0xff]  ;;  %v5081_v24 = vcombine.high %v1153_v10, %v1157_v11  ;;  %v5080_v26 = vcombine.low %v1153_v10, %v1157_v11 }
  0xc9   : > { %v1021_v18 = vld [vmem:[#allocation8 + $0x2e0] sm:$0xff] }
  0xca   : > { %2522 = vmatpush1.bf16.msra.mxu0 %v4856_v50  ;;  %2635 = vmatpush1.bf16.msra.mxu1 %v4984_v51  ;;  %v1145_v19 = vld [vmem:[#allocation8 + $0x6c0] sm:$0xff]  ;;  %v4945_v27 = vcombine.high %v1017_v17, %v1021_v18  ;;  %v4944_v30 = vcombine.low %v1017_v17, %v1021_v18 }
  0xcb   : > { %2523 = vmatprep.subr.bf16.mxu0 %v4977_v56  ;;  %2636 = vmatprep.subr.bf16.mxu1 %v5105_v57  ;;  %v1149_v20 = vld [vmem:[#allocation8 + $0x6e0] sm:$0xff] }
  0xcc   : > { %680 = vmatmul.mubr.bf16.gmra.mxu0 %v389_v58  ;;  %793 = vmatmul.mubr.bf16.gmra.mxu1 %v389_v58  ;;  %v381_v21 = vld [vmem:[%s6183_s13 + $0x60] sm:$0xff]  ;;  %v382_v22 = vld [vmem:[%s6183_s13 + $0x68] sm:$0xff]  ;;  %v5073_v28 = vcombine.high %v1145_v19, %v1149_v20  ;;  %v5072_v31 = vcombine.low %v1145_v19, %v1149_v20 }
  0xcd   : > { %689 = vmatprep.mubr.bf16.mxu0 %v5975_v0  ;;  %802 = vmatprep.mubr.bf16.mxu1 %v5975_v0  ;;  %v391_v29 = vpack.c.bf16 %v382_v22, %v381_v21  ;;  %v1009_v35 = vld [vmem:[#allocation8 + $0x280] sm:$0xff]  ;;  %v6233_v58 = vld [vmem:[#allocation8 + $0x1c8] sm:$0xff] }
  0xce   : > { %2524 = vmatpush2.bf16.msra.mxu0 %v4976_v59  ;;  %2637 = vmatpush2.bf16.msra.mxu1 %v5104_v60  ;;  %v1013_v36 = vld [vmem:[#allocation8 + $0x2a0] sm:$0xff]  ;;  %v6235_v59 = vld [vmem:[#allocation8 + $0x1e8] sm:$0xff] }
  0xcf   : > { %2525 = vmatprep.subr.bf16.mxu0 %v4969_v4  ;;  %2638 = vmatprep.subr.bf16.mxu1 %v5097_v5  ;;  %v1137_v37 = vld [vmem:[#allocation8 + $0x680] sm:$0xff]  ;;  %v4937_v38 = vcombine.high %v1009_v35, %v1013_v36  ;;  %v4936_v40 = vcombine.low %v1009_v35, %v1013_v36  ;;  %v6237_v60 = vld [vmem:[#allocation8 + $0x5c8] sm:$0xff]  ;;  %v4915_v61 = vcombine.high %v6233_v58, %v6235_v59  ;;  %v6249_v4 = vshrl.u32 %v427_v3, 7 }
  0xd0   : > { %v1141_v39 = vld [vmem:[#allocation8 + $0x6a0] sm:$0xff]  ;;  %v4914_v63 = vcombine.low %v6233_v58, %v6235_v59  ;;  %v5042_v1 = vcombine.low %v6237_v60, %v6241_v62  ;;  %v5043_v2 = vcombine.high %v6237_v60, %v6241_v62  ;;  %v6281_v35 = vld [vmem:[#allocation8 + $0x1a8] sm:$0xff] }
  0xd1   : > { %v5064_v41 = vcombine.low %v1137_v37, %v1141_v39  ;;  %v5065_v42 = vcombine.high %v1137_v37, %v1141_v39  ;;  %v1001_v43 = vld [vmem:[#allocation8 + $0x240] sm:$0xff]  ;;  %7542 = vst [vmem:[#allocation19_spill] sm:$0xff] %v6249_v4  ;;  %v433_v5 = vsub.s32 1, %v6249_v4  ;;  %v7517_v8 = vsub.s32 2, %v6249_v4  ;;  %v6331_v60 = vld [vmem:[#allocation8 + $0x128] sm:$0xff] }
  0xd2   : > { %2526 = vmatpush2.bf16.msra.mxu0 %v4968_v6  ;;  %2639 = vmatpush2.bf16.msra.mxu1 %v5096_v7  ;;  %v1005_v44 = vld [vmem:[#allocation8 + $0x260] sm:$0xff]  ;;  %v7518_v6 = vsub.s32 3, %v6249_v4  ;;  %v7519_v7 = vsub.s32 0, %v6249_v4  ;;  %v6333_v62 = vld [vmem:[#allocation8 + $0x508] sm:$0xff] }
  0xd3   : > { %2527 = vmatprep.subr.bf16.mxu0 %v4961_v12  ;;  %2640 = vmatprep.subr.bf16.mxu1 %v5089_v13  ;;  %v1129_v45 = vld [vmem:[#allocation8 + $0x640] sm:$0xff]  ;;  %v4928_v47 = vcombine.low %v1001_v43, %v1005_v44  ;;  %v6257_v12 = vrot.slane %v425_v9, %v433_v5 }
  0xd4   : > { %690 = vmatmul.mubr.bf16.gmra.mxu0 %v390_v14  ;;  %803 = vmatmul.mubr.bf16.gmra.mxu1 %v390_v14  ;;  %v1133_v46 = vld [vmem:[#allocation8 + $0x660] sm:$0xff]  ;;  %v6261_v13 = vrot.slane %v425_v9, %v7518_v6  ;;  %v6265_v14 = vrot.slane %v425_v9, %v7519_v7 }
  0xd5   : > { %699 = vmatprep.mubr.bf16.mxu0 %v5975_v0  ;;  %812 = vmatprep.mubr.bf16.mxu1 %v5975_v0  ;;  %v5056_v48 = vcombine.low %v1129_v45, %v1133_v46  ;;  %v5057_v49 = vcombine.high %v1129_v45, %v1133_v46  ;;  %v993_v50 = vld [vmem:[#allocation8 + $0x200] sm:$0xff] }
  0xd6   : > { %2528 = vmatpush2.bf16.msra.mxu0 %v4960_v15  ;;  %2641 = vmatpush2.bf16.msra.mxu1 %v5088_v16  ;;  %v997_v51 = vld [vmem:[#allocation8 + $0x220] sm:$0xff]  ;;  %v6269_v15 = vrot.slane %v425_v9, %v7517_v8 }
  0xd7   : > { %2529 = vmatprep.subr.bf16.mxu0 %v4953_v23  ;;  %2642 = vmatprep.subr.bf16.mxu1 %v5081_v24  ;;  %v1121_v52 = vld [vmem:[#allocation8 + $0x600] sm:$0xff]  ;;  %v4921_v53 = vcombine.high %v993_v50, %v997_v51  ;;  %v4920_v55 = vcombine.low %v993_v50, %v997_v51 }
  0xd8   : > { %v1125_v54 = vld [vmem:[#allocation8 + $0x620] sm:$0xff] }
  0xd9   : > { %v5048_v56 = vcombine.low %v1121_v52, %v1125_v54  ;;  %v5049_v57 = vcombine.high %v1121_v52, %v1125_v54 }
  0xda   : > { %2530 = vmatpush2.bf16.msra.mxu0 %v4952_v25  ;;  %2643 = vmatpush2.bf16.msra.mxu1 %v5080_v26 }
  0xdb   : > { %2531 = vmatprep.subr.bf16.mxu0 %v4945_v27  ;;  %2644 = vmatprep.subr.bf16.mxu1 %v5073_v28 }
  0xdc   : > { %700 = vmatmul.mubr.bf16.gmra.mxu0 %v391_v29  ;;  %813 = vmatmul.mubr.bf16.gmra.mxu1 %v391_v29 }
  0xdd   : > { %709 = vmatprep.mubr.bf16.mxu0 %v5975_v0  ;;  %822 = vmatprep.mubr.bf16.mxu1 %v5975_v0  ;;  %v4929_v0 = vcombine.high %v1001_v43, %v1005_v44 }
  0xde   : > { %2532 = vmatpush2.bf16.msra.mxu0 %v4944_v30  ;;  %2645 = vmatpush2.bf16.msra.mxu1 %v5072_v31 }
  0xdf   : > { %2533 = vmatprep.subr.bf16.mxu0 %v4937_v38  ;;  %2646 = vmatprep.subr.bf16.mxu1 %v5065_v42 }
  0xe2   : > { %2534 = vmatpush2.bf16.msra.mxu0 %v4936_v40  ;;  %2647 = vmatpush2.bf16.msra.mxu1 %v5064_v41  ;;  %v6283_v40 = vld [vmem:[#allocation8 + $0x588] sm:$0xff] }
  0xe3   : > { %2535 = vmatprep.subr.bf16.mxu0 %v4929_v0  ;;  %2648 = vmatprep.subr.bf16.mxu1 %v5057_v49  ;;  %v6285_v41 = vld [vmem:[#allocation8 + $0x5a8] sm:$0xff] }
  0xe4   : > { %710 = vmatmul.mubr.bf16.gmra.mxu0 %v392_v34  ;;  %823 = vmatmul.mubr.bf16.gmra.mxu1 %v392_v34  ;;  %v6279_v34 = vld [vmem:[#allocation8 + $0x188] sm:$0xff] }
  0xe6   : > { %2536 = vmatpush2.bf16.msra.mxu0 %v4928_v47  ;;  %2649 = vmatpush2.bf16.msra.mxu1 %v5056_v48  ;;  %v4907_v47 = vcombine.high %v6279_v34, %v6281_v35 }
  0xe7   : > { %2537 = vmatprep.subr.bf16.mxu0 %v4921_v53  ;;  %2650 = vmatprep.subr.bf16.mxu1 %v5049_v57  ;;  %v5035_v53 = vcombine.high %v6283_v40, %v6285_v41  ;;  %v6305_v57 = vld [vmem:[#allocation8 + $0x148] sm:$0xff] }
  0xea   : > { %2538 = vmatpush2.bf16.msra.mxu0 %v4920_v55  ;;  %2651 = vmatpush2.bf16.msra.mxu1 %v5048_v56 }
  0xeb   : > { %2733 = vmatprep.subr.bf16.mxu0 %v4915_v61  ;;  %2846 = vmatprep.subr.bf16.mxu1 %v5043_v2  ;;  %v6307_v61 = vld [vmem:[#allocation8 + $0x168] sm:$0xff] }
  0xec   : > { %v4898_v58 = vcombine.low %v6305_v57, %v6307_v61  ;;  %v4899_v59 = vcombine.high %v6305_v57, %v6307_v61 }
 0x16c   : > { %v641_v10 = vpop.f32.mrf.mxu0  ;;  %v754_v11 = vpop.f32.mrf.mxu1 }
 0x16d   : > { %v642_v24 = vadd.f32 %v641_v10, %v6265_v14  ;;  %v755_v25 = vadd.f32 %v754_v11, %v6269_v15  ;;  %v4906_v11 = vcombine.low %v6279_v34, %v6281_v35 }
 0x16e   : > { %v643_v16 = vpop.f32.mrf.mxu0  ;;  %v756_v17 = vpop.f32.mrf.mxu1 }
 0x16f   : > { %v644_v20 = vadd.f32 %v643_v16, %v6257_v12  ;;  %v757_v21 = vadd.f32 %v756_v17, %v6261_v13  ;;  %v833_v42 = vmax.f32 %v642_v24, 0.0  ;;  %v835_v43 = vmax.f32 %v755_v25, 0.0 }
 0x170   : > { %v645_v18 = vpop.f32.mrf.mxu0  ;;  %v758_v19 = vpop.f32.mrf.mxu1 }
 0x171   : > { %v646_v22 = vadd.f32 %v645_v18, %v6265_v14  ;;  %v759_v23 = vadd.f32 %v758_v19, %v6269_v15  ;;  %v834_v36 = vmax.f32 %v644_v20, 0.0  ;;  %v836_v37 = vmax.f32 %v757_v21, 0.0  ;;  %v1098_v19 = vld [vmem:[#allocation8 + $0x548] sm:$0xff] }
 0x172   : > { %v647_v26 = vpop.f32.mrf.mxu0  ;;  %v760_v27 = vpop.f32.mrf.mxu1  ;;  %v5034_v18 = vcombine.low %v6283_v40, %v6285_v41  ;;  %v1102_v20 = vld [vmem:[#allocation8 + $0x568] sm:$0xff] }
 0x173   : > { %v648_v28 = vadd.f32 %v647_v26, %v6257_v12  ;;  %v761_v29 = vadd.f32 %v760_v27, %v6261_v13  ;;  %v837_v30 = vmax.f32 %v646_v22, 0.0  ;;  %v839_v31 = vmax.f32 %v759_v23, 0.0  ;;  %v6325_v21 = vld [vmem:[#allocation8 + $0x108] sm:$0xff] }
 0x174   : > { %v651_v32 = vpop.f32.mrf.mxu0  ;;  %v764_v33 = vpop.f32.mrf.mxu1  ;;  %v5027_v34 = vcombine.high %v1098_v19, %v1102_v20 }
 0x175   : > { %v838_v38 = vmax.f32 %v648_v28, 0.0  ;;  %v840_v39 = vmax.f32 %v761_v29, 0.0  ;;  %v6293_v48 = vpack.c.bf16 %v837_v30, %v833_v42  ;;  %v6295_v49 = vpack.c.bf16 %v839_v31, %v835_v43 }
 0x176   : > { %v653_v44 = vpop.f32.mrf.mxu0  ;;  %v766_v45 = vpop.f32.mrf.mxu1  ;;  %v652_v2 = vadd.f32 %v651_v32, %v6265_v14  ;;  %v765_v3 = vadd.f32 %v764_v33, %v6269_v15  ;;  %v5026_v33 = vcombine.low %v1098_v19, %v1102_v20 }
 0x177   : > { %v6287_v0 = vpack.c.bf16 %v838_v38, %v834_v36  ;;  %v6289_v46 = vpack.c.bf16 %v840_v39, %v836_v37  ;;  %v654_v50 = vadd.f32 %v653_v44, %v6257_v12  ;;  %v767_v54 = vadd.f32 %v766_v45, %v6261_v13 }
 0x178   : > { %v655_v51 = vpop.f32.mrf.mxu0  ;;  %v768_v52 = vpop.f32.mrf.mxu1  ;;  %v841_v29 = vmax.f32 %v652_v2, 0.0  ;;  %v843_v30 = vmax.f32 %v765_v3, 0.0  ;;  %v4891_v37 = vcombine.high %v6325_v21, %v6331_v60  ;;  %v1082_v3 = vld [vmem:[#allocation8 + $0x4c8] sm:$0xff] }
 0x179   : > { %v656_v55 = vadd.f32 %v655_v51, %v6265_v14  ;;  %v769_v56 = vadd.f32 %v768_v52, %v6269_v15  ;;  %2539 = vmatprep.mubr.bf16.mxu0 %v6287_v0  ;;  %2652 = vmatprep.mubr.bf16.mxu1 %v6289_v46  ;;  %v844_v26 = vmax.f32 %v767_v54, 0.0  ;;  %v6357_v51 = vld [vmem:[#allocation8 + $0xe8] sm:$0xff] }
 0x17a   : > { %v657_v9 = vpop.f32.mrf.mxu0  ;;  %v770_v10 = vpop.f32.mrf.mxu1  ;;  %2540 = vmatmul.mubr.bf16.vlgmr.msra.gmra.mxu0 %v6293_v48  ;;  %2653 = vmatmul.mubr.bf16.vlgmr.msra.gmra.mxu1 %v6295_v49 }
 0x17b   : > { %v658_v16 = vadd.f32 %v657_v9, %v6257_v12  ;;  %v771_v17 = vadd.f32 %v770_v10, %v6261_v13  ;;  %2734 = vmatpush1.bf16.msra.mxu0 %v4914_v63  ;;  %2847 = vmatpush1.bf16.msra.mxu1 %v5042_v1  ;;  %v845_v22 = vmax.f32 %v656_v55, 0.0  ;;  %v847_v23 = vmax.f32 %v769_v56, 0.0  ;;  %v6335_v63 = vld [vmem:[#allocation8 + $0x528] sm:$0xff] }
 0x17c   : > { %v661_v24 = vpop.f32.mrf.mxu0  ;;  %v774_v25 = vpop.f32.mrf.mxu1  ;;  %2735 = vmatprep.subr.bf16.mxu0 %v4907_v47  ;;  %2848 = vmatprep.subr.bf16.mxu1 %v5035_v53  ;;  %v842_v1 = vmax.f32 %v654_v50, 0.0  ;;  %v5019_v38 = vcombine.high %v6333_v62, %v6335_v63  ;;  %v6355_v50 = vld [vmem:[#allocation8 + $0xc8] sm:$0xff]  ;;  %v4890_v56 = vcombine.low %v6325_v21, %v6331_v60  ;;  %v5018_v2 = vcombine.low %v6333_v62, %v6335_v63 }
 0x17d   : > { %v846_v27 = vmax.f32 %v658_v16, 0.0  ;;  %v848_v28 = vmax.f32 %v771_v17, 0.0  ;;  %v6345_v39 = vpack.c.bf16 %v845_v22, %v841_v29  ;;  %v6347_v40 = vpack.c.bf16 %v847_v23, %v843_v30  ;;  %v1086_v9 = vld [vmem:[#allocation8 + $0x4e8] sm:$0xff] }
 0x17e   : > { %v663_v31 = vpop.f32.mrf.mxu0  ;;  %v776_v32 = vpop.f32.mrf.mxu1  ;;  %v662_v52 = vadd.f32 %v661_v24, %v6265_v14  ;;  %v775_v53 = vadd.f32 %v774_v25, %v6269_v15  ;;  %v6369_v10 = vld [vmem:[#allocation8 + $0x88] sm:$0xff]  ;;  %v4882_v19 = vcombine.low %v6355_v50, %v6357_v51  ;;  %v4883_v20 = vcombine.high %v6355_v50, %v6357_v51 }
 0x17f   : > { %v6337_v35 = vpack.c.bf16 %v846_v27, %v842_v1  ;;  %v6339_v36 = vpack.c.bf16 %v848_v28, %v844_v26  ;;  %2736 = vmatpush1.bf16.msra.mxu0 %v4906_v11  ;;  %v664_v41 = vadd.f32 %v663_v31, %v6257_v12  ;;  %2849 = vmatpush1.bf16.msra.mxu1 %v5034_v18  ;;  %v6375_v21 = vld [vmem:[#allocation8 + $0xa8] sm:$0xff] }
 0x180   : > { %v665_v42 = vpop.f32.mrf.mxu0  ;;  %v778_v43 = vpop.f32.mrf.mxu1  ;;  %2737 = vmatprep.subr.bf16.mxu0 %v4899_v59  ;;  %v777_v44 = vadd.f32 %v776_v32, %v6261_v13  ;;  %2850 = vmatprep.subr.bf16.mxu1 %v5027_v34  ;;  %v6377_v22 = vld [vmem:[#allocation8 + $0x488] sm:$0xff]  ;;  %v849_v60 = vmax.f32 %v662_v52, 0.0  ;;  %v851_v62 = vmax.f32 %v775_v53, 0.0  ;;  %v5010_v26 = vcombine.low %v1082_v3, %v1086_v9 }
 0x181   : > { %v666_v45 = vadd.f32 %v665_v42, %v6265_v14  ;;  %v779_v47 = vadd.f32 %v778_v43, %v6269_v15  ;;  %2549 = vmatprep.mubr.bf16.mxu0 %v6337_v35  ;;  %2662 = vmatprep.mubr.bf16.mxu1 %v6339_v36  ;;  %v6379_v23 = vld [vmem:[#allocation8 + $0x4a8] sm:$0xff]  ;;  %v850_v24 = vmax.f32 %v664_v41, 0.0  ;;  %v5011_v27 = vcombine.high %v1082_v3, %v1086_v9 }
 0x182   : > { %v667_v54 = vpop.f32.mrf.mxu0  ;;  %v780_v55 = vpop.f32.mrf.mxu1  ;;  %2550 = vmatmul.mubr.bf16.gmra.mxu0 %v6345_v39  ;;  %2663 = vmatmul.mubr.bf16.gmra.mxu1 %v6347_v40  ;;  %v852_v25 = vmax.f32 %v777_v44, 0.0  ;;  %v4875_v30 = vcombine.high %v6369_v10, %v6375_v21  ;;  %v5003_v31 = vcombine.high %v6377_v22, %v6379_v23  ;;  %v6399_v44 = vld [vmem:[#allocation8 + $0x48] sm:$0xff]  ;;  %v4874_v53 = vcombine.low %v6369_v10, %v6375_v21 }
 0x183   : > { %v668_v57 = vadd.f32 %v667_v54, %v6257_v12  ;;  %v781_v61 = vadd.f32 %v780_v55, %v6261_v13  ;;  %2738 = vmatpush1.bf16.msra.mxu0 %v4898_v58  ;;  %v853_v11 = vmax.f32 %v666_v45, 0.0  ;;  %v855_v16 = vmax.f32 %v779_v47, 0.0  ;;  %2851 = vmatpush1.bf16.msra.mxu1 %v5026_v33  ;;  %v6401_v45 = vld [vmem:[#allocation8 + $0x68] sm:$0xff] }
 0x184   : > { %v671_v17 = vpop.f32.mrf.mxu0  ;;  %v784_v18 = vpop.f32.mrf.mxu1  ;;  %2739 = vmatprep.subr.bf16.mxu0 %v4891_v37  ;;  %2852 = vmatprep.subr.bf16.mxu1 %v5019_v38  ;;  %v4866_v10 = vcombine.low %v6399_v44, %v6401_v45 }
 0x185   : > { %v854_v58 = vmax.f32 %v668_v57, 0.0  ;;  %v856_v59 = vmax.f32 %v781_v61, 0.0  ;;  %v6389_v32 = vpack.c.bf16 %v853_v11, %v849_v60  ;;  %v6391_v33 = vpack.c.bf16 %v855_v16, %v851_v62  ;;  %v1066_v57 = vld [vmem:[#allocation8 + $0x448] sm:$0xff] }
 0x186   : > { %v673_v63 = vpop.f32.mrf.mxu0  ;;  %v786_v1 = vpop.f32.mrf.mxu1  ;;  %v672_v47 = vadd.f32 %v671_v17, %v6265_v14  ;;  %v785_v50 = vadd.f32 %v784_v18, %v6269_v15  ;;  %v1070_v61 = vld [vmem:[#allocation8 + $0x468] sm:$0xff]  ;;  %v4867_v17 = vcombine.high %v6399_v44, %v6401_v45 }
 0x187   : > { %v6381_v28 = vpack.c.bf16 %v854_v58, %v850_v24  ;;  %v6383_v29 = vpack.c.bf16 %v856_v59, %v852_v25  ;;  %2740 = vmatpush1.bf16.msra.mxu0 %v4890_v56  ;;  %v674_v34 = vadd.f32 %v673_v63, %v6257_v12  ;;  %2853 = vmatpush1.bf16.msra.mxu1 %v5018_v2  ;;  %v6413_v2 = vld [vmem:[#allocation8 + $0x8] sm:$0xff] }
 0x188   : > { %v675_v37 = vpop.f32.mrf.mxu0  ;;  %v788_v38 = vpop.f32.mrf.mxu1  ;;  %2741 = vmatprep.subr.bf16.mxu0 %v4883_v20  ;;  %v787_v41 = vadd.f32 %v786_v1, %v6261_v13  ;;  %2854 = vmatprep.subr.bf16.mxu1 %v5011_v27  ;;  %v5002_v56 = vcombine.low %v6377_v22, %v6379_v23  ;;  %v6419_v18 = vld [vmem:[#allocation8 + $0x28] sm:$0xff]  ;;  %v857_v25 = vmax.f32 %v672_v47, 0.0  ;;  %v859_v58 = vmax.f32 %v785_v50, 0.0 }
 0x189   : > { %v676_v42 = vadd.f32 %v675_v37, %v6265_v14  ;;  %v789_v43 = vadd.f32 %v788_v38, %v6269_v15  ;;  %2559 = vmatprep.mubr.bf16.mxu0 %v6381_v28  ;;  %2672 = vmatprep.mubr.bf16.mxu1 %v6383_v29  ;;  %v6423_v20 = vld [vmem:[#allocation8 + $0x428] sm:$0xff]  ;;  %v858_v21 = vmax.f32 %v674_v34, 0.0  ;;  %v4994_v62 = vcombine.low %v1066_v57, %v1070_v61 }
 0x18a   : > { %v677_v51 = vpop.f32.mrf.mxu0  ;;  %v790_v52 = vpop.f32.mrf.mxu1  ;;  %2560 = vmatmul.mubr.bf16.gmra.mxu0 %v6389_v32  ;;  %2673 = vmatmul.mubr.bf16.gmra.mxu1 %v6391_v33  ;;  %v860_v22 = vmax.f32 %v787_v41, 0.0  ;;  %v4995_v63 = vcombine.high %v1066_v57, %v1070_v61  ;;  %v4859_v27 = vcombine.high %v6413_v2, %v6419_v18  ;;  %v6443_v45 = vld [vmem:[#allocation8 + $0x3c8] sm:$0xff] }
 0x18b   : > { %v678_v54 = vadd.f32 %v677_v51, %v6257_v12  ;;  %v791_v55 = vadd.f32 %v790_v52, %v6261_v13  ;;  %2742 = vmatpush1.bf16.msra.mxu0 %v4882_v19  ;;  %v861_v3 = vmax.f32 %v676_v42, 0.0  ;;  %v863_v9 = vmax.f32 %v789_v43, 0.0  ;;  %2855 = vmatpush1.bf16.msra.mxu1 %v5010_v26  ;;  %v6421_v19 = vld [vmem:[#allocation8 + $0x408] sm:$0xff] }
 0x18c   : > { %v681_v11 = vpop.f32.mrf.mxu0  ;;  %v794_v16 = vpop.f32.mrf.mxu1  ;;  %2743 = vmatprep.subr.bf16.mxu0 %v4875_v30  ;;  %2856 = vmatprep.subr.bf16.mxu1 %v5003_v31  ;;  %v4987_v30 = vcombine.high %v6421_v19, %v6423_v20  ;;  %v6445_v47 = vld [vmem:[#allocation8 + $0x3e8] sm:$0xff]  ;;  %v4986_v57 = vcombine.low %v6421_v19, %v6423_v20 }
 0x18d   : > { %v862_v23 = vmax.f32 %v678_v54, 0.0  ;;  %v864_v24 = vmax.f32 %v791_v55, 0.0  ;;  %v6433_v34 = vpack.c.bf16 %v861_v3, %v857_v25  ;;  %v6435_v31 = vpack.c.bf16 %v863_v9, %v859_v58  ;;  %v1178_v61 = vld [vmem:[#allocation8 + $0x7c8] sm:$0xff] }
 0x18e   : > { %v683_v59 = vpop.f32.mrf.mxu0  ;;  %v796_v60 = vpop.f32.mrf.mxu1  ;;  %v682_v50 = vadd.f32 %v681_v11, %v6265_v14  ;;  %v795_v51 = vadd.f32 %v794_v16, %v6269_v15  ;;  %v4858_v54 = vcombine.low %v6413_v2, %v6419_v18  ;;  %v1182_v3 = vld [vmem:[#allocation8 + $0x7e8] sm:$0xff]  ;;  %v4978_v2 = vcombine.low %v6443_v45, %v6445_v47 }
 0x18f   : > { %v6425_v1 = vpack.c.bf16 %v862_v23, %v858_v21  ;;  %v6427_v26 = vpack.c.bf16 %v864_v24, %v860_v22  ;;  %2744 = vmatpush1.bf16.msra.mxu0 %v4874_v53  ;;  %v684_v37 = vadd.f32 %v683_v59, %v6257_v12  ;;  %2857 = vmatpush1.bf16.msra.mxu1 %v5002_v56  ;;  %v6457_v9 = vld [vmem:[#allocation8 + $0x388] sm:$0xff] }
 0x190   : > { %v685_v38 = vpop.f32.mrf.mxu0  ;;  %v798_v41 = vpop.f32.mrf.mxu1  ;;  %2745 = vmatprep.subr.bf16.mxu0 %v4867_v17  ;;  %v797_v42 = vadd.f32 %v796_v60, %v6261_v13  ;;  %2858 = vmatprep.subr.bf16.mxu1 %v4995_v63  ;;  %v6463_v18 = vld [vmem:[#allocation8 + $0x3a8] sm:$0xff]  ;;  %v865_v58 = vmax.f32 %v682_v50, 0.0  ;;  %v867_v59 = vmax.f32 %v795_v51, 0.0  ;;  %v5106_v63 = vcombine.low %v1178_v61, %v1182_v3 }
 0x191   : > { %v686_v43 = vadd.f32 %v685_v38, %v6265_v14  ;;  %v799_v44 = vadd.f32 %v798_v41, %v6269_v15  ;;  %2569 = vmatprep.mubr.bf16.mxu0 %v6425_v1  ;;  %2682 = vmatprep.mubr.bf16.mxu1 %v6427_v26  ;;  %v6465_v22 = vld [vmem:[#allocation8 + $0x788] sm:$0xff]  ;;  %v866_v20 = vmax.f32 %v684_v37, 0.0 }
 0x192   : > { %v687_v52 = vpop.f32.mrf.mxu0  ;;  %v800_v53 = vpop.f32.mrf.mxu1  ;;  %2570 = vmatmul.mubr.bf16.gmra.mxu0 %v6433_v34  ;;  %2683 = vmatmul.mubr.bf16.gmra.mxu1 %v6435_v31  ;;  %v6467_v19 = vld [vmem:[#allocation8 + $0x7a8] sm:$0xff]  ;;  %v868_v23 = vmax.f32 %v797_v42, 0.0 }
 0x193   : > { %v688_v55 = vadd.f32 %v687_v52, %v6257_v12  ;;  %v801_v56 = vadd.f32 %v800_v53, %v6261_v13  ;;  %2746 = vmatpush1.bf16.msra.mxu0 %v4866_v10  ;;  %v869_v11 = vmax.f32 %v686_v43, 0.0  ;;  %v871_v16 = vmax.f32 %v799_v44, 0.0  ;;  %2859 = vmatpush1.bf16.msra.mxu1 %v4994_v62  ;;  %v6487_v53 = vld [vmem:[#allocation8 + $0x348] sm:$0xff] }
 0x194   : > { %v691_v17 = vpop.f32.mrf.mxu0  ;;  %v804_v21 = vpop.f32.mrf.mxu1  ;;  %2747 = vmatprep.subr.bf16.mxu0 %v4859_v27  ;;  %v4979_v10 = vcombine.high %v6443_v45, %v6445_v47  ;;  %2860 = vmatprep.subr.bf16.mxu1 %v4987_v30  ;;  %v5107_v27 = vcombine.high %v1178_v61, %v1182_v3  ;;  %v4971_v43 = vcombine.high %v6457_v9, %v6463_v18 }
 0x195   : > { %v870_v24 = vmax.f32 %v688_v55, 0.0  ;;  %v872_v25 = vmax.f32 %v801_v56, 0.0  ;;  %v5099_v37 = vcombine.high %v6465_v22, %v6467_v19  ;;  %v6477_v42 = vpack.c.bf16 %v869_v11, %v865_v58 }
 0x196   : > { %v693_v60 = vpop.f32.mrf.mxu0  ;;  %v806_v62 = vpop.f32.mrf.mxu1  ;;  %v6479_v30 = vpack.c.bf16 %v871_v16, %v867_v59  ;;  %v692_v55 = vadd.f32 %v691_v17, %v6265_v14  ;;  %v805_v56 = vadd.f32 %v804_v21, %v6269_v15  ;;  %v4970_v3 = vcombine.low %v6457_v9, %v6463_v18  ;;  %v1166_v21 = vld [vmem:[#allocation8 + $0x768] sm:$0xff] }
 0x197   : > { %v6469_v38 = vpack.c.bf16 %v870_v24, %v866_v20  ;;  %v6471_v41 = vpack.c.bf16 %v872_v25, %v868_v23  ;;  %2748 = vmatpush1.bf16.msra.mxu0 %v4858_v54  ;;  %v694_v44 = vadd.f32 %v693_v60, %v6257_v12  ;;  %2861 = vmatpush1.bf16.msra.mxu1 %v4986_v57  ;;  %v6489_v54 = vld [vmem:[#allocation8 + $0x368] sm:$0xff] }
 0x198   : > { %v695_v45 = vpop.f32.mrf.mxu0  ;;  %v808_v47 = vpop.f32.mrf.mxu1  ;;  %2749 = vmatprep.subr.bf16.mxu0 %v4979_v10  ;;  %v807_v50 = vadd.f32 %v806_v62, %v6261_v13  ;;  %2862 = vmatprep.subr.bf16.mxu1 %v5107_v27  ;;  %v5098_v17 = vcombine.low %v6465_v22, %v6467_v19  ;;  %v1162_v10 = vld [vmem:[#allocation8 + $0x748] sm:$0xff]  ;;  %v4962_v9 = vcombine.low %v6487_v53, %v6489_v54 }
 0x199   : > { %v696_v51 = vadd.f32 %v695_v45, %v6265_v14  ;;  %v809_v52 = vadd.f32 %v808_v47, %v6269_v15  ;;  %2579 = vmatprep.mubr.bf16.mxu0 %v6469_v38  ;;  %2692 = vmatprep.mubr.bf16.mxu1 %v6471_v41  ;;  %v6501_v20 = vld [vmem:[#allocation8 + $0x308] sm:$0xff]  ;;  %v874_v19 = vmax.f32 %v694_v44, 0.0  ;;  %v875_v45 = vmax.f32 %v805_v56, 0.0 }
 0x19a   : > { %v697_v57 = vpop.f32.mrf.mxu0  ;;  %v810_v61 = vpop.f32.mrf.mxu1  ;;  %2580 = vmatmul.mubr.bf16.gmra.mxu0 %v6477_v42  ;;  %2693 = vmatmul.mubr.bf16.gmra.mxu1 %v6479_v30  ;;  %v6507_v18 = vld [vmem:[#allocation8 + $0x328] sm:$0xff]  ;;  %v876_v60 = vmax.f32 %v807_v50, 0.0 }
 0x19b   : > { %v698_v11 = vadd.f32 %v697_v57, %v6257_v12  ;;  %v811_v16 = vadd.f32 %v810_v61, %v6261_v13  ;;  %2750 = vmatpush2.bf16.msra.mxu0 %v4978_v2  ;;  %v877_v23 = vmax.f32 %v696_v51, 0.0  ;;  %v879_v24 = vmax.f32 %v809_v52, 0.0  ;;  %2863 = vmatpush2.bf16.msra.mxu1 %v5106_v63  ;;  %v6509_v59 = vld [vmem:[#allocation8 + $0x708] sm:$0xff] }
 0x19c   : > { %v701_v25 = vpop.f32.mrf.mxu0  ;;  %v814_v58 = vpop.f32.mrf.mxu1  ;;  %2751 = vmatprep.subr.bf16.mxu0 %v4971_v43  ;;  %v4963_v2 = vcombine.high %v6487_v53, %v6489_v54  ;;  %v6511_v22 = vld [vmem:[#allocation8 + $0x728] sm:$0xff]  ;;  %2864 = vmatprep.subr.bf16.mxu1 %v5099_v37  ;;  %v873_v63 = vmax.f32 %v692_v55, 0.0  ;;  %v5090_v51 = vcombine.low %v1162_v10, %v1166_v21  ;;  %v5091_v52 = vcombine.high %v1162_v10, %v1166_v21 }
 0x19d   : > { %v878_v62 = vmax.f32 %v698_v11, 0.0  ;;  %v880_v27 = vmax.f32 %v811_v16, 0.0  ;;  %v4955_v54 = vcombine.high %v6501_v20, %v6507_v18  ;;  %v5083_v44 = vcombine.high %v6509_v59, %v6511_v22  ;;  %v6531_v10 = vld [vmem:[#allocation8 + $0x2c8] sm:$0xff] }
 0x19e   : > { %v703_v43 = vpop.f32.mrf.mxu0  ;;  %v816_v47 = vpop.f32.mrf.mxu1  ;;  %v6521_v50 = vpack.c.bf16 %v877_v23, %v873_v63  ;;  %v6523_v37 = vpack.c.bf16 %v879_v24, %v875_v45  ;;  %v6533_v21 = vld [vmem:[#allocation8 + $0x2e8] sm:$0xff]  ;;  %v702_v23 = vadd.f32 %v701_v25, %v6265_v14  ;;  %v5082_v25 = vcombine.low %v6509_v59, %v6511_v22 }
 0x19f   : > { %v6513_v57 = vpack.c.bf16 %v878_v62, %v874_v19  ;;  %v6515_v53 = vpack.c.bf16 %v880_v27, %v876_v60  ;;  %2752 = vmatpush2.bf16.msra.mxu0 %v4970_v3  ;;  %v704_v55 = vadd.f32 %v703_v43, %v6257_v12  ;;  %2865 = vmatpush2.bf16.msra.mxu1 %v5098_v17  ;;  %v1146_v27 = vld [vmem:[#allocation8 + $0x6c8] sm:$0xff] }
 0x1a0   : > { %v705_v56 = vpop.f32.mrf.mxu0  ;;  %v818_v61 = vpop.f32.mrf.mxu1  ;;  %2753 = vmatprep.subr.bf16.mxu0 %v4963_v2  ;;  %v817_v11 = vadd.f32 %v816_v47, %v6261_v13  ;;  %v815_v17 = vadd.f32 %v814_v58, %v6269_v15  ;;  %v4954_v19 = vcombine.low %v6501_v20, %v6507_v18  ;;  %2866 = vmatprep.subr.bf16.mxu1 %v5091_v52  ;;  %v1150_v58 = vld [vmem:[#allocation8 + $0x6e8] sm:$0xff] }
 0x1a1   : > { %v706_v3 = vadd.f32 %v705_v56, %v6265_v14  ;;  %v819_v16 = vadd.f32 %v818_v61, %v6269_v15  ;;  %2589 = vmatprep.mubr.bf16.mxu0 %v6513_v57  ;;  %2702 = vmatprep.mubr.bf16.mxu1 %v6515_v53  ;;  %v6545_v63 = vld [vmem:[#allocation8 + $0x288] sm:$0xff]  ;;  %v4946_v20 = vcombine.low %v6531_v10, %v6533_v21  ;;  %v882_v22 = vmax.f32 %v704_v55, 0.0 }
 0x1a2   : > { %v707_v24 = vpop.f32.mrf.mxu0  ;;  %v820_v2 = vpop.f32.mrf.mxu1  ;;  %2590 = vmatmul.mubr.bf16.gmra.mxu0 %v6521_v50  ;;  %2703 = vmatmul.mubr.bf16.gmra.mxu1 %v6523_v37  ;;  %v6551_v18 = vld [vmem:[#allocation8 + $0x2a8] sm:$0xff]  ;;  %v884_v61 = vmax.f32 %v817_v11, 0.0  ;;  %v5074_v8 = vcombine.low %v1146_v27, %v1150_v58  ;;  %v5075_v6 = vcombine.high %v1146_v27, %v1150_v58 }
 0x1a3   : > { %v708_v60 = vadd.f32 %v707_v24, %v6257_v12  ;;  %v821_v62 = vadd.f32 %v820_v2, %v6261_v13  ;;  %2754 = vmatpush2.bf16.msra.mxu0 %v4962_v9  ;;  %v885_v45 = vmax.f32 %v706_v3, 0.0  ;;  %v887_v43 = vmax.f32 %v819_v16, 0.0  ;;  %2867 = vmatpush2.bf16.msra.mxu1 %v5090_v51  ;;  %v6553_v52 = vld [vmem:[#allocation8 + $0x688] sm:$0xff] }
 0x1a4   : > { %v711_v47 = vpop.f32.mrf.mxu0  ;;  %v824_v56 = vpop.f32.mrf.mxu1  ;;  %2755 = vmatprep.subr.bf16.mxu0 %v4955_v54  ;;  %v4947_v9 = vcombine.high %v6531_v10, %v6533_v21  ;;  %v6555_v59 = vld [vmem:[#allocation8 + $0x6a8] sm:$0xff]  ;;  %2868 = vmatprep.subr.bf16.mxu1 %v5083_v44  ;;  %v881_v51 = vmax.f32 %v702_v23, 0.0  ;;  %v883_v24 = vmax.f32 %v815_v17, 0.0  ;;  %v4939_v21 = vcombine.high %v6545_v63, %v6551_v18 }
 0x1a5   : > { %v886_v3 = vmax.f32 %v708_v60, 0.0  ;;  %v888_v16 = vmax.f32 %v821_v62, 0.0  ;;  %v5067_v55 = vcombine.high %v6553_v52, %v6555_v59  ;;  %v1002_v58 = vld [vmem:[#allocation8 + $0x248] sm:$0xff] }
 0x1a6   : > { %v713_v54 = vpop.f32.mrf.mxu0  ;;  %v826_v2 = vpop.f32.mrf.mxu1  ;;  %v6565_v11 = vpack.c.bf16 %v885_v45, %v881_v51  ;;  %v6567_v44 = vpack.c.bf16 %v887_v43, %v883_v24  ;;  %v1006_v45 = vld [vmem:[#allocation8 + $0x268] sm:$0xff]  ;;  %v712_v43 = vadd.f32 %v711_v47, %v6265_v14 }
 0x1a7   : > { %v6557_v7 = vpack.c.bf16 %v886_v3, %v882_v22  ;;  %v6559_v10 = vpack.c.bf16 %v888_v16, %v884_v61  ;;  %2756 = vmatpush2.bf16.msra.mxu0 %v4954_v19  ;;  %v714_v23 = vadd.f32 %v713_v54, %v6257_v12  ;;  %2869 = vmatpush2.bf16.msra.mxu1 %v5082_v25  ;;  %v1130_v47 = vld [vmem:[#allocation8 + $0x648] sm:$0xff] }
 0x1a8   : > { %v715_v17 = vpop.f32.mrf.mxu0  ;;  %v828_v60 = vpop.f32.mrf.mxu1  ;;  %2757 = vmatprep.subr.bf16.mxu0 %v4947_v9  ;;  %v827_v62 = vadd.f32 %v826_v2, %v6261_v13  ;;  %v825_v22 = vadd.f32 %v824_v56, %v6269_v15  ;;  %2870 = vmatprep.subr.bf16.mxu1 %v5075_v6  ;;  %v4938_v16 = vcombine.low %v6545_v63, %v6551_v18  ;;  %v1134_v56 = vld [vmem:[#allocation8 + $0x668] sm:$0xff] }
 0x1a9   : > { %v716_v19 = vadd.f32 %v715_v17, %v6265_v14  ;;  %v829_v27 = vadd.f32 %v828_v60, %v6269_v15  ;;  %2599 = vmatprep.mubr.bf16.mxu0 %v6557_v7  ;;  %2712 = vmatprep.mubr.bf16.mxu1 %v6559_v10  ;;  %v5066_v14 = vcombine.low %v6553_v52, %v6555_v59  ;;  %v890_v54 = vmax.f32 %v714_v23, 0.0  ;;  %v998_v60 = vld [vmem:[#allocation8 + $0x228] sm:$0xff] }
 0x1aa   : > { %v717_v25 = vpop.f32.mrf.mxu0  ;;  %v830_v61 = vpop.f32.mrf.mxu1  ;;  %2600 = vmatmul.mubr.bf16.gmra.mxu0 %v6565_v11  ;;  %2713 = vmatmul.mubr.bf16.gmra.mxu1 %v6567_v44  ;;  %v4931_v15 = vcombine.high %v1002_v58, %v1006_v45  ;;  %v892_v2 = vmax.f32 %v827_v62, 0.0  ;;  %v891_v6 = vmax.f32 %v825_v22, 0.0  ;;  %v1122_v52 = vld [vmem:[#allocation8 + $0x608] sm:$0xff]  ;;  %v1119_v22 = vld [vmem:[#allocation8 + $0x5f0] sm:$0xff] }
 0x1ab   : > { %v718_v9 = vadd.f32 %v717_v25, %v6257_v12  ;;  %v831_v3 = vadd.f32 %v830_v61, %v6261_v13  ;;  %2758 = vmatpush2.bf16.msra.mxu0 %v4946_v20  ;;  %v893_v51 = vmax.f32 %v716_v19, 0.0  ;;  %v895_v24 = vmax.f32 %v829_v27, 0.0  ;;  %2871 = vmatpush2.bf16.msra.mxu1 %v5074_v8  ;;  %v994_v20 = vld [vmem:[#allocation8 + $0x208] sm:$0xff]  ;;  %v987_v27 = vld [vmem:[#allocation8 + $0x1d0] sm:$0xff] }
 0x1ac   : > { %2759 = vmatprep.subr.bf16.mxu0 %v4939_v21  ;;  %2872 = vmatprep.subr.bf16.mxu1 %v5067_v55  ;;  %v889_v13 = vmax.f32 %v712_v43, 0.0  ;;  %v4930_v8 = vcombine.low %v1002_v58, %v1006_v45  ;;  %v5059_v21 = vcombine.high %v1130_v47, %v1134_v56  ;;  %v1126_v59 = vld [vmem:[#allocation8 + $0x628] sm:$0xff]  ;;  %v5058_v55 = vcombine.low %v1130_v47, %v1134_v56  ;;  %v991_v43 = vld [vmem:[#allocation8 + $0x1f0] sm:$0xff] }
 0x1ad   : > { %v894_v12 = vmax.f32 %v718_v9, 0.0  ;;  %v896_v17 = vmax.f32 %v831_v3, 0.0  ;;  %v6591_v23 = vpack.c.bf16 %v895_v24, %v891_v6  ;;  %v4923_v62 = vcombine.high %v994_v20, %v998_v60  ;;  %v1115_v45 = vld [vmem:[#allocation8 + $0x5d0] sm:$0xff] }
 0x1ae   : > { %v6589_v19 = vpack.c.bf16 %v893_v51, %v889_v13  ;;  %v5051_v58 = vcombine.high %v1122_v52, %v1126_v59  ;;  %v4922_v25 = vcombine.low %v994_v20, %v998_v60  ;;  %v5050_v61 = vcombine.low %v1122_v52, %v1126_v59  ;;  %v983_v51 = vld [vmem:[#allocation8 + $0x1b0] sm:$0xff] }
 0x1af   : > { %v6585_v63 = vpack.c.bf16 %v894_v12, %v890_v54  ;;  %v6587_v18 = vpack.c.bf16 %v896_v17, %v892_v2  ;;  %2760 = vmatpush2.bf16.msra.mxu0 %v4938_v16  ;;  %2873 = vmatpush2.bf16.msra.mxu1 %v5066_v14  ;;  %v4917_v9 = vcombine.high %v987_v27, %v991_v43  ;;  %v979_v16 = vld [vmem:[#allocation8 + $0x190] sm:$0xff] }
 0x1b0   : > { %2761 = vmatprep.subr.bf16.mxu0 %v4931_v15  ;;  %2874 = vmatprep.subr.bf16.mxu1 %v5059_v21  ;;  %v5045_v3 = vcombine.high %v1115_v45, %v1119_v22  ;;  %v4916_v24 = vcombine.low %v987_v27, %v991_v43  ;;  %v1107_v14 = vld [vmem:[#allocation8 + $0x590] sm:$0xff]  ;;  %v5044_v47 = vcombine.low %v1115_v45, %v1119_v22 }
 0x1b1   : > { %2609 = vmatprep.mubr.bf16.mxu0 %v6585_v63  ;;  %2722 = vmatprep.mubr.bf16.mxu1 %v6587_v18  ;;  %v1111_v15 = vld [vmem:[#allocation8 + $0x5b0] sm:$0xff]  ;;  %v4909_v56 = vcombine.high %v979_v16, %v983_v51  ;;  %v4908_v17 = vcombine.low %v979_v16, %v983_v51 }
 0x1b2   : > { %2610 = vmatmul.mubr.bf16.gmra.mxu0 %v6589_v19  ;;  %2723 = vmatmul.mubr.bf16.gmra.mxu1 %v6591_v23  ;;  %v971_v54 = vld [vmem:[#allocation8 + $0x150] sm:$0xff]  ;;  %v5037_v12 = vcombine.high %v1107_v14, %v1111_v15  ;;  %v5036_v60 = vcombine.low %v1107_v14, %v1111_v15 }
 0x1b3   : > { %2762 = vmatpush2.bf16.msra.mxu0 %v4930_v8  ;;  %2765 = vmatprep.mubr.bf16.mxu0 %v6287_v0  ;;  %v975_v2 = vld [vmem:[#allocation8 + $0x170] sm:$0xff] }
 0x1b4   : > { %2875 = vmatpush2.bf16.msra.mxu1 %v5058_v55  ;;  %2878 = vmatprep.mubr.bf16.mxu1 %v6289_v46  ;;  %v1099_v13 = vld [vmem:[#allocation8 + $0x550] sm:$0xff]  ;;  %v4901_v20 = vcombine.high %v971_v54, %v975_v2  ;;  %v4900_v59 = vcombine.low %v971_v54, %v975_v2 }
 0x1b5   : > { %2763 = vmatprep.subr.bf16.mxu0 %v4923_v62  ;;  %2876 = vmatprep.subr.bf16.mxu1 %v5051_v58  ;;  %v1103_v6 = vld [vmem:[#allocation8 + $0x570] sm:$0xff] }
 0x1b6   : > { %v5029_v8 = vcombine.high %v1099_v13, %v1103_v6  ;;  %v963_v21 = vld [vmem:[#allocation8 + $0x110] sm:$0xff]  ;;  %v5028_v27 = vcombine.low %v1099_v13, %v1103_v6 }
 0x1b7   : > { %2764 = vmatpush2.bf16.msra.mxu0 %v4922_v25  ;;  %v967_v52 = vld [vmem:[#allocation8 + $0x130] sm:$0xff] }
 0x1b8   : > { %2877 = vmatpush2.bf16.msra.mxu1 %v5050_v61  ;;  %2959 = vmatprep.subr.bf16.mxu0 %v4917_v9  ;;  %v1091_v55 = vld [vmem:[#allocation8 + $0x510] sm:$0xff]  ;;  %v4893_v43 = vcombine.high %v963_v21, %v967_v52  ;;  %v4892_v25 = vcombine.low %v963_v21, %v967_v52 }
 0x1b9   : > { %3072 = vmatprep.subr.bf16.mxu1 %v5045_v3  ;;  %v1095_v62 = vld [vmem:[#allocation8 + $0x530] sm:$0xff] }
 0x1ba   : > { %2766 = vmatmul.mubr.bf16.vlgmr.msra.gmra.mxu0 %v6293_v48  ;;  %v955_v58 = vld [vmem:[#allocation8 + $0xd0] sm:$0xff]  ;;  %v5021_v22 = vcombine.high %v1091_v55, %v1095_v62  ;;  %v5020_v16 = vcombine.low %v1091_v55, %v1095_v62 }
 0x1bb   : > { %2879 = vmatmul.mubr.bf16.vlgmr.msra.gmra.mxu1 %v6295_v49  ;;  %2960 = vmatpush1.bf16.msra.mxu0 %v4916_v24  ;;  %v959_v45 = vld [vmem:[#allocation8 + $0xf0] sm:$0xff] }
 0x1bc   : > { %2775 = vmatprep.mubr.bf16.mxu0 %v6337_v35  ;;  %2888 = vmatprep.mubr.bf16.mxu1 %v6339_v36  ;;  %v1083_v61 = vld [vmem:[#allocation8 + $0x4d0] sm:$0xff]  ;;  %v4885_v3 = vcombine.high %v955_v58, %v959_v45  ;;  %v4884_v15 = vcombine.low %v955_v58, %v959_v45 }
 0x1bd   : > { %3073 = vmatpush1.bf16.msra.mxu1 %v5044_v47  ;;  %2961 = vmatprep.subr.bf16.mxu0 %v4909_v56  ;;  %v1087_v9 = vld [vmem:[#allocation8 + $0x4f0] sm:$0xff] }
 0x1be   : > { %3074 = vmatprep.subr.bf16.mxu1 %v5037_v12  ;;  %v5013_v51 = vcombine.high %v1083_v61, %v1087_v9  ;;  %v947_v24 = vld [vmem:[#allocation8 + $0x90] sm:$0xff]  ;;  %v5012_v54 = vcombine.low %v1083_v61, %v1087_v9 }
 0x1bf   : > { %2962 = vmatpush1.bf16.msra.mxu0 %v4908_v17  ;;  %v951_v14 = vld [vmem:[#allocation8 + $0xb0] sm:$0xff] }
 0x1c0   : > { %2963 = vmatprep.subr.bf16.mxu0 %v4901_v20  ;;  %v1075_v47 = vld [vmem:[#allocation8 + $0x490] sm:$0xff]  ;;  %v4877_v2 = vcombine.high %v947_v24, %v951_v14  ;;  %v4876_v6 = vcombine.low %v947_v24, %v951_v14 }
 0x1c1   : > { %3075 = vmatpush1.bf16.msra.mxu1 %v5036_v60  ;;  %v1079_v56 = vld [vmem:[#allocation8 + $0x4b0] sm:$0xff] }
 0x1c2   : > { %2776 = vmatmul.mubr.bf16.gmra.mxu0 %v6345_v39  ;;  %3076 = vmatprep.subr.bf16.mxu1 %v5029_v8  ;;  %v939_v12 = vld [vmem:[#allocation8 + $0x50] sm:$0xff]  ;;  %v5005_v13 = vcombine.high %v1075_v47, %v1079_v56  ;;  %v5004_v21 = vcombine.low %v1075_v47, %v1079_v56 }
 0x1c3   : > { %2889 = vmatmul.mubr.bf16.gmra.mxu1 %v6347_v40  ;;  %2964 = vmatpush1.bf16.msra.mxu0 %v4900_v59  ;;  %v943_v17 = vld [vmem:[#allocation8 + $0x70] sm:$0xff] }
 0x1c4   : > { %2785 = vmatprep.mubr.bf16.mxu0 %v6381_v28  ;;  %2898 = vmatprep.mubr.bf16.mxu1 %v6383_v29  ;;  %v1067_v20 = vld [vmem:[#allocation8 + $0x450] sm:$0xff]  ;;  %v4869_v8 = vcombine.high %v939_v12, %v943_v17  ;;  %v4868_v62 = vcombine.low %v939_v12, %v943_v17 }
 0x1c5   : > { %3077 = vmatpush1.bf16.msra.mxu1 %v5028_v27  ;;  %2965 = vmatprep.subr.bf16.mxu0 %v4893_v43  ;;  %v1071_v60 = vld [vmem:[#allocation8 + $0x470] sm:$0xff] }
 0x1c6   : > { %3078 = vmatprep.subr.bf16.mxu1 %v5021_v22  ;;  %v4997_v52 = vcombine.high %v1067_v20, %v1071_v60  ;;  %v931_v59 = vld [vmem:[#allocation8 + $0x10] sm:$0xff]  ;;  %v4996_v58 = vcombine.low %v1067_v20, %v1071_v60 }
 0x1c7   : > { %2966 = vmatpush1.bf16.msra.mxu0 %v4892_v25  ;;  %v935_v55 = vld [vmem:[#allocation8 + $0x30] sm:$0xff] }
 0x1c8   : > { %2967 = vmatprep.subr.bf16.mxu0 %v4885_v3  ;;  %v1059_v27 = vld [vmem:[#allocation8 + $0x410] sm:$0xff]  ;;  %v4861_v45 = vcombine.high %v931_v59, %v935_v55  ;;  %v4860_v9 = vcombine.low %v931_v59, %v935_v55 }
 0x1c9   : > { %3079 = vmatpush1.bf16.msra.mxu1 %v5020_v16  ;;  %v1063_v43 = vld [vmem:[#allocation8 + $0x430] sm:$0xff] }
 0x1ca   : > { %2786 = vmatmul.mubr.bf16.gmra.mxu0 %v6389_v32  ;;  %3080 = vmatprep.subr.bf16.mxu1 %v5013_v51  ;;  %v1051_v22 = vld [vmem:[#allocation8 + $0x3d0] sm:$0xff]  ;;  %v4989_v61 = vcombine.high %v1059_v27, %v1063_v43  ;;  %v4988_v24 = vcombine.low %v1059_v27, %v1063_v43 }
 0x1cb   : > { %2899 = vmatmul.mubr.bf16.gmra.mxu1 %v6391_v33  ;;  %2968 = vmatpush1.bf16.msra.mxu0 %v4884_v15  ;;  %v1055_v25 = vld [vmem:[#allocation8 + $0x3f0] sm:$0xff] }
 0x1cc   : > { %2795 = vmatprep.mubr.bf16.mxu0 %v6425_v1  ;;  %2908 = vmatprep.mubr.bf16.mxu1 %v6427_v26  ;;  %v1179_v3 = vld [vmem:[#allocation8 + $0x7d0] sm:$0xff]  ;;  %v4981_v51 = vcombine.high %v1051_v22, %v1055_v25  ;;  %v4980_v56 = vcombine.low %v1051_v22, %v1055_v25 }
 0x1cd   : > { %3081 = vmatpush1.bf16.msra.mxu1 %v5012_v54  ;;  %2969 = vmatprep.subr.bf16.mxu0 %v4877_v2  ;;  %v1183_v16 = vld [vmem:[#allocation8 + $0x7f0] sm:$0xff] }
 0x1ce   : > { %3082 = vmatprep.subr.bf16.mxu1 %v5005_v13  ;;  %v5109_v14 = vcombine.high %v1179_v3, %v1183_v16  ;;  %v1043_v15 = vld [vmem:[#allocation8 + $0x390] sm:$0xff]  ;;  %v5108_v12 = vcombine.low %v1179_v3, %v1183_v16 }
 0x1cf   : > { %2970 = vmatpush1.bf16.msra.mxu0 %v4876_v6  ;;  %v1047_v47 = vld [vmem:[#allocation8 + $0x3b0] sm:$0xff] }
 0x1d0   : > { %2971 = vmatprep.subr.bf16.mxu0 %v4869_v8  ;;  %v1171_v54 = vld [vmem:[#allocation8 + $0x790] sm:$0xff]  ;;  %v4973_v17 = vcombine.high %v1043_v15, %v1047_v47  ;;  %v4972_v60 = vcombine.low %v1043_v15, %v1047_v47 }
 0x1d1   : > { %3083 = vmatpush1.bf16.msra.mxu1 %v5004_v21  ;;  %v1175_v2 = vld [vmem:[#allocation8 + $0x7b0] sm:$0xff] }
 0x1d2   : > { %2796 = vmatmul.mubr.bf16.gmra.mxu0 %v6433_v34  ;;  %3084 = vmatprep.subr.bf16.mxu1 %v4997_v52  ;;  %v1035_v13 = vld [vmem:[#allocation8 + $0x350] sm:$0xff]  ;;  %v5101_v20 = vcombine.high %v1171_v54, %v1175_v2  ;;  %v5100_v59 = vcombine.low %v1171_v54, %v1175_v2 }
 0x1d3   : > { %2909 = vmatmul.mubr.bf16.gmra.mxu1 %v6435_v31  ;;  %2972 = vmatpush1.bf16.msra.mxu0 %v4868_v62  ;;  %v1039_v6 = vld [vmem:[#allocation8 + $0x370] sm:$0xff] }
 0x1d4   : > { %2805 = vmatprep.mubr.bf16.mxu0 %v6469_v38  ;;  %2918 = vmatprep.mubr.bf16.mxu1 %v6471_v41  ;;  %v1163_v8 = vld [vmem:[#allocation8 + $0x750] sm:$0xff]  ;;  %v4965_v52 = vcombine.high %v1035_v13, %v1039_v6  ;;  %v4964_v43 = vcombine.low %v1035_v13, %v1039_v6 }
 0x1d5   : > { %3085 = vmatpush1.bf16.msra.mxu1 %v4996_v58  ;;  %2973 = vmatprep.subr.bf16.mxu0 %v4861_v45  ;;  %v1167_v21 = vld [vmem:[#allocation8 + $0x770] sm:$0xff] }
 0x1d6   : > { %3086 = vmatprep.subr.bf16.mxu1 %v4989_v61  ;;  %v5093_v55 = vcombine.high %v1163_v8, %v1167_v21  ;;  %v1027_v62 = vld [vmem:[#allocation8 + $0x310] sm:$0xff]  ;;  %v5092_v22 = vcombine.low %v1163_v8, %v1167_v21 }
 0x1d7   : > { %2974 = vmatpush1.bf16.msra.mxu0 %v4860_v9  ;;  %v1031_v27 = vld [vmem:[#allocation8 + $0x330] sm:$0xff] }
 0x1d8   : > { %2975 = vmatprep.subr.bf16.mxu0 %v4981_v51  ;;  %v1155_v58 = vld [vmem:[#allocation8 + $0x710] sm:$0xff]  ;;  %v4957_v25 = vcombine.high %v1027_v62, %v1031_v27  ;;  %v4956_v16 = vcombine.low %v1027_v62, %v1031_v27 }
 0x1d9   : > { %3087 = vmatpush1.bf16.msra.mxu1 %v4988_v24  ;;  %v1159_v45 = vld [vmem:[#allocation8 + $0x730] sm:$0xff] }
 0x1da   : > { %2806 = vmatmul.mubr.bf16.gmra.mxu0 %v6477_v42  ;;  %3088 = vmatprep.subr.bf16.mxu1 %v5109_v14  ;;  %v1019_v61 = vld [vmem:[#allocation8 + $0x2d0] sm:$0xff]  ;;  %v5085_v3 = vcombine.high %v1155_v58, %v1159_v45  ;;  %v5084_v15 = vcombine.low %v1155_v58, %v1159_v45 }
 0x1db   : > { %2919 = vmatmul.mubr.bf16.gmra.mxu1 %v6479_v30  ;;  %2976 = vmatpush2.bf16.msra.mxu0 %v4980_v56  ;;  %v1023_v9 = vld [vmem:[#allocation8 + $0x2f0] sm:$0xff] }
 0x1dc   : > { %2815 = vmatprep.mubr.bf16.mxu0 %v6513_v57  ;;  %2928 = vmatprep.mubr.bf16.mxu1 %v6515_v53  ;;  %v1147_v51 = vld [vmem:[#allocation8 + $0x6d0] sm:$0xff]  ;;  %v4949_v14 = vcombine.high %v1019_v61, %v1023_v9  ;;  %v4948_v2 = vcombine.low %v1019_v61, %v1023_v9 }
 0x1dd   : > { %3089 = vmatpush2.bf16.msra.mxu1 %v5108_v12  ;;  %2977 = vmatprep.subr.bf16.mxu0 %v4973_v17  ;;  %v1151_v24 = vld [vmem:[#allocation8 + $0x6f0] sm:$0xff] }
 0x1de   : > { %3090 = vmatprep.subr.bf16.mxu1 %v5101_v20  ;;  %v5077_v47 = vcombine.high %v1147_v51, %v1151_v24  ;;  %v1011_v56 = vld [vmem:[#allocation8 + $0x290] sm:$0xff]  ;;  %v5076_v13 = vcombine.low %v1147_v51, %v1151_v24 }
 0x1df   : > { %2978 = vmatpush2.bf16.msra.mxu0 %v4972_v60  ;;  %v1015_v54 = vld [vmem:[#allocation8 + $0x2b0] sm:$0xff] }
 0x1e0   : > { %2979 = vmatprep.subr.bf16.mxu0 %v4965_v52  ;;  %v1139_v12 = vld [vmem:[#allocation8 + $0x690] sm:$0xff]  ;;  %v4941_v6 = vcombine.high %v1011_v56, %v1015_v54  ;;  %v4940_v21 = vcombine.low %v1011_v56, %v1015_v54  ;;  %v980_v54 = vld [vmem:[#allocation8 + $0x198] sm:$0xff] }
 0x1e1   : > { %3091 = vmatpush2.bf16.msra.mxu1 %v5100_v59  ;;  %v1143_v17 = vld [vmem:[#allocation8 + $0x6b0] sm:$0xff] }
 0x1e2   : > { %2816 = vmatmul.mubr.bf16.gmra.mxu0 %v6521_v50  ;;  %3092 = vmatprep.subr.bf16.mxu1 %v5093_v55  ;;  %v1003_v20 = vld [vmem:[#allocation8 + $0x250] sm:$0xff]  ;;  %v5069_v8 = vcombine.high %v1139_v12, %v1143_v17  ;;  %v5068_v62 = vcombine.low %v1139_v12, %v1143_v17 }
 0x1e3   : > { %2929 = vmatmul.mubr.bf16.gmra.mxu1 %v6523_v37  ;;  %2980 = vmatpush2.bf16.msra.mxu0 %v4964_v43  ;;  %v1007_v60 = vld [vmem:[#allocation8 + $0x270] sm:$0xff] }
 0x1e4   : > { %2825 = vmatprep.mubr.bf16.mxu0 %v6557_v7  ;;  %2938 = vmatprep.mubr.bf16.mxu1 %v6559_v10  ;;  %v1131_v52 = vld [vmem:[#allocation8 + $0x650] sm:$0xff]  ;;  %v4933_v55 = vcombine.high %v1003_v20, %v1007_v60  ;;  %v4932_v45 = vcombine.low %v1003_v20, %v1007_v60 }
 0x1e5   : > { %3093 = vmatpush2.bf16.msra.mxu1 %v5092_v22  ;;  %2981 = vmatprep.subr.bf16.mxu0 %v4957_v25  ;;  %v1135_v59 = vld [vmem:[#allocation8 + $0x670] sm:$0xff] }
 0x1e6   : > { %3094 = vmatprep.subr.bf16.mxu1 %v5085_v3  ;;  %v5061_v27 = vcombine.high %v1131_v52, %v1135_v59  ;;  %v995_v43 = vld [vmem:[#allocation8 + $0x210] sm:$0xff]  ;;  %v5060_v61 = vcombine.low %v1131_v52, %v1135_v59  ;;  %v988_v3 = vld [vmem:[#allocation8 + $0x1d8] sm:$0xff] }
 0x1e7   : > { %2982 = vmatpush2.bf16.msra.mxu0 %v4956_v16  ;;  %v999_v58 = vld [vmem:[#allocation8 + $0x230] sm:$0xff]  ;;  %v992_v16 = vld [vmem:[#allocation8 + $0x1f8] sm:$0xff] }
 0x1e8   : > { %2983 = vmatprep.subr.bf16.mxu0 %v4949_v14  ;;  %v1123_v22 = vld [vmem:[#allocation8 + $0x610] sm:$0xff]  ;;  %v4925_v9 = vcombine.high %v995_v43, %v999_v58  ;;  %v4924_v24 = vcombine.low %v995_v43, %v999_v58  ;;  %v1116_v14 = vld [vmem:[#allocation8 + $0x5d8] sm:$0xff]  ;;  %v4918_v17 = vcombine.low %v988_v3, %v992_v16 }
 0x1e9   : > { %3095 = vmatpush2.bf16.msra.mxu1 %v5084_v15  ;;  %v1127_v25 = vld [vmem:[#allocation8 + $0x630] sm:$0xff]  ;;  %v1120_v15 = vld [vmem:[#allocation8 + $0x5f8] sm:$0xff] }
 0x1ea   : > { %2826 = vmatmul.mubr.bf16.gmra.mxu0 %v6565_v11  ;;  %3096 = vmatprep.subr.bf16.mxu1 %v5077_v47  ;;  %v5053_v51 = vcombine.high %v1123_v22, %v1127_v25  ;;  %v4919_v47 = vcombine.high %v988_v3, %v992_v16  ;;  %v5052_v56 = vcombine.low %v1123_v22, %v1127_v25  ;;  %v964_v58 = vld [vmem:[#allocation8 + $0x118] sm:$0xff] }
 0x1eb   : > { %2939 = vmatmul.mubr.bf16.gmra.mxu1 %v6567_v44  ;;  %2984 = vmatpush2.bf16.msra.mxu0 %v4948_v2  ;;  %v984_v2 = vld [vmem:[#allocation8 + $0x1b8] sm:$0xff]  ;;  %v5047_v12 = vcombine.high %v1116_v14, %v1120_v15  ;;  %v5046_v60 = vcombine.low %v1116_v14, %v1120_v15 }
 0x1ec   : > { %2835 = vmatprep.mubr.bf16.mxu0 %v6585_v63  ;;  %2948 = vmatprep.mubr.bf16.mxu1 %v6587_v18  ;;  %v4911_v20 = vcombine.high %v980_v54, %v984_v2  ;;  %v4910_v59 = vcombine.low %v980_v54, %v984_v2 }
 0x1ed   : > { %3097 = vmatpush2.bf16.msra.mxu1 %v5076_v13  ;;  %2985 = vmatprep.subr.bf16.mxu0 %v4941_v6  ;;  %v1108_v13 = vld [vmem:[#allocation8 + $0x598] sm:$0xff] }
 0x1ee   : > { %3098 = vmatprep.subr.bf16.mxu1 %v5069_v8  ;;  %v1112_v6 = vld [vmem:[#allocation8 + $0x5b8] sm:$0xff] }
 0x1ef   : > { %2986 = vmatpush2.bf16.msra.mxu0 %v4940_v21  ;;  %v972_v8 = vld [vmem:[#allocation8 + $0x158] sm:$0xff]  ;;  %v5039_v52 = vcombine.high %v1108_v13, %v1112_v6  ;;  %v5038_v43 = vcombine.low %v1108_v13, %v1112_v6 }
 0x1f0   : > { %2987 = vmatprep.subr.bf16.mxu0 %v4933_v55  ;;  %v976_v21 = vld [vmem:[#allocation8 + $0x178] sm:$0xff] }
 0x1f1   : > { %3099 = vmatpush2.bf16.msra.mxu1 %v5068_v62  ;;  %v1100_v55 = vld [vmem:[#allocation8 + $0x558] sm:$0xff]  ;;  %v4902_v25 = vcombine.low %v972_v8, %v976_v21 }
 0x1f2   : > { %2836 = vmatmul.mubr.bf16.gmra.mxu0 %v6589_v19  ;;  %3100 = vmatprep.subr.bf16.mxu1 %v5061_v27  ;;  %v1104_v62 = vld [vmem:[#allocation8 + $0x578] sm:$0xff]  ;;  %v4903_v27 = vcombine.high %v972_v8, %v976_v21 }
 0x1f3   : > { %2949 = vmatmul.mubr.bf16.gmra.mxu1 %v6591_v23  ;;  %2988 = vmatpush2.bf16.msra.mxu0 %v4932_v45  ;;  %v968_v45 = vld [vmem:[#allocation8 + $0x138] sm:$0xff]  ;;  %v5031_v22 = vcombine.high %v1100_v55, %v1104_v62  ;;  %v5030_v16 = vcombine.low %v1100_v55, %v1104_v62 }
 0x1f4   : > { %2991 = vmatprep.mubr.bf16.mxu0 %v6287_v0  ;;  %3104 = vmatprep.mubr.bf16.mxu1 %v6289_v46  ;;  %v4895_v3 = vcombine.high %v964_v58, %v968_v45  ;;  %v4894_v15 = vcombine.low %v964_v58, %v968_v45 }
 0x1f5   : > { %3101 = vmatpush2.bf16.msra.mxu1 %v5060_v61  ;;  %2989 = vmatprep.subr.bf16.mxu0 %v4925_v9  ;;  %v1092_v61 = vld [vmem:[#allocation8 + $0x518] sm:$0xff] }
 0x1f6   : > { %3102 = vmatprep.subr.bf16.mxu1 %v5053_v51  ;;  %v1096_v9 = vld [vmem:[#allocation8 + $0x538] sm:$0xff] }
 0x1f7   : > { %2990 = vmatpush2.bf16.msra.mxu0 %v4924_v24  ;;  %v956_v51 = vld [vmem:[#allocation8 + $0xd8] sm:$0xff]  ;;  %v5023_v14 = vcombine.high %v1092_v61, %v1096_v9  ;;  %v5022_v2 = vcombine.low %v1092_v61, %v1096_v9 }
 0x1f8   : > { %3185 = vmatprep.subr.bf16.mxu0 %v4919_v47  ;;  %v960_v24 = vld [vmem:[#allocation8 + $0xf8] sm:$0xff] }
 0x1f9   : > { %3103 = vmatpush2.bf16.msra.mxu1 %v5052_v56  ;;  %v1084_v47 = vld [vmem:[#allocation8 + $0x4d8] sm:$0xff]  ;;  %v4887_v54 = vcombine.high %v956_v51, %v960_v24  ;;  %v4886_v6 = vcombine.low %v956_v51, %v960_v24 }
 0x1fa   : > { %2992 = vmatmul.mubr.bf16.vlgmr.msra.gmra.mxu0 %v6293_v48  ;;  %3298 = vmatprep.subr.bf16.mxu1 %v5047_v12  ;;  %v1088_v56 = vld [vmem:[#allocation8 + $0x4f8] sm:$0xff] }
 0x1fb   : > { %3186 = vmatpush1.bf16.msra.mxu0 %v4918_v17  ;;  %3001 = vmatprep.mubr.bf16.mxu0 %v6337_v35  ;;  %v948_v12 = vld [vmem:[#allocation8 + $0x98] sm:$0xff]  ;;  %v5015_v13 = vcombine.high %v1084_v47, %v1088_v56  ;;  %v5014_v21 = vcombine.low %v1084_v47, %v1088_v56 }
 0x1fc   : > { %3105 = vmatmul.mubr.bf16.vlgmr.msra.gmra.mxu1 %v6295_v49  ;;  %3187 = vmatprep.subr.bf16.mxu0 %v4911_v20  ;;  %v952_v17 = vld [vmem:[#allocation8 + $0xb8] sm:$0xff] }
 0x1fd   : > { %3114 = vmatprep.mubr.bf16.mxu1 %v6339_v36  ;;  %3299 = vmatpush1.bf16.msra.mxu1 %v5046_v60  ;;  %v1076_v20 = vld [vmem:[#allocation8 + $0x498] sm:$0xff]  ;;  %v4879_v8 = vcombine.high %v948_v12, %v952_v17  ;;  %v4878_v62 = vcombine.low %v948_v12, %v952_v17 }
 0x1fe   : > { %3300 = vmatprep.subr.bf16.mxu1 %v5039_v52  ;;  %v1080_v60 = vld [vmem:[#allocation8 + $0x4b8] sm:$0xff] }
 0x1ff   : > { %3188 = vmatpush1.bf16.msra.mxu0 %v4910_v59  ;;  %v940_v52 = vld [vmem:[#allocation8 + $0x58] sm:$0xff]  ;;  %v5007_v55 = vcombine.high %v1076_v20, %v1080_v60  ;;  %v5006_v45 = vcombine.low %v1076_v20, %v1080_v60 }
 0x200   : > { %3189 = vmatprep.subr.bf16.mxu0 %v4903_v27  ;;  %v944_v59 = vld [vmem:[#allocation8 + $0x78] sm:$0xff] }
 0x201   : > { %3301 = vmatpush1.bf16.msra.mxu1 %v5038_v43  ;;  %v1068_v27 = vld [vmem:[#allocation8 + $0x458] sm:$0xff]  ;;  %v4871_v58 = vcombine.high %v940_v52, %v944_v59  ;;  %v4870_v9 = vcombine.low %v940_v52, %v944_v59 }
 0x202   : > { %3002 = vmatmul.mubr.bf16.gmra.mxu0 %v6345_v39  ;;  %3302 = vmatprep.subr.bf16.mxu1 %v5031_v22  ;;  %v1072_v43 = vld [vmem:[#allocation8 + $0x478] sm:$0xff] }
 0x203   : > { %3190 = vmatpush1.bf16.msra.mxu0 %v4902_v25  ;;  %3011 = vmatprep.mubr.bf16.mxu0 %v6381_v28  ;;  %v932_v22 = vld [vmem:[#allocation8 + $0x18] sm:$0xff]  ;;  %v4999_v61 = vcombine.high %v1068_v27, %v1072_v43  ;;  %v4998_v24 = vcombine.low %v1068_v27, %v1072_v43 }
 0x204   : > { %3115 = vmatmul.mubr.bf16.gmra.mxu1 %v6347_v40  ;;  %3191 = vmatprep.subr.bf16.mxu0 %v4895_v3  ;;  %v936_v25 = vld [vmem:[#allocation8 + $0x38] sm:$0xff] }
 0x205   : > { %3124 = vmatprep.mubr.bf16.mxu1 %v6383_v29  ;;  %3303 = vmatpush1.bf16.msra.mxu1 %v5030_v16  ;;  %v1060_v3 = vld [vmem:[#allocation8 + $0x418] sm:$0xff]  ;;  %v4863_v51 = vcombine.high %v932_v22, %v936_v25  ;;  %v4862_v56 = vcombine.low %v932_v22, %v936_v25 }
 0x206   : > { %3304 = vmatprep.subr.bf16.mxu1 %v5023_v14  ;;  %v1064_v16 = vld [vmem:[#allocation8 + $0x438] sm:$0xff] }
 0x207   : > { %3192 = vmatpush1.bf16.msra.mxu0 %v4894_v15  ;;  %v1052_v14 = vld [vmem:[#allocation8 + $0x3d8] sm:$0xff]  ;;  %v4991_v47 = vcombine.high %v1060_v3, %v1064_v16  ;;  %v4990_v17 = vcombine.low %v1060_v3, %v1064_v16 }
 0x208   : > { %3193 = vmatprep.subr.bf16.mxu0 %v4887_v54  ;;  %v1056_v15 = vld [vmem:[#allocation8 + $0x3f8] sm:$0xff] }
 0x209   : > { %3305 = vmatpush1.bf16.msra.mxu1 %v5022_v2  ;;  %v1180_v54 = vld [vmem:[#allocation8 + $0x7d8] sm:$0xff]  ;;  %v4983_v12 = vcombine.high %v1052_v14, %v1056_v15  ;;  %v4982_v60 = vcombine.low %v1052_v14, %v1056_v15 }
 0x20a   : > { %3012 = vmatmul.mubr.bf16.gmra.mxu0 %v6389_v32  ;;  %3306 = vmatprep.subr.bf16.mxu1 %v5015_v13  ;;  %v1184_v2 = vld [vmem:[#allocation8 + $0x7f8] sm:$0xff] }
 0x20b   : > { %3194 = vmatpush1.bf16.msra.mxu0 %v4886_v6  ;;  %3021 = vmatprep.mubr.bf16.mxu0 %v6425_v1  ;;  %v1044_v13 = vld [vmem:[#allocation8 + $0x398] sm:$0xff]  ;;  %v5111_v20 = vcombine.high %v1180_v54, %v1184_v2  ;;  %v5110_v59 = vcombine.low %v1180_v54, %v1184_v2 }
 0x20c   : > { %3125 = vmatmul.mubr.bf16.gmra.mxu1 %v6391_v33  ;;  %3195 = vmatprep.subr.bf16.mxu0 %v4879_v8  ;;  %v1048_v6 = vld [vmem:[#allocation8 + $0x3b8] sm:$0xff] }
 0x20d   : > { %3134 = vmatprep.mubr.bf16.mxu1 %v6427_v26  ;;  %3307 = vmatpush1.bf16.msra.mxu1 %v5014_v21  ;;  %v1172_v8 = vld [vmem:[#allocation8 + $0x798] sm:$0xff]  ;;  %v4975_v52 = vcombine.high %v1044_v13, %v1048_v6  ;;  %v4974_v43 = vcombine.low %v1044_v13, %v1048_v6 }
 0x20e   : > { %3308 = vmatprep.subr.bf16.mxu1 %v5007_v55  ;;  %v1176_v21 = vld [vmem:[#allocation8 + $0x7b8] sm:$0xff] }
 0x20f   : > { %3196 = vmatpush1.bf16.msra.mxu0 %v4878_v62  ;;  %v1036_v55 = vld [vmem:[#allocation8 + $0x358] sm:$0xff]  ;;  %v5103_v27 = vcombine.high %v1172_v8, %v1176_v21  ;;  %v5102_v25 = vcombine.low %v1172_v8, %v1176_v21 }
 0x210   : > { %3197 = vmatprep.subr.bf16.mxu0 %v4871_v58  ;;  %v1040_v62 = vld [vmem:[#allocation8 + $0x378] sm:$0xff] }
 0x211   : > { %3309 = vmatpush1.bf16.msra.mxu1 %v5006_v45  ;;  %v1164_v58 = vld [vmem:[#allocation8 + $0x758] sm:$0xff]  ;;  %v4967_v22 = vcombine.high %v1036_v55, %v1040_v62  ;;  %v4966_v16 = vcombine.low %v1036_v55, %v1040_v62 }
 0x212   : > { %3022 = vmatmul.mubr.bf16.gmra.mxu0 %v6433_v34  ;;  %3310 = vmatprep.subr.bf16.mxu1 %v4999_v61  ;;  %v1168_v45 = vld [vmem:[#allocation8 + $0x778] sm:$0xff] }
 0x213   : > { %3198 = vmatpush1.bf16.msra.mxu0 %v4870_v9  ;;  %3031 = vmatprep.mubr.bf16.mxu0 %v6469_v38  ;;  %v1028_v61 = vld [vmem:[#allocation8 + $0x318] sm:$0xff]  ;;  %v5095_v3 = vcombine.high %v1164_v58, %v1168_v45  ;;  %v5094_v15 = vcombine.low %v1164_v58, %v1168_v45 }
 0x214   : > { %3135 = vmatmul.mubr.bf16.gmra.mxu1 %v6435_v31  ;;  %3199 = vmatprep.subr.bf16.mxu0 %v4863_v51  ;;  %v1032_v9 = vld [vmem:[#allocation8 + $0x338] sm:$0xff] }
 0x215   : > { %3144 = vmatprep.mubr.bf16.mxu1 %v6471_v41  ;;  %3311 = vmatpush1.bf16.msra.mxu1 %v4998_v24  ;;  %v1156_v51 = vld [vmem:[#allocation8 + $0x718] sm:$0xff]  ;;  %v4959_v14 = vcombine.high %v1028_v61, %v1032_v9  ;;  %v4958_v2 = vcombine.low %v1028_v61, %v1032_v9 }
 0x216   : > { %3312 = vmatprep.subr.bf16.mxu1 %v4991_v47  ;;  %v1160_v24 = vld [vmem:[#allocation8 + $0x738] sm:$0xff] }
 0x217   : > { %3200 = vmatpush1.bf16.msra.mxu0 %v4862_v56  ;;  %v1020_v47 = vld [vmem:[#allocation8 + $0x2d8] sm:$0xff]  ;;  %v5087_v54 = vcombine.high %v1156_v51, %v1160_v24  ;;  %v5086_v6 = vcombine.low %v1156_v51, %v1160_v24 }
 0x218   : > { %3201 = vmatprep.subr.bf16.mxu0 %v4983_v12  ;;  %v1024_v56 = vld [vmem:[#allocation8 + $0x2f8] sm:$0xff] }
 0x219   : > { %3313 = vmatpush1.bf16.msra.mxu1 %v4990_v17  ;;  %v1148_v12 = vld [vmem:[#allocation8 + $0x6d8] sm:$0xff]  ;;  %v4951_v13 = vcombine.high %v1020_v47, %v1024_v56  ;;  %v4950_v21 = vcombine.low %v1020_v47, %v1024_v56 }
 0x21a   : > { %3032 = vmatmul.mubr.bf16.gmra.mxu0 %v6477_v42  ;;  %3314 = vmatprep.subr.bf16.mxu1 %v5111_v20  ;;  %v1152_v17 = vld [vmem:[#allocation8 + $0x6f8] sm:$0xff] }
 0x21b   : > { %3202 = vmatpush2.bf16.msra.mxu0 %v4982_v60  ;;  %3041 = vmatprep.mubr.bf16.mxu0 %v6513_v57  ;;  %v1012_v20 = vld [vmem:[#allocation8 + $0x298] sm:$0xff]  ;;  %v5079_v8 = vcombine.high %v1148_v12, %v1152_v17  ;;  %v5078_v62 = vcombine.low %v1148_v12, %v1152_v17  ;;  %v5596_v12 = vld [vmem:[#allocation11 + $0x78] sm:$0xff]  }
 0x21c   : > { %3145 = vmatmul.mubr.bf16.gmra.mxu1 %v6479_v30  ;;  %3203 = vmatprep.subr.bf16.mxu0 %v4975_v52  ;;  %v1016_v60 = vld [vmem:[#allocation8 + $0x2b8] sm:$0xff] }
 0x21d   : > { %3154 = vmatprep.mubr.bf16.mxu1 %v6515_v53  ;;  %3315 = vmatpush2.bf16.msra.mxu1 %v5110_v59  ;;  %v1140_v52 = vld [vmem:[#allocation8 + $0x698] sm:$0xff]  ;;  %v4943_v55 = vcombine.high %v1012_v20, %v1016_v60  ;;  %v4942_v45 = vcombine.low %v1012_v20, %v1016_v60  ;;  %v5607_v60 = vld [vmem:[#allocation11 + $0xb8] sm:$0xff]  }
 0x21e   : > { %3316 = vmatprep.subr.bf16.mxu1 %v5103_v27  ;;  %v1144_v59 = vld [vmem:[#allocation8 + $0x6b8] sm:$0xff] }
 0x21f   : > { %3204 = vmatpush2.bf16.msra.mxu0 %v4974_v43  ;;  %v1004_v27 = vld [vmem:[#allocation8 + $0x258] sm:$0xff]  ;;  %v5071_v58 = vcombine.high %v1140_v52, %v1144_v59  ;;  %v5070_v9 = vcombine.low %v1140_v52, %v1144_v59 }
 0x220   : > { %3205 = vmatprep.subr.bf16.mxu0 %v4967_v22  ;;  %v1008_v43 = vld [vmem:[#allocation8 + $0x278] sm:$0xff] }
 0x221   : > { %3317 = vmatpush2.bf16.msra.mxu1 %v5102_v25  ;;  %v1132_v22 = vld [vmem:[#allocation8 + $0x658] sm:$0xff]  ;;  %v4935_v61 = vcombine.high %v1004_v27, %v1008_v43  ;;  %v4934_v24 = vcombine.low %v1004_v27, %v1008_v43  ;;  %v5601_v43 = vld [vmem:[#allocation11 + $0x28] sm:$0xff]  }
 0x222   : > { %3042 = vmatmul.mubr.bf16.gmra.mxu0 %v6521_v50  ;;  %3318 = vmatprep.subr.bf16.mxu1 %v5095_v3  ;;  %v1136_v25 = vld [vmem:[#allocation8 + $0x678] sm:$0xff] }
 0x223   : > { %3206 = vmatpush2.bf16.msra.mxu0 %v4966_v16  ;;  %3051 = vmatprep.mubr.bf16.mxu0 %v6557_v7  ;;  %v996_v3 = vld [vmem:[#allocation8 + $0x218] sm:$0xff]  ;;  %v5063_v51 = vcombine.high %v1132_v22, %v1136_v25  ;;  %v5062_v56 = vcombine.low %v1132_v22, %v1136_v25  ;;  %v5615_v22 = vld [vmem:[#allocation11 + $0xa8] sm:$0xff]  }
 0x224   : > { %3155 = vmatmul.mubr.bf16.gmra.mxu1 %v6523_v37  ;;  %3207 = vmatprep.subr.bf16.mxu0 %v4959_v14  ;;  %v1000_v16 = vld [vmem:[#allocation8 + $0x238] sm:$0xff] }
 0x225   : > { %3164 = vmatprep.mubr.bf16.mxu1 %v6559_v10  ;;  %3319 = vmatpush2.bf16.msra.mxu1 %v5094_v15  ;;  %v1124_v14 = vld [vmem:[#allocation8 + $0x618] sm:$0xff]  ;;  %v4927_v47 = vcombine.high %v996_v3, %v1000_v16 }
 0x226   : > { %3320 = vmatprep.subr.bf16.mxu1 %v5087_v54  ;;  %v1128_v15 = vld [vmem:[#allocation8 + $0x638] sm:$0xff] }
 0x227   : > { %3208 = vmatpush2.bf16.msra.mxu0 %v4958_v2  ;;  %v5055_v54 = vcombine.high %v1124_v14, %v1128_v15  ;;  %v4926_v2 = vcombine.low %v996_v3, %v1000_v16  ;;  %v5054_v17 = vcombine.low %v1124_v14, %v1128_v15  ;;  %v5598_v20 = vld [vmem:[#allocation11 + $0x70] sm:$0xff]   ;;  %v5606_v15 = vld [vmem:[#allocation11 + $0x18] sm:$0xff]  }
 0x228   : > { %3209 = vmatprep.subr.bf16.mxu0 %v4951_v13  ;;  %v5605_v13 = vld [vmem:[#allocation11 + $0xf8] sm:$0xff]  }
 0x229   : > { %3321 = vmatpush2.bf16.msra.mxu1 %v5086_v6  ;;  %v5597_v6 = vld [vmem:[#allocation11 + $0x38] sm:$0xff]  }
 0x22a   : > { %3052 = vmatmul.mubr.bf16.gmra.mxu0 %v6565_v11  ;;  %3322 = vmatprep.subr.bf16.mxu1 %v5079_v8 }
 0x22b   : > { %3210 = vmatpush2.bf16.msra.mxu0 %v4950_v21  ;;  %3061 = vmatprep.mubr.bf16.mxu0 %v6585_v63  ;;  %v5609_v21 = vld [vmem:[#allocation11 + $0xf0] sm:$0xff]  }
 0x22c   : > { %3165 = vmatmul.mubr.bf16.gmra.mxu1 %v6567_v44  ;;  %3211 = vmatprep.subr.bf16.mxu0 %v4943_v55  ;;  %v5600_v55 = vld [vmem:[#allocation11 + $0x68] sm:$0xff]  }
 0x22d   : > { %3174 = vmatprep.mubr.bf16.mxu1 %v6587_v18  ;;  %3323 = vmatpush2.bf16.msra.mxu1 %v5078_v62  ;;  %v5611_v62 = vld [vmem:[#allocation11 + $0xb0] sm:$0xff]  }
 0x22e   : > { %3324 = vmatprep.subr.bf16.mxu1 %v5071_v58 }
 0x22f   : > { %3212 = vmatpush2.bf16.msra.mxu0 %v4942_v45  ;;  %v5602_v45 = vld [vmem:[#allocation11 + $0x60] sm:$0xff]  }
 0x230   : > { %3213 = vmatprep.subr.bf16.mxu0 %v4935_v61  ;;  %v5617_v61 = vld [vmem:[#allocation11 + $0xe0] sm:$0xff]  }
 0x231   : > { %3325 = vmatpush2.bf16.msra.mxu1 %v5070_v9  ;;  %v5603_v9 = vld [vmem:[#allocation11 + $0x20] sm:$0xff]  }
 0x232   : > { %3062 = vmatmul.mubr.bf16.gmra.mxu0 %v6589_v19  ;;  %3326 = vmatprep.subr.bf16.mxu1 %v5063_v51  ;;  %v5604_v51 = vld [vmem:[#allocation11 + $0x58] sm:$0xff]  }
 0x233   : > { %3214 = vmatpush2.bf16.msra.mxu0 %v4934_v24  ;;  %3217 = vmatprep.mubr.bf16.mxu0 %v6287_v0  ;;  %v5619_v24 = vld [vmem:[#allocation11 + $0xa0] sm:$0xff]  }
 0x234   : > { %3175 = vmatmul.mubr.bf16.gmra.mxu1 %v6591_v23  ;;  %3215 = vmatprep.subr.bf16.mxu0 %v4927_v47 }
 0x235   : > { %3327 = vmatpush2.bf16.msra.mxu1 %v5062_v56  ;;  %3330 = vmatprep.mubr.bf16.mxu1 %v6289_v46  ;;  %v5599_v46 = vld [vmem:[#allocation11 + $0x30] sm:$0xff]  }
 0x236   : > { %3328 = vmatprep.subr.bf16.mxu1 %v5055_v54  ;;  %v5608_v56 = vld [vmem:[#allocation11 + $0x50] sm:$0xff]   ;;  %v5621_v54 = vld [vmem:[#allocation11 + $0x98] sm:$0xff]  }
 0x237   : > { %3216 = vmatpush2.bf16.msra.mxu0 %v4926_v2 }
 0x238   : > { %5184 = vmatprep.subr.bf16.mxu0 %v5596_v12  ;;  %v5622_v12 = vld [vmem:[#allocation11 + $0xd0] sm:$0xff]  }
 0x239   : > { %3329 = vmatpush2.bf16.msra.mxu1 %v5054_v17  ;;  %v5610_v17 = vld [vmem:[#allocation11 + $0x10] sm:$0xff]  }
 0x23a   : > { %v6663_v8 = vpop.f32.mrf.mxu0  ;;  %v6665_v0 = vpop.f32.mrf.mxu1  ;;  %3218 = vmatmul.mubr.bf16.vlgmr.msra.gmra.mxu0 %v6293_v48  ;;  %5248 = vmatprep.subr.bf16.mxu1 %v5605_v13 }
 0x23b   : > { %3227 = vmatprep.mubr.bf16.mxu0 %v6337_v35  ;;  %5185 = vmatpush3.bf16.msra.mxu0 %v5597_v6  ;;  %v5613_v35 = vld [vmem:[#allocation11 + $0xe8] sm:$0xff]  }
 0x23c   : > { %3331 = vmatmul.mubr.bf16.vlgmr.msra.gmra.mxu1 %v6295_v49  ;;  %v6670_v52 = vpop.f32.mrf.mxu0  ;;  %v6672_v59 = vpop.f32.mrf.mxu1  ;;  %5186 = vmatprep.subr.bf16.mxu0 %v5598_v20  ;;  %v5612_v20 = vld [vmem:[#allocation11 + $0x48] sm:$0xff]  }
 0x23d   : > { %3340 = vmatprep.mubr.bf16.mxu1 %v6339_v36  ;;  %5249 = vmatpush3.bf16.msra.mxu1 %v5607_v60  ;;  %v5623_v60 = vld [vmem:[#allocation11 + $0x90] sm:$0xff]  }
 0x23e   : > { %v6675_v27 = vpop.f32.mrf.mxu0  ;;  %v6677_v48 = vpop.f32.mrf.mxu1  ;;  %5250 = vmatprep.subr.bf16.mxu1 %v5609_v21 }
 0x23f   : > { %5187 = vmatpush3.bf16.msra.mxu0 %v5599_v46  ;;  %v5614_v46 = vld [vmem:[#allocation11 + $0x8] sm:$0xff]  }
 0x240   : > { %v6679_v58 = vpop.f32.mrf.mxu0  ;;  %v6681_v49 = vpop.f32.mrf.mxu1  ;;  %5188 = vmatprep.subr.bf16.mxu0 %v5600_v55 }
 0x241   : > { %5251 = vmatpush3.bf16.msra.mxu1 %v5611_v62  ;;  %v5616_v62 = vld [vmem:[#allocation11 + $0x40] sm:$0xff]  }
 0x242   : > { %v6683_v25 = vpop.f32.mrf.mxu0  ;;  %v6685_v36 = vpop.f32.mrf.mxu1  ;;  %3228 = vmatmul.mubr.bf16.gmra.mxu0 %v6345_v39  ;;  %5252 = vmatprep.subr.bf16.mxu1 %v5613_v35  ;;  %v5625_v35 = vld [vmem:[#allocation11 + $0x88] sm:$0xff]  }
 0x243   : > { %3237 = vmatprep.mubr.bf16.mxu0 %v6381_v28  ;;  %5189 = vmatpush3.bf16.msra.mxu0 %v5601_v43  ;;  %v5620_v28 = vld [vmem:[#allocation11 + $0xd8] sm:$0xff]  }
 0x244   : > { %3341 = vmatmul.mubr.bf16.gmra.mxu1 %v6347_v40  ;;  %v6690_v3 = vpop.f32.mrf.mxu0  ;;  %v6692_v16 = vpop.f32.mrf.mxu1  ;;  %5190 = vmatprep.subr.bf16.mxu0 %v5602_v45  ;;  %v5626_v45 = vld [vmem:[#allocation11 + $0xc0] sm:$0xff]  }
 0x245   : > { %3350 = vmatprep.mubr.bf16.mxu1 %v6383_v29  ;;  %5253 = vmatpush3.bf16.msra.mxu1 %v5615_v22  ;;  %v5618_v22 = vld [vmem:[#allocation11] sm:$0xff]  }
 0x246   : > { %v6695_v14 = vpop.f32.mrf.mxu0  ;;  %v6697_v39 = vpop.f32.mrf.mxu1  ;;  %5254 = vmatprep.subr.bf16.mxu1 %v5617_v61 }
 0x247   : > { %5191 = vmatpush3.bf16.msra.mxu0 %v5603_v9 }
 0x248   : > { %v6699_v47 = vpop.f32.mrf.mxu0  ;;  %v6701_v40 = vpop.f32.mrf.mxu1  ;;  %5192 = vmatprep.subr.bf16.mxu0 %v5604_v51  ;;  %v5628_v51 = vld [vmem:[#allocation11 + $0x178] sm:$0xff]  }
 0x249   : > { %5255 = vmatpush3.bf16.msra.mxu1 %v5619_v24  ;;  %v5627_v24 = vld [vmem:[#allocation11 + $0x80] sm:$0xff]  }
 0x24a   : > { %v6703_v2 = vpop.f32.mrf.mxu0  ;;  %v6705_v29 = vpop.f32.mrf.mxu1  ;;  %3238 = vmatmul.mubr.bf16.gmra.mxu0 %v6389_v32  ;;  %5256 = vmatprep.subr.bf16.mxu1 %v5620_v28 }
 0x24b   : > { %3247 = vmatprep.mubr.bf16.mxu0 %v6425_v1  ;;  %5193 = vmatpush3.bf16.msra.mxu0 %v5606_v15  ;;  %v5624_v1 = vld [vmem:[#allocation11 + $0xc8] sm:$0xff]  }
 0x24c   : > { %3351 = vmatmul.mubr.bf16.gmra.mxu1 %v6391_v33  ;;  %v6710_v13 = vpop.f32.mrf.mxu0  ;;  %v6712_v6 = vpop.f32.mrf.mxu1  ;;  %5194 = vmatprep.subr.bf16.mxu0 %v5608_v56 }
 0x24d   : > { %3360 = vmatprep.mubr.bf16.mxu1 %v6427_v26  ;;  %5257 = vmatpush3.bf16.msra.mxu1 %v5621_v54 }
 0x24e   : > { %v6715_v21 = vpop.f32.mrf.mxu0  ;;  %v6717_v32 = vpop.f32.mrf.mxu1  ;;  %5258 = vmatprep.subr.bf16.mxu1 %v5622_v12 }
 0x24f   : > { %5195 = vmatpush3.bf16.msra.mxu0 %v5610_v17 }
 0x250   : > { %v6719_v55 = vpop.f32.mrf.mxu0  ;;  %v6721_v33 = vpop.f32.mrf.mxu1  ;;  %5196 = vmatprep.subr.bf16.mxu0 %v5612_v20 }
 0x251   : > { %5259 = vmatpush3.bf16.msra.mxu1 %v5623_v60 }
 0x252   : > { %v6723_v43 = vpop.f32.mrf.mxu0  ;;  %v6725_v26 = vpop.f32.mrf.mxu1  ;;  %3248 = vmatmul.mubr.bf16.gmra.mxu0 %v6433_v34  ;;  %5260 = vmatprep.subr.bf16.mxu1 %v5624_v1 }
 0x253   : > { %3257 = vmatprep.mubr.bf16.mxu0 %v6469_v38  ;;  %5197 = vmatpush3.bf16.msra.mxu0 %v5614_v46  ;;  %v5644_v38 = vld [vmem:[#allocation11 + $0x1f8] sm:$0xff]  }
 0x254   : > { %3361 = vmatmul.mubr.bf16.gmra.mxu1 %v6435_v31  ;;  %v6730_v61 = vpop.f32.mrf.mxu0  ;;  %v6732_v9 = vpop.f32.mrf.mxu1  ;;  %5198 = vmatprep.subr.bf16.mxu0 %v5616_v62 }
 0x255   : > { %3370 = vmatprep.mubr.bf16.mxu1 %v6471_v41  ;;  %5261 = vmatpush3.bf16.msra.mxu1 %v5625_v35 }
 0x256   : > { %v6735_v28 = vpop.f32.mrf.mxu0  ;;  %v6737_v34 = vpop.f32.mrf.mxu1  ;;  %5262 = vmatprep.subr.bf16.mxu1 %v5626_v45 }
 0x257   : > { %5199 = vmatpush3.bf16.msra.mxu0 %v5618_v22 }
 0x258   : > { %v6739_v15 = vpop.f32.mrf.mxu0  ;;  %v6741_v31 = vpop.f32.mrf.mxu1  ;;  %5312 = vmatprep.subr.bf16.mxu0 %v5628_v51  ;;  %v7544_v51 = vsub.s32 0, %v6249_v4 }
 0x259   : > { %5263 = vmatpush3.bf16.msra.mxu1 %v5627_v24 }
 0x25a   : > { %v6743_v56 = vpop.f32.mrf.mxu0  ;;  %v6745_v54 = vpop.f32.mrf.mxu1  ;;  %3258 = vmatmul.mubr.bf16.gmra.mxu0 %v6477_v42  ;;  %5376 = vmatprep.subr.bf16.mxu1 %v5644_v38  ;;  %v6763_v42 = vld [vmem:[#allocation10] sm:$0xff] }
 0x25b   : > { %3267 = vmatprep.mubr.bf16.mxu0 %v6513_v57  ;;  %7543 = vst [vmem:[#allocation20_spill] sm:$0xff] %v6763_v42  ;;  %v6798_v24 = vrot.slane %v6763_v42, %v7544_v51 }
 0x25c   : > { %3371 = vmatmul.mubr.bf16.gmra.mxu1 %v6479_v30  ;;  %v6750_v41 = vpop.f32.mrf.mxu0  ;;  %v6752_v12 = vpop.f32.mrf.mxu1  ;;  %v6773_v30 = vrot.slane %v6763_v42, %v433_v5 }
 0x25d   : > { %3380 = vmatprep.mubr.bf16.mxu1 %v6515_v53 }
 0x25e   : > { %v6755_v17 = vpop.f32.mrf.mxu0  ;;  %v6757_v20 = vpop.f32.mrf.mxu1  ;;  %v2548_v35 = vadd.f32 %v6679_v58, %v6773_v30  ;;  %v2544_v5 = vadd.f32 %v6670_v52, %v6773_v30  ;;  %v2546_v52 = vadd.f32 %v6675_v27, %v6798_v24 }
 0x260   : > { %v6759_v60 = vpop.f32.mrf.mxu0  ;;  %v6761_v1 = vpop.f32.mrf.mxu1  ;;  %v2657_v38 = vadd.f32 %v6672_v59, %v2544_v5  ;;  %v2659_v5 = vadd.f32 %v6677_v48, %v2546_v52  ;;  %v2556_v48 = vadd.f32 %v6695_v14, %v6798_v24  ;;  %v2568_v52 = vadd.f32 %v6719_v55, %v6773_v30  ;;  %v5629_v55 = vld [vmem:[#allocation11 + $0x138] sm:$0xff]  }
 0x262   : > { %v6765_v46 = vpop.f32.mrf.mxu0  ;;  %v6767_v57 = vpop.f32.mrf.mxu1  ;;  %3268 = vmatmul.mubr.bf16.gmra.mxu0 %v6521_v50  ;;  %v3412_v27 = vmax.f32 %v2657_v38, 0.0 }
 0x263   : > { %3277 = vmatprep.mubr.bf16.mxu0 %v6557_v7 }
 0x264   : > { %3381 = vmatmul.mubr.bf16.gmra.mxu1 %v6523_v37  ;;  %v6777_v53 = vpop.f32.mrf.mxu0  ;;  %v6779_v62 = vpop.f32.mrf.mxu1  ;;  %v2661_v37 = vadd.f32 %v6681_v49, %v2548_v35 }
 0x265   : > { %3390 = vmatprep.mubr.bf16.mxu1 %v6559_v10 }
 0x266   : > { %v6784_v45 = vpop.f32.mrf.mxu0  ;;  %v6786_v50 = vpop.f32.mrf.mxu1  ;;  %v3420_v51 = vmax.f32 %v2661_v37, 0.0 }
 0x268   : > { %v6790_v22 = vpop.f32.mrf.mxu0  ;;  %v6792_v7 = vpop.f32.mrf.mxu1 }
 0x26a   : > { %v6800_v58 = vpop.f32.mrf.mxu0  ;;  %v6802_v10 = vpop.f32.mrf.mxu1  ;;  %3278 = vmatmul.mubr.bf16.gmra.mxu0 %v6565_v11  ;;  %v2542_v11 = vadd.f32 %v6663_v8, %v6798_v24 }
 0x26b   : > { %7545 = vst [vmem:[#allocation21_spill] sm:$0xff] %v6800_v58  ;;  %7546 = vst [vmem:[#allocation22_spill] sm:$0xff] %v6802_v10  ;;  %3287 = vmatprep.mubr.bf16.mxu0 %v6585_v63  ;;  %v2558_v58 = vadd.f32 %v6699_v47, %v6773_v30 }
 0x26c   : > { %3391 = vmatmul.mubr.bf16.gmra.mxu1 %v6567_v44  ;;  %v6810_v49 = vpop.f32.mrf.mxu0  ;;  %v6812_v35 = vpop.f32.mrf.mxu1  ;;  %v2554_v44 = vadd.f32 %v6690_v3, %v6773_v30  ;;  %v3419_v3 = vmax.f32 %v2659_v5, 0.0  ;;  %v2681_v5 = vadd.f32 %v6721_v33, %v2568_v52  ;;  %v5631_v52 = vld [vmem:[#allocation11 + $0x130] sm:$0xff]  }
 0x26d   : > { %7547 = vst [vmem:[#allocation23_spill] sm:$0xff] %v6812_v35  ;;  %3400 = vmatprep.mubr.bf16.mxu1 %v6587_v18  ;;  %v2671_v47 = vadd.f32 %v6701_v40, %v2558_v58  ;;  %v3540_v18 = vpack.c.bf16 %v3420_v51, %v3412_v27  ;;  %v2655_v35 = vadd.f32 %v6665_v0, %v2542_v11 }
 0x26e   : > { %v6819_v59 = vpop.f32.mrf.mxu0  ;;  %v6821_v63 = vpop.f32.mrf.mxu1  ;;  %v2667_v38 = vadd.f32 %v6692_v16, %v2554_v44  ;;  %v2564_v16 = vadd.f32 %v6710_v13, %v6773_v30 }
 0x26f   : > { %7548 = vst [vmem:[#allocation24_spill] sm:$0xff] %v6819_v59  ;;  %v3436_v58 = vmax.f32 %v2671_v47, 0.0  ;;  %v3411_v51 = vmax.f32 %v2655_v35, 0.0  ;;  %v5630_v47 = vld [vmem:[#allocation11 + $0x170] sm:$0xff]  }
 0x270   : > { %v6826_v10 = vpop.f32.mrf.mxu0  ;;  %v6828_v37 = vpop.f32.mrf.mxu1  ;;  %v3428_v27 = vmax.f32 %v2667_v38, 0.0  ;;  %v2677_v38 = vadd.f32 %v6712_v6, %v2564_v16  ;;  %v2578_v6 = vadd.f32 %v6739_v15, %v6773_v30 }
 0x271   : > { %v3539_v44 = vpack.c.bf16 %v3419_v3, %v3411_v51  ;;  %v7555_v3 = vsub.s32 2, %v6249_v4  ;;  %v3452_v51 = vmax.f32 %v2681_v5, 0.0 }
 0x272   : > { %v6832_v8 = vpop.f32.mrf.mxu0  ;;  %v6834_v59 = vpop.f32.mrf.mxu1  ;;  %3288 = vmatmul.mubr.bf16.gmra.mxu0 %v6589_v19  ;;  %v2552_v19 = vadd.f32 %v6683_v25, %v6798_v24  ;;  %v3548_v25 = vpack.c.bf16 %v3436_v58, %v3428_v27 }
 0x273   : > { %7549 = vst [vmem:[#allocation25_spill] sm:$0xff] %v6832_v8  ;;  %7550 = vst [vmem:[#allocation26_spill] sm:$0xff] %v6834_v59  ;;  %4154 = vmatprep.mubr.bf16.mxu0 %v3540_v18  ;;  %v7554_v59 = vsub.s32 3, %v6249_v4 }
 0x274   : > { %3401 = vmatmul.mubr.bf16.gmra.mxu1 %v6591_v23  ;;  %v6843_v40 = vpop.f32.mrf.mxu0  ;;  %v6845_v0 = vpop.f32.mrf.mxu1  ;;  %v2669_v23 = vadd.f32 %v6697_v39, %v2556_v48  ;;  %v6871_v39 = vrot.slane %v6763_v42, %v7555_v3 }
 0x275   : > { %7551 = vst [vmem:[#allocation27_spill] sm:$0xff] %v6845_v0  ;;  %v6864_v13 = vrot.slane %v6763_v42, %v7554_v59  ;;  %v2566_v59 = vadd.f32 %v6715_v21, %v6798_v24  ;;  %v2574_v21 = vadd.f32 %v6730_v61, %v6773_v30  ;;  %v5633_v42 = vld [vmem:[#allocation11 + $0x128] sm:$0xff]  }
 0x276   : > { %v6851_v11 = vpop.f32.mrf.mxu0  ;;  %v6853_v14 = vpop.f32.mrf.mxu1  ;;  %v3435_v58 = vmax.f32 %v2669_v23, 0.0 }
 0x277   : > { %7552 = vst [vmem:[#allocation28_spill] sm:$0xff] %v6851_v11  ;;  %7553 = vst [vmem:[#allocation29_spill] sm:$0xff] %v6853_v14  ;;  %v2665_v14 = vadd.f32 %v6685_v36, %v2552_v19  ;;  %v5632_v36 = vld [vmem:[#allocation11 + $0x168] sm:$0xff]  }
 0x278   : > { %v6857_v18 = vpop.f32.mrf.mxu0  ;;  %v6859_v35 = vpop.f32.mrf.mxu1 }
 0x279   : > { %v3427_v3 = vmax.f32 %v2665_v14, 0.0  ;;  %v2576_v14 = vadd.f32 %v6735_v28, %v6798_v24  ;;  %v2687_v28 = vadd.f32 %v6732_v9, %v2574_v21 }
 0x27a   : > { %v2767_v33 = vpop.f32.mrf.mxu0  ;;  %4155 = vmatmul.mubr.bf16.vlgmr.msra.gmra.mxu0 %v3539_v44  ;;  %v2562_v44 = vadd.f32 %v6703_v2, %v6798_v24 }
 0x27b   : > { %v2880_v48 = vpop.f32.mrf.mxu1  ;;  %4162 = vmatprep.mubr.bf16.mxu0 %v3548_v25  ;;  %5313 = vmatpush3.bf16.msra.mxu0 %v5629_v55  ;;  %v3444_v55 = vmax.f32 %v2677_v38, 0.0  ;;  %v2768_v23 = vadd.f32 %v2767_v33, %v6871_v39  ;;  %v3547_v15 = vpack.c.bf16 %v3435_v58, %v3427_v3  ;;  %v5634_v38 = vld [vmem:[#allocation11 + $0x160] sm:$0xff]   ;;  %v2691_v33 = vadd.f32 %v6741_v31, %v2578_v6 }
 0x27c   : > { %v2769_v27 = vpop.f32.mrf.mxu0  ;;  %5314 = vmatprep.subr.bf16.mxu0 %v5630_v47  ;;  %v5635_v31 = vld [vmem:[#allocation11 + $0x120] sm:$0xff]   ;;  %v2689_v6 = vadd.f32 %v6737_v34, %v2576_v14 }
 0x27d   : > { %v2770_v19 = vadd.f32 %v2769_v27, %v6864_v13  ;;  %v2882_v16 = vpop.f32.mrf.mxu1  ;;  %v2679_v27 = vadd.f32 %v6717_v32, %v2566_v59  ;;  %v3556_v2 = vpack.c.bf16 %v3452_v51, %v3444_v55  ;;  %v2881_v0 = vadd.f32 %v2880_v48, %v2768_v23 }
 0x27e   : > { %v2771_v25 = vpop.f32.mrf.mxu0  ;;  %v2572_v32 = vadd.f32 %v6723_v43, %v6798_v24  ;;  %v3467_v14 = vmax.f32 %v2689_v6, 0.0  ;;  %v2586_v6 = vadd.f32 %v6755_v17, %v6798_v24 }
 0x27f   : > { %v2772_v5 = vadd.f32 %v2771_v25, %v6871_v39  ;;  %v2884_v47 = vpop.f32.mrf.mxu1  ;;  %5315 = vmatpush3.bf16.msra.mxu0 %v5631_v52  ;;  %v2883_v8 = vadd.f32 %v2882_v16, %v2770_v19  ;;  %v2675_v52 = vadd.f32 %v6705_v29, %v2562_v44  ;;  %v5636_v19 = vld [vmem:[#allocation11 + $0x158] sm:$0xff]   ;;  %v3468_v16 = vmax.f32 %v2691_v33, 0.0 }
 0x280   : > { %v2773_v4 = vpop.f32.mrf.mxu0  ;;  %5316 = vmatprep.subr.bf16.mxu0 %v5632_v36  ;;  %v3451_v36 = vmax.f32 %v2679_v27, 0.0  ;;  %v3413_v23 = vmax.f32 %v2881_v0, 0.0  ;;  %v5645_v0 = vld [vmem:[#allocation11 + $0x1b8] sm:$0xff]  }
 0x281   : > { %v2885_v11 = vadd.f32 %v2884_v47, %v2772_v5  ;;  %v2774_v61 = vadd.f32 %v2773_v4, %v6864_v13  ;;  %v2886_v25 = vpop.f32.mrf.mxu1  ;;  %v2588_v4 = vadd.f32 %v6759_v60, %v6773_v30  ;;  %v3414_v3 = vmax.f32 %v2883_v8, 0.0  ;;  %v5637_v8 = vld [vmem:[#allocation11 + $0x118] sm:$0xff]  }
 0x282   : > { %v2777_v58 = vpop.f32.mrf.mxu0  ;;  %4163 = vmatmul.mubr.bf16.gmra.mxu0 %v3547_v15  ;;  %v3443_v55 = vmax.f32 %v2675_v52, 0.0  ;;  %v2685_v60 = vadd.f32 %v6725_v26, %v2572_v32  ;;  %v5646_v32 = vld [vmem:[#allocation11 + $0x1f0] sm:$0xff]  }
 0x283   : > { %v2887_v59 = vadd.f32 %v2886_v25, %v2774_v61  ;;  %v2890_v51 = vpop.f32.mrf.mxu1  ;;  %4170 = vmatprep.mubr.bf16.mxu0 %v3556_v2  ;;  %5317 = vmatpush3.bf16.msra.mxu0 %v5633_v42  ;;  %v3421_v29 = vmax.f32 %v2885_v11, 0.0  ;;  %v2584_v42 = vadd.f32 %v6750_v41, %v6773_v30  ;;  %v2778_v34 = vadd.f32 %v2777_v58, %v6871_v39  ;;  %v5638_v41 = vld [vmem:[#allocation11 + $0x150] sm:$0xff]  }
 0x284   : > { %v2779_v48 = vpop.f32.mrf.mxu0  ;;  %5318 = vmatprep.subr.bf16.mxu0 %v5634_v38  ;;  %v3460_v11 = vmax.f32 %v2687_v28, 0.0  ;;  %v3555_v27 = vpack.c.bf16 %v3451_v36, %v3443_v55  ;;  %v2701_v2 = vadd.f32 %v6761_v1, %v2588_v4  ;;  %v3459_v1 = vmax.f32 %v2685_v60, 0.0 }
 0x285   : > { %v3422_v43 = vmax.f32 %v2887_v59, 0.0  ;;  %v2780_v9 = vadd.f32 %v2779_v48, %v6864_v13  ;;  %v2892_v44 = vpop.f32.mrf.mxu1  ;;  %v3541_v38 = vpack.c.bf16 %v3421_v29, %v3413_v23  ;;  %v2697_v28 = vadd.f32 %v6752_v12, %v2584_v42  ;;  %v5639_v48 = vld [vmem:[#allocation11 + $0x110] sm:$0xff]   ;;  %v5648_v42 = vld [vmem:[#allocation11 + $0x1e8] sm:$0xff]  }
 0x286   : > { %v2781_v21 = vpop.f32.mrf.mxu0  ;;  %v3564_v58 = vpack.c.bf16 %v3468_v16, %v3460_v11  ;;  %v2891_v59 = vadd.f32 %v2890_v51, %v2778_v34  ;;  %v2582_v36 = vadd.f32 %v6743_v56, %v6798_v24  ;;  %v2598_v12 = vadd.f32 %v6790_v22, %v6773_v30 }
 0x287   : > { %v2782_v5 = vadd.f32 %v2781_v21, %v6871_v39  ;;  %v2894_v47 = vpop.f32.mrf.mxu1  ;;  %v3542_v15 = vpack.c.bf16 %v3422_v43, %v3414_v3  ;;  %5319 = vmatpush3.bf16.msra.mxu0 %v5635_v31  ;;  %v2893_v61 = vadd.f32 %v2892_v44, %v2780_v9  ;;  %v5640_v3 = vld [vmem:[#allocation11 + $0x148] sm:$0xff]   ;;  %v5647_v43 = vld [vmem:[#allocation11 + $0x1b0] sm:$0xff]   ;;  %v3563_v9 = vpack.c.bf16 %v3467_v14, %v3459_v1 }
 0x288   : > { %v2783_v33 = vpop.f32.mrf.mxu0  ;;  %5320 = vmatprep.subr.bf16.mxu0 %v5636_v19  ;;  %v3484_v19 = vmax.f32 %v2701_v2, 0.0  ;;  %v3476_v23 = vmax.f32 %v2697_v28, 0.0  ;;  %v2594_v34 = vadd.f32 %v6777_v53, %v6773_v30  ;;  %v3429_v21 = vmax.f32 %v2891_v59, 0.0  ;;  %v5642_v53 = vld [vmem:[#allocation11 + $0x140] sm:$0xff]  }
 0x289   : > { %v2895_v25 = vadd.f32 %v2894_v47, %v2782_v5  ;;  %v2784_v26 = vadd.f32 %v2783_v33, %v6864_v13  ;;  %v2896_v52 = vpop.f32.mrf.mxu1  ;;  %4251 = vmatprep.mubr.bf16.mxu1 %v3542_v15  ;;  %v3430_v56 = vmax.f32 %v2893_v61, 0.0  ;;  %v2695_v11 = vadd.f32 %v6745_v54, %v2582_v36 }
 0x28a   : > { %v2787_v31 = vpop.f32.mrf.mxu0  ;;  %4171 = vmatmul.mubr.bf16.gmra.mxu0 %v3555_v27  ;;  %4252 = vmatmul.mubr.bf16.vlgmr.msra.gmra.mxu1 %v3541_v38  ;;  %v2699_v5 = vadd.f32 %v6757_v20, %v2586_v6  ;;  %v5641_v27 = vld [vmem:[#allocation11 + $0x108] sm:$0xff]   ;;  %v2711_v14 = vadd.f32 %v6792_v7, %v2598_v12  ;;  %v3572_v33 = vpack.c.bf16 %v3484_v19, %v3476_v23 }
 0x28b   : > { %v2897_v4 = vadd.f32 %v2896_v52, %v2784_v26  ;;  %v2900_v29 = vpop.f32.mrf.mxu1  ;;  %4178 = vmatprep.mubr.bf16.mxu0 %v3564_v58  ;;  %5321 = vmatpush3.bf16.msra.mxu0 %v5637_v8  ;;  %v3437_v51 = vmax.f32 %v2895_v25, 0.0  ;;  %v2788_v22 = vadd.f32 %v2787_v31, %v6871_v39  ;;  %v5650_v25 = vld [vmem:[#allocation11 + $0x1e0] sm:$0xff]   ;;  %v2707_v26 = vadd.f32 %v6779_v62, %v2594_v34 }
 0x28c   : > { %v2789_v16 = vpop.f32.mrf.mxu0  ;;  %5322 = vmatprep.subr.bf16.mxu0 %v5638_v41  ;;  %5377 = vmatpush3.bf16.msra.mxu1 %v5645_v0  ;;  %v5649_v41 = vld [vmem:[#allocation11 + $0x1a8] sm:$0xff]   ;;  %v3483_v7 = vmax.f32 %v2699_v5, 0.0  ;;  %v5643_v31 = vld [vmem:[#allocation11 + $0x100] sm:$0xff]   ;;  %v2592_v1 = vadd.f32 %v6765_v46, %v6798_v24  ;;  %v3500_v36 = vmax.f32 %v2711_v14, 0.0  ;;  %v2608_v62 = vadd.f32 %v6826_v10, %v6773_v30 }
 0x28d   : > { %v3438_v44 = vmax.f32 %v2897_v4, 0.0  ;;  %v2790_v17 = vadd.f32 %v2789_v16, %v6864_v13  ;;  %v2902_v55 = vpop.f32.mrf.mxu1  ;;  %5378 = vmatprep.subr.bf16.mxu1 %v5646_v32  ;;  %v3549_v2 = vpack.c.bf16 %v3437_v51, %v3429_v21  ;;  %v2901_v52 = vadd.f32 %v2900_v29, %v2788_v22  ;;  %v5651_v29 = vld [vmem:[#allocation11 + $0x1a0] sm:$0xff]   ;;  %v5652_v16 = vld [vmem:[#allocation11 + $0x1d8] sm:$0xff]  }
 0x28e   : > { %v2791_v60 = vpop.f32.mrf.mxu0  ;;  %v2596_v32 = vadd.f32 %v6784_v45, %v6798_v24  ;;  %v2604_v46 = vadd.f32 %v6810_v49, %v6773_v30  ;;  %v2705_v23 = vadd.f32 %v6767_v57, %v2592_v1  ;;  %v2721_v34 = vadd.f32 %v6828_v37, %v2608_v62  ;;  %v5653_v49 = vld [vmem:[#allocation11 + $0x198] sm:$0xff]  }
 0x28f   : > { %v2792_v47 = vadd.f32 %v2791_v60, %v6871_v39  ;;  %v2904_v15 = vpop.f32.mrf.mxu1  ;;  %v3550_v8 = vpack.c.bf16 %v3438_v44, %v3430_v56  ;;  %5323 = vmatpush3.bf16.msra.mxu0 %v5639_v48  ;;  %v2903_v0 = vadd.f32 %v2902_v55, %v2790_v17  ;;  %v3475_v48 = vmax.f32 %v2695_v11, 0.0 }
 0x290   : > { %v2793_v38 = vpop.f32.mrf.mxu0  ;;  %5324 = vmatprep.subr.bf16.mxu0 %v5640_v3  ;;  %5379 = vmatpush3.bf16.msra.mxu1 %v5647_v43  ;;  %v3492_v3 = vmax.f32 %v2707_v26, 0.0  ;;  %v3445_v43 = vmax.f32 %v2901_v52, 0.0  ;;  %v2709_v44 = vadd.f32 %v6786_v50, %v2596_v32  ;;  %v5654_v50 = vld [vmem:[#allocation11 + $0x1d0] sm:$0xff]   ;;  %v5656_v32 = vld [vmem:[#allocation11 + $0x1c8] sm:$0xff]  }
 0x291   : > { %v2905_v61 = vadd.f32 %v2904_v15, %v2792_v47  ;;  %v2794_v54 = vadd.f32 %v2793_v38, %v6864_v13  ;;  %v2906_v20 = vpop.f32.mrf.mxu1  ;;  %4259 = vmatprep.mubr.bf16.mxu1 %v3550_v8  ;;  %5380 = vmatprep.subr.bf16.mxu1 %v5648_v42  ;;  %v3446_v19 = vmax.f32 %v2903_v0, 0.0  ;;  %v3571_v56 = vpack.c.bf16 %v3483_v7, %v3475_v48  ;;  %v7556_v8 = vld [vmem:[#allocation23_spill] sm:$0xff] }
 0x292   : > { %v2797_v58 = vpop.f32.mrf.mxu0  ;;  %4179 = vmatmul.mubr.bf16.gmra.mxu0 %v3563_v9  ;;  %4260 = vmatmul.mubr.bf16.gmra.mxu1 %v3549_v2  ;;  %v3580_v60 = vpack.c.bf16 %v3500_v36, %v3492_v3  ;;  %v3499_v57 = vmax.f32 %v2709_v44, 0.0  ;;  %v2618_v0 = vadd.f32 %v6857_v18, %v6773_v30  ;;  %v5657_v3 = vld [vmem:[#allocation11 + $0x188] sm:$0xff]  }
 0x293   : > { %v2907_v28 = vadd.f32 %v2906_v20, %v2794_v54  ;;  %v2910_v59 = vpop.f32.mrf.mxu1  ;;  %4186 = vmatprep.mubr.bf16.mxu0 %v3572_v33  ;;  %5325 = vmatpush3.bf16.msra.mxu0 %v5641_v27  ;;  %v3453_v6 = vmax.f32 %v2905_v61, 0.0  ;;  %v2798_v10 = vadd.f32 %v2797_v58, %v6871_v39  ;;  %v2717_v27 = vadd.f32 %v7556_v8, %v2604_v46  ;;  %v7557_v33 = vld [vmem:[#allocation24_spill] sm:$0xff]  ;;  %v5655_v20 = vld [vmem:[#allocation11 + $0x190] sm:$0xff]  }
 0x294   : > { %v2799_v4 = vpop.f32.mrf.mxu0  ;;  %5326 = vmatprep.subr.bf16.mxu0 %v5642_v53  ;;  %5381 = vmatpush3.bf16.msra.mxu1 %v5649_v41  ;;  %v2606_v53 = vadd.f32 %v7557_v33, %v6798_v24  ;;  %v3516_v41 = vmax.f32 %v2721_v34, 0.0  ;;  %v7561_v34 = vld [vmem:[#allocation28_spill] sm:$0xff] }
 0x295   : > { %v3454_v45 = vmax.f32 %v2907_v28, 0.0  ;;  %v2800_v12 = vadd.f32 %v2799_v4, %v6864_v13  ;;  %v2912_v51 = vpop.f32.mrf.mxu1  ;;  %5382 = vmatprep.subr.bf16.mxu1 %v5650_v25  ;;  %v3557_v21 = vpack.c.bf16 %v3453_v6, %v3445_v43  ;;  %v2911_v14 = vadd.f32 %v2910_v59, %v2798_v10  ;;  %v7558_v28 = vld [vmem:[#allocation21_spill] sm:$0xff] }
 0x296   : > { %v2801_v9 = vpop.f32.mrf.mxu0  ;;  %v3491_v25 = vmax.f32 %v2705_v23, 0.0  ;;  %v2602_v59 = vadd.f32 %v7558_v28, %v6798_v24  ;;  %v2614_v6 = vadd.f32 %v6843_v40, %v6773_v30  ;;  %v5658_v30 = vld [vmem:[#allocation11 + $0x1c0] sm:$0xff]   ;;  %v7559_v40 = vld [vmem:[#allocation22_spill] sm:$0xff] }
 0x297   : > { %v2802_v17 = vadd.f32 %v2801_v9, %v6871_v39  ;;  %v2914_v55 = vpop.f32.mrf.mxu1  ;;  %v3558_v42 = vpack.c.bf16 %v3454_v45, %v3446_v19  ;;  %5327 = vmatpush3.bf16.msra.mxu0 %v5643_v31  ;;  %v2913_v11 = vadd.f32 %v2912_v51, %v2800_v12  ;;  %v3508_v31 = vmax.f32 %v2717_v27, 0.0  ;;  %v7562_v27 = vld [vmem:[#allocation25_spill] sm:$0xff] }
 0x298   : > { %v2803_v22 = vpop.f32.mrf.mxu0  ;;  %5383 = vmatpush3.bf16.msra.mxu1 %v5651_v29  ;;  %v3461_v1 = vmax.f32 %v2911_v14, 0.0  ;;  %v3579_v62 = vpack.c.bf16 %v3499_v57, %v3491_v25  ;;  %v2719_v19 = vadd.f32 %v6821_v63, %v2606_v53  ;;  %v2731_v45 = vadd.f32 %v6859_v35, %v2618_v0  ;;  %v7560_v63 = vld [vmem:[#allocation27_spill] sm:$0xff] }
 0x299   : > { %v2915_v5 = vadd.f32 %v2914_v55, %v2802_v17  ;;  %v2804_v47 = vadd.f32 %v2803_v22, %v6864_v13  ;;  %v2916_v15 = vpop.f32.mrf.mxu1  ;;  %4267 = vmatprep.mubr.bf16.mxu1 %v3558_v42  ;;  %5384 = vmatprep.subr.bf16.mxu1 %v5652_v16  ;;  %v3462_v26 = vmax.f32 %v2913_v11, 0.0  ;;  %v3588_v16 = vpack.c.bf16 %v3516_v41, %v3508_v31 }
 0x29a   : > { %v2807_v2 = vpop.f32.mrf.mxu0  ;;  %4187 = vmatmul.mubr.bf16.gmra.mxu0 %v3571_v56  ;;  %4268 = vmatmul.mubr.bf16.gmra.mxu1 %v3557_v21  ;;  %v2715_v56 = vadd.f32 %v7559_v40, %v2602_v59  ;;  %v2727_v35 = vadd.f32 %v7560_v63, %v2614_v6  ;;  %v3515_v23 = vmax.f32 %v2719_v19, 0.0  ;;  %v2616_v21 = vadd.f32 %v7561_v34, %v6798_v24 }
 0x29b   : > { %v2917_v37 = vadd.f32 %v2916_v15, %v2804_v47  ;;  %v2920_v38 = vpop.f32.mrf.mxu1  ;;  %4194 = vmatprep.mubr.bf16.mxu0 %v3580_v60  ;;  %v3469_v61 = vmax.f32 %v2915_v5, 0.0  ;;  %v2808_v36 = vadd.f32 %v2807_v2, %v6871_v39  ;;  %v3532_v11 = vmax.f32 %v2731_v45, 0.0 }
 0x29c   : > { %v2809_v54 = vpop.f32.mrf.mxu0  ;;  %5385 = vmatpush3.bf16.msra.mxu1 %v5653_v49  ;;  %v5659_v49 = vld [vmem:[#allocation11 + $0x180] sm:$0xff]   ;;  %v3507_v8 = vmax.f32 %v2715_v56, 0.0  ;;  %v2612_v14 = vadd.f32 %v7562_v27, %v6798_v24 }
 0x29d   : > { %v3470_v52 = vmax.f32 %v2917_v37, 0.0  ;;  %v2810_v58 = vadd.f32 %v2809_v54, %v6864_v13  ;;  %v2922_v7 = vpop.f32.mrf.mxu1  ;;  %5386 = vmatprep.subr.bf16.mxu1 %v5654_v50  ;;  %v3565_v12 = vpack.c.bf16 %v3469_v61, %v3461_v1  ;;  %v2921_v44 = vadd.f32 %v2920_v38, %v2808_v36  ;;  %v7563_v61 = vld [vmem:[#allocation29_spill] sm:$0xff] }
 0x29e   : > { %v2811_v18 = vpop.f32.mrf.mxu0  ;;  %v3524_v38 = vmax.f32 %v2727_v35, 0.0  ;;  %v3587_v0 = vpack.c.bf16 %v3515_v23, %v3507_v8  ;;  %v2729_v54 = vadd.f32 %v7563_v61, %v2616_v21 }
 0x29f   : > { %v2812_v4 = vadd.f32 %v2811_v18, %v6871_v39  ;;  %v2924_v29 = vpop.f32.mrf.mxu1  ;;  %v3566_v48 = vpack.c.bf16 %v3470_v52, %v3462_v26  ;;  %v2923_v46 = vadd.f32 %v2922_v7, %v2810_v58  ;;  %v3477_v2 = vmax.f32 %v2921_v44, 0.0 }
 0x2a0   : > { %v2813_v51 = vpop.f32.mrf.mxu0  ;;  %5387 = vmatpush3.bf16.msra.mxu1 %v5655_v20  ;;  %v3596_v7 = vpack.c.bf16 %v3532_v11, %v3524_v38  ;;  %v3531_v18 = vmax.f32 %v2729_v54, 0.0  ;;  %v7565_v11 = vld [vmem:[#allocation19_spill] sm:$0xff] }
 0x2a1   : > { %v2925_v43 = vadd.f32 %v2924_v29, %v2812_v4  ;;  %v2814_v10 = vadd.f32 %v2813_v51, %v6864_v13  ;;  %v2926_v9 = vpop.f32.mrf.mxu1  ;;  %4275 = vmatprep.mubr.bf16.mxu1 %v3566_v48  ;;  %5388 = vmatprep.subr.bf16.mxu1 %v5656_v32  ;;  %v3478_v5 = vmax.f32 %v2923_v46, 0.0  ;;  %v7564_v32 = vld [vmem:[#allocation26_spill] sm:$0xff]  ;;  %v1205_v8 = vsub.s32 4, %v7565_v11 }
 0x2a2   : > { %v2817_v17 = vpop.f32.mrf.mxu0  ;;  %4195 = vmatmul.mubr.bf16.gmra.mxu0 %v3579_v62  ;;  %4276 = vmatmul.mubr.bf16.gmra.mxu1 %v3565_v12  ;;  %v2725_v28 = vadd.f32 %v7564_v32, %v2612_v14 }
 0x2a3   : > { %v2927_v55 = vadd.f32 %v2926_v9, %v2814_v10  ;;  %v2930_v42 = vpop.f32.mrf.mxu1  ;;  %4202 = vmatprep.mubr.bf16.mxu0 %v3588_v16  ;;  %v3485_v22 = vmax.f32 %v2925_v43, 0.0  ;;  %v2818_v57 = vadd.f32 %v2817_v17, %v6871_v39 }
 0x2a4   : > { %v2819_v60 = vpop.f32.mrf.mxu0  ;;  %5389 = vmatpush3.bf16.msra.mxu1 %v5657_v3  ;;  %v3523_v45 = vmax.f32 %v2725_v28, 0.0 }
 0x2a5   : > { %v3486_v47 = vmax.f32 %v2927_v55, 0.0  ;;  %v2820_v15 = vadd.f32 %v2819_v60, %v6864_v13  ;;  %v2932_v50 = vpop.f32.mrf.mxu1  ;;  %5390 = vmatprep.subr.bf16.mxu1 %v5658_v30  ;;  %v3573_v20 = vpack.c.bf16 %v3485_v22, %v3477_v2  ;;  %v2931_v59 = vadd.f32 %v2930_v42, %v2818_v57 }
 0x2a6   : > { %v2821_v37 = vpop.f32.mrf.mxu0  ;;  %v3595_v10 = vpack.c.bf16 %v3531_v18, %v3523_v45 }
 0x2a7   : > { %v2822_v33 = vadd.f32 %v2821_v37, %v6871_v39  ;;  %v2934_v53 = vpop.f32.mrf.mxu1  ;;  %v3574_v41 = vpack.c.bf16 %v3486_v47, %v3478_v5  ;;  %v2933_v26 = vadd.f32 %v2932_v50, %v2820_v15  ;;  %v3493_v12 = vmax.f32 %v2931_v59, 0.0 }
 0x2a8   : > { %v2823_v25 = vpop.f32.mrf.mxu0  ;;  %5391 = vmatpush3.bf16.msra.mxu1 %v5659_v49  ;;  %v1209_v5 = vsub.s32 5, %v7565_v11 }
 0x2a9   : > { %v2935_v52 = vadd.f32 %v2934_v53, %v2822_v33  ;;  %v2824_v58 = vadd.f32 %v2823_v25, %v6864_v13  ;;  %v2936_v24 = vpop.f32.mrf.mxu1  ;;  %4283 = vmatprep.mubr.bf16.mxu1 %v3574_v41  ;;  %v3494_v4 = vmax.f32 %v2933_v26, 0.0 }
 0x2aa   : > { %v2827_v31 = vpop.f32.mrf.mxu0  ;;  %4203 = vmatmul.mubr.bf16.gmra.mxu0 %v3587_v0  ;;  %4284 = vmatmul.mubr.bf16.gmra.mxu1 %v3573_v20  ;;  %v7566_v0 = vld [vmem:[#allocation20_spill] sm:$0xff] }
 0x2ab   : > { %v2937_v1 = vadd.f32 %v2936_v24, %v2824_v58  ;;  %v2940_v36 = vpop.f32.mrf.mxu1  ;;  %4210 = vmatprep.mubr.bf16.mxu0 %v3596_v7  ;;  %v3501_v62 = vmax.f32 %v2935_v52, 0.0  ;;  %v2828_v51 = vadd.f32 %v2827_v31, %v6871_v39  ;;  %v6974_v61 = vrot.slane %v7566_v0, %v1209_v5 }
 0x2ac   : > { %v2829_v6 = vpop.f32.mrf.mxu0  ;;  %v6977_v20 = vrot.slane %v7566_v0, %v1205_v8 }
 0x2ad   : > { %v3502_v29 = vmax.f32 %v2937_v1, 0.0  ;;  %v2830_v48 = vadd.f32 %v2829_v6, %v6864_v13  ;;  %v2942_v19 = vpop.f32.mrf.mxu1  ;;  %v3581_v9 = vpack.c.bf16 %v3501_v62, %v3493_v12  ;;  %v2941_v63 = vadd.f32 %v2940_v36, %v2828_v51 }
 0x2ae   : > { %v2831_v16 = vpop.f32.mrf.mxu0 }
 0x2af   : > { %v2832_v3 = vadd.f32 %v2831_v16, %v6871_v39  ;;  %v2944_v46 = vpop.f32.mrf.mxu1  ;;  %v3582_v43 = vpack.c.bf16 %v3502_v29, %v3494_v4  ;;  %v2943_v40 = vadd.f32 %v2942_v19, %v2830_v48  ;;  %v3509_v47 = vmax.f32 %v2941_v63, 0.0 }
 0x2b0   : > { %v2833_v30 = vpop.f32.mrf.mxu0 }
 0x2b1   : > { %v2945_v56 = vadd.f32 %v2944_v46, %v2832_v3  ;;  %v2834_v44 = vadd.f32 %v2833_v30, %v6864_v13  ;;  %v2946_v17 = vpop.f32.mrf.mxu1  ;;  %4291 = vmatprep.mubr.bf16.mxu1 %v3582_v43  ;;  %v3510_v21 = vmax.f32 %v2943_v40, 0.0 }
 0x2b2   : > { %v2837_v35 = vpop.f32.mrf.mxu0  ;;  %4211 = vmatmul.mubr.bf16.gmra.mxu0 %v3595_v10  ;;  %4292 = vmatmul.mubr.bf16.gmra.mxu1 %v3581_v9 }
 0x2b3   : > { %v2947_v55 = vadd.f32 %v2946_v17, %v2834_v44  ;;  %v2950_v42 = vpop.f32.mrf.mxu1  ;;  %v3517_v23 = vmax.f32 %v2945_v56, 0.0  ;;  %v2838_v15 = vadd.f32 %v2837_v35, %v6871_v39 }
 0x2b4   : > { %v2839_v34 = vpop.f32.mrf.mxu0 }
 0x2b5   : > { %v3518_v22 = vmax.f32 %v2947_v55, 0.0  ;;  %v2840_v60 = vadd.f32 %v2839_v34, %v6864_v13  ;;  %v2952_v49 = vpop.f32.mrf.mxu1  ;;  %v3589_v57 = vpack.c.bf16 %v3517_v23, %v3509_v47  ;;  %v2951_v54 = vadd.f32 %v2950_v42, %v2838_v15 }
 0x2b6   : > { %v2841_v50 = vpop.f32.mrf.mxu0 }
 0x2b7   : > { %v2842_v27 = vadd.f32 %v2841_v50, %v6871_v39  ;;  %v2954_v14 = vpop.f32.mrf.mxu1  ;;  %v3590_v2 = vpack.c.bf16 %v3518_v22, %v3510_v21  ;;  %v2953_v38 = vadd.f32 %v2952_v49, %v2840_v60 }
 0x2b8   : > { %v2843_v37 = vpop.f32.mrf.mxu0 }
 0x2b9   : > { %v2955_v33 = vadd.f32 %v2954_v14, %v2842_v27  ;;  %v2844_v53 = vadd.f32 %v2843_v37, %v6864_v13  ;;  %v2956_v41 = vpop.f32.mrf.mxu1  ;;  %4299 = vmatprep.mubr.bf16.mxu1 %v3590_v2  ;;  %v3526_v24 = vmax.f32 %v2953_v38, 0.0  ;;  %v3525_v13 = vmax.f32 %v2951_v54, 0.0 }
 0x2ba   : > { %v2993_v25 = vpop.f32.mrf.mxu0  ;;  %4300 = vmatmul.mubr.bf16.gmra.mxu1 %v3589_v57 }
 0x2bb   : > { %v2957_v39 = vadd.f32 %v2956_v41, %v2844_v53  ;;  %v3533_v26 = vmax.f32 %v2955_v33, 0.0  ;;  %v2994_v28 = vadd.f32 %v2993_v25, %v6977_v20 }
 0x2bc   : > { %v3106_v52 = vpop.f32.mrf.mxu1  ;;  %v2995_v58 = vpop.f32.mrf.mxu0 }
 0x2bd   : > { %v3534_v7 = vmax.f32 %v2957_v39, 0.0  ;;  %v2996_v32 = vadd.f32 %v2995_v58, %v6974_v61  ;;  %v3597_v18 = vpack.c.bf16 %v3533_v26, %v3525_v13  ;;  %v3107_v19 = vadd.f32 %v3106_v52, %v2994_v28 }
 0x2be   : > { %v3108_v59 = vpop.f32.mrf.mxu1  ;;  %v2997_v31 = vpop.f32.mrf.mxu0 }
 0x2bf   : > { %v2998_v1 = vadd.f32 %v2997_v31, %v6977_v20  ;;  %v3598_v36 = vpack.c.bf16 %v3534_v7, %v3526_v24  ;;  %v3109_v4 = vadd.f32 %v3108_v59, %v2996_v32  ;;  %v3415_v30 = vmax.f32 %v3107_v19, 0.0 }
 0x2c0   : > { %v3110_v62 = vpop.f32.mrf.mxu1  ;;  %v2999_v6 = vpop.f32.mrf.mxu0 }
 0x2c1   : > { %v3111_v29 = vadd.f32 %v3110_v62, %v2998_v1  ;;  %v3000_v48 = vadd.f32 %v2999_v6, %v6974_v61  ;;  %4307 = vmatprep.mubr.bf16.mxu1 %v3598_v36  ;;  %v3416_v43 = vmax.f32 %v3109_v4, 0.0 }
 0x2c2   : > { %v3112_v45 = vpop.f32.mrf.mxu1  ;;  %v3003_v12 = vpop.f32.mrf.mxu0  ;;  %4308 = vmatmul.mubr.bf16.gmra.mxu1 %v3597_v18 }
 0x2c3   : > { %v3113_v51 = vadd.f32 %v3112_v45, %v3000_v48  ;;  %v3423_v16 = vmax.f32 %v3111_v29, 0.0  ;;  %v3004_v40 = vadd.f32 %v3003_v12, %v6977_v20 }
 0x2c4   : > { %v3116_v3 = vpop.f32.mrf.mxu1  ;;  %v3005_v46 = vpop.f32.mrf.mxu0 }
 0x2c5   : > { %v3424_v10 = vmax.f32 %v3113_v51, 0.0  ;;  %v3006_v9 = vadd.f32 %v3005_v46, %v6974_v61  ;;  %v3543_v35 = vpack.c.bf16 %v3423_v16, %v3415_v30  ;;  %v3117_v22 = vadd.f32 %v3116_v3, %v3004_v40 }
 0x2c6   : > { %v3118_v56 = vpop.f32.mrf.mxu1  ;;  %v3007_v44 = vpop.f32.mrf.mxu0 }
 0x2c7   : > { %v3008_v17 = vadd.f32 %v3007_v44, %v6977_v20  ;;  %v3544_v63 = vpack.c.bf16 %v3424_v10, %v3416_v43  ;;  %v3119_v23 = vadd.f32 %v3118_v56, %v3006_v9  ;;  %v3431_v2 = vmax.f32 %v3117_v22, 0.0 }
 0x2c8   : > { %v3120_v55 = vpop.f32.mrf.mxu1  ;;  %v3009_v42 = vpop.f32.mrf.mxu0 }
 0x2c9   : > { %v3121_v34 = vadd.f32 %v3120_v55, %v3008_v17  ;;  %v3010_v21 = vadd.f32 %v3009_v42, %v6974_v61  ;;  %4348 = vmatprep.mubr.bf16.mxu0 %v3544_v63  ;;  %v3432_v8 = vmax.f32 %v3119_v23, 0.0 }
 0x2ca   : > { %v3122_v60 = vpop.f32.mrf.mxu1  ;;  %v3013_v49 = vpop.f32.mrf.mxu0  ;;  %4349 = vmatmul.mubr.bf16.vlgmr.msra.gmra.mxu0 %v3543_v35 }
 0x2cb   : > { %v3123_v5 = vadd.f32 %v3122_v60, %v3010_v21  ;;  %v3439_v47 = vmax.f32 %v3121_v34, 0.0  ;;  %v3014_v57 = vadd.f32 %v3013_v49, %v6977_v20 }
 0x2cc   : > { %v3126_v15 = vpop.f32.mrf.mxu1  ;;  %v3015_v50 = vpop.f32.mrf.mxu0 }
 0x2cd   : > { %v3440_v27 = vmax.f32 %v3123_v5, 0.0  ;;  %v3016_v14 = vadd.f32 %v3015_v50, %v6974_v61  ;;  %v3551_v41 = vpack.c.bf16 %v3439_v47, %v3431_v2  ;;  %v3127_v52 = vadd.f32 %v3126_v15, %v3014_v57 }
 0x2ce   : > { %v3128_v37 = vpop.f32.mrf.mxu1  ;;  %v3017_v38 = vpop.f32.mrf.mxu0 }
 0x2cf   : > { %v3018_v33 = vadd.f32 %v3017_v38, %v6977_v20  ;;  %v3552_v53 = vpack.c.bf16 %v3440_v27, %v3432_v8  ;;  %v3129_v25 = vadd.f32 %v3128_v37, %v3016_v14  ;;  %v3447_v36 = vmax.f32 %v3127_v52, 0.0 }
 0x2d0   : > { %v3130_v0 = vpop.f32.mrf.mxu1  ;;  %v3019_v54 = vpop.f32.mrf.mxu0 }
 0x2d1   : > { %v3131_v39 = vadd.f32 %v3130_v0, %v3018_v33  ;;  %v3020_v26 = vadd.f32 %v3019_v54, %v6974_v61  ;;  %4356 = vmatprep.mubr.bf16.mxu0 %v3552_v53  ;;  %v3448_v59 = vmax.f32 %v3129_v25, 0.0 }
 0x2d2   : > { %v3132_v58 = vpop.f32.mrf.mxu1  ;;  %v3023_v24 = vpop.f32.mrf.mxu0  ;;  %4357 = vmatmul.mubr.bf16.gmra.mxu0 %v3551_v41 }
 0x2d3   : > { %v3133_v7 = vadd.f32 %v3132_v58, %v3020_v26  ;;  %v3455_v32 = vmax.f32 %v3131_v39, 0.0  ;;  %v3024_v18 = vadd.f32 %v3023_v24, %v6977_v20 }
 0x2d4   : > { %v3136_v13 = vpop.f32.mrf.mxu1  ;;  %v3025_v28 = vpop.f32.mrf.mxu0 }
 0x2d5   : > { %v3456_v31 = vmax.f32 %v3133_v7, 0.0  ;;  %v3026_v1 = vadd.f32 %v3025_v28, %v6974_v61  ;;  %v3559_v48 = vpack.c.bf16 %v3455_v32, %v3447_v36  ;;  %v3137_v3 = vadd.f32 %v3136_v13, %v3024_v18 }
 0x2d6   : > { %v3138_v62 = vpop.f32.mrf.mxu1  ;;  %v3027_v6 = vpop.f32.mrf.mxu0 }
 0x2d7   : > { %v3028_v4 = vadd.f32 %v3027_v6, %v6977_v20  ;;  %v3560_v29 = vpack.c.bf16 %v3456_v31, %v3448_v59  ;;  %v3139_v12 = vadd.f32 %v3138_v62, %v3026_v1  ;;  %v3463_v63 = vmax.f32 %v3137_v3, 0.0 }
 0x2d8   : > { %v3140_v19 = vpop.f32.mrf.mxu1  ;;  %v3029_v45 = vpop.f32.mrf.mxu0 }
 0x2d9   : > { %v3141_v51 = vadd.f32 %v3140_v19, %v3028_v4  ;;  %v3030_v16 = vadd.f32 %v3029_v45, %v6974_v61  ;;  %4364 = vmatprep.mubr.bf16.mxu0 %v3560_v29  ;;  %v3464_v56 = vmax.f32 %v3139_v12, 0.0 }
 0x2da   : > { %v3142_v46 = vpop.f32.mrf.mxu1  ;;  %v3033_v43 = vpop.f32.mrf.mxu0  ;;  %4365 = vmatmul.mubr.bf16.gmra.mxu0 %v3559_v48 }
 0x2db   : > { %v3143_v10 = vadd.f32 %v3142_v46, %v3030_v16  ;;  %v3471_v9 = vmax.f32 %v3141_v51, 0.0  ;;  %v3034_v35 = vadd.f32 %v3033_v43, %v6977_v20 }
 0x2dc   : > { %v3146_v30 = vpop.f32.mrf.mxu1  ;;  %v3035_v40 = vpop.f32.mrf.mxu0 }
 0x2dd   : > { %v3472_v44 = vmax.f32 %v3143_v10, 0.0  ;;  %v3036_v17 = vadd.f32 %v3035_v40, %v6974_v61  ;;  %v3567_v21 = vpack.c.bf16 %v3471_v9, %v3463_v63  ;;  %v3147_v15 = vadd.f32 %v3146_v30, %v3034_v35 }
 0x2de   : > { %v3148_v55 = vpop.f32.mrf.mxu1  ;;  %v3037_v42 = vpop.f32.mrf.mxu0 }
 0x2df   : > { %v3038_v23 = vadd.f32 %v3037_v42, %v6977_v20  ;;  %v3568_v34 = vpack.c.bf16 %v3472_v44, %v3464_v56  ;;  %v3149_v49 = vadd.f32 %v3148_v55, %v3036_v17  ;;  %v3479_v53 = vmax.f32 %v3147_v15, 0.0 }
 0x2e0   : > { %v3150_v22 = vpop.f32.mrf.mxu1  ;;  %v3039_v60 = vpop.f32.mrf.mxu0 }
 0x2e1   : > { %v3151_v5 = vadd.f32 %v3150_v22, %v3038_v23  ;;  %v3040_v47 = vadd.f32 %v3039_v60, %v6974_v61  ;;  %4372 = vmatprep.mubr.bf16.mxu0 %v3568_v34  ;;  %v3480_v37 = vmax.f32 %v3149_v49, 0.0  ;;  %v1217_v34 = vsub.s32 7, %v7565_v11 }
 0x2e2   : > { %v3152_v50 = vpop.f32.mrf.mxu1  ;;  %v3043_v8 = vpop.f32.mrf.mxu0  ;;  %4373 = vmatmul.mubr.bf16.gmra.mxu0 %v3567_v21 }
 0x2e3   : > { %v3153_v27 = vadd.f32 %v3152_v50, %v3040_v47  ;;  %v3487_v14 = vmax.f32 %v3151_v5, 0.0  ;;  %v3044_v41 = vadd.f32 %v3043_v8, %v6977_v20  ;;  %v1213_v5 = vsub.s32 6, %v7565_v11 }
 0x2e4   : > { %v3156_v2 = vpop.f32.mrf.mxu1  ;;  %v3045_v57 = vpop.f32.mrf.mxu0 }
 0x2e5   : > { %v3488_v38 = vmax.f32 %v3153_v27, 0.0  ;;  %v3046_v33 = vadd.f32 %v3045_v57, %v6974_v61  ;;  %v3575_v26 = vpack.c.bf16 %v3487_v14, %v3479_v53  ;;  %v3157_v13 = vadd.f32 %v3156_v2, %v3044_v41 }
 0x2e6   : > { %v3158_v0 = vpop.f32.mrf.mxu1  ;;  %v3047_v54 = vpop.f32.mrf.mxu0 }
 0x2e7   : > { %v3576_v25 = vpack.c.bf16 %v3488_v38, %v3480_v37  ;;  %v3048_v39 = vadd.f32 %v3047_v54, %v6977_v20  ;;  %v3159_v24 = vadd.f32 %v3158_v0, %v3046_v33  ;;  %v3495_v29 = vmax.f32 %v3157_v13, 0.0  ;;  %v5724_v37 = vld [vmem:[#allocation10] sm:$0xff] }
 0x2e8   : > { %v3160_v52 = vpop.f32.mrf.mxu1  ;;  %v3049_v58 = vpop.f32.mrf.mxu0  ;;  %v7013_v38 = vrot.slane %v5724_v37, %v1217_v34  ;;  %v7015_v41 = vrot.slane %v5724_v37, %v1213_v5 }
 0x2e9   : > { %v3161_v7 = vadd.f32 %v3160_v52, %v3048_v39  ;;  %v3050_v32 = vadd.f32 %v3049_v58, %v6974_v61  ;;  %4380 = vmatprep.mubr.bf16.mxu0 %v3576_v25  ;;  %v3496_v62 = vmax.f32 %v3159_v24, 0.0 }
 0x2ea   : > { %v3162_v28 = vpop.f32.mrf.mxu1  ;;  %v3053_v59 = vpop.f32.mrf.mxu0  ;;  %4381 = vmatmul.mubr.bf16.gmra.mxu0 %v3575_v26 }
 0x2eb   : > { %v3163_v31 = vadd.f32 %v3162_v28, %v3050_v32  ;;  %v3503_v1 = vmax.f32 %v3161_v7, 0.0  ;;  %v3054_v48 = vadd.f32 %v3053_v59, %v6977_v20 }
 0x2ec   : > { %v3166_v36 = vpop.f32.mrf.mxu1  ;;  %v3055_v18 = vpop.f32.mrf.mxu0 }
 0x2ed   : > { %v3504_v6 = vmax.f32 %v3163_v31, 0.0  ;;  %v3056_v4 = vadd.f32 %v3055_v18, %v6974_v61  ;;  %v3583_v16 = vpack.c.bf16 %v3503_v1, %v3495_v29  ;;  %v3167_v30 = vadd.f32 %v3166_v36, %v3054_v48 }
 0x2ee   : > { %v3168_v19 = vpop.f32.mrf.mxu1  ;;  %v3057_v45 = vpop.f32.mrf.mxu0 }
 0x2ef   : > { %v3584_v12 = vpack.c.bf16 %v3504_v6, %v3496_v62  ;;  %v3058_v51 = vadd.f32 %v3057_v45, %v6977_v20  ;;  %v3169_v43 = vadd.f32 %v3168_v19, %v3056_v4  ;;  %v3511_v21 = vmax.f32 %v3167_v30, 0.0 }
 0x2f0   : > { %v3170_v3 = vpop.f32.mrf.mxu1  ;;  %v3059_v46 = vpop.f32.mrf.mxu0 }
 0x2f1   : > { %v3171_v10 = vadd.f32 %v3170_v3, %v3058_v51  ;;  %v3060_v9 = vadd.f32 %v3059_v46, %v6974_v61  ;;  %4388 = vmatprep.mubr.bf16.mxu0 %v3584_v12  ;;  %v3512_v55 = vmax.f32 %v3169_v43, 0.0 }
 0x2f2   : > { %v3172_v40 = vpop.f32.mrf.mxu1  ;;  %v3063_v56 = vpop.f32.mrf.mxu0  ;;  %4389 = vmatmul.mubr.bf16.gmra.mxu0 %v3583_v16 }
 0x2f3   : > { %v3173_v44 = vadd.f32 %v3172_v40, %v3060_v9  ;;  %v3519_v17 = vmax.f32 %v3171_v10, 0.0  ;;  %v3064_v22 = vadd.f32 %v3063_v56, %v6977_v20 }
 0x2f4   : > { %v3176_v63 = vpop.f32.mrf.mxu1  ;;  %v3065_v35 = vpop.f32.mrf.mxu0 }
 0x2f5   : > { %v3520_v42 = vmax.f32 %v3173_v44, 0.0  ;;  %v3066_v23 = vadd.f32 %v3065_v35, %v6974_v61  ;;  %v3591_v50 = vpack.c.bf16 %v3519_v17, %v3511_v21  ;;  %v3177_v33 = vadd.f32 %v3176_v63, %v3064_v22 }
 0x2f6   : > { %v3178_v60 = vpop.f32.mrf.mxu1  ;;  %v3067_v49 = vpop.f32.mrf.mxu0 }
 0x2f7   : > { %v3592_v47 = vpack.c.bf16 %v3520_v42, %v3512_v55  ;;  %v3068_v15 = vadd.f32 %v3067_v49, %v6977_v20  ;;  %v3179_v14 = vadd.f32 %v3178_v60, %v3066_v23  ;;  %v3527_v58 = vmax.f32 %v3177_v33, 0.0 }
 0x2f8   : > { %v3180_v8 = vpop.f32.mrf.mxu1  ;;  %v3069_v27 = vpop.f32.mrf.mxu0 }
 0x2f9   : > { %v3181_v2 = vadd.f32 %v3180_v8, %v3068_v15  ;;  %v3070_v57 = vadd.f32 %v3069_v27, %v6974_v61  ;;  %4396 = vmatprep.mubr.bf16.mxu0 %v3592_v47  ;;  %v3528_v39 = vmax.f32 %v3179_v14, 0.0 }
 0x2fa   : > { %v3182_v53 = vpop.f32.mrf.mxu1  ;;  %v3219_v0 = vpop.f32.mrf.mxu0  ;;  %4397 = vmatmul.mubr.bf16.gmra.mxu0 %v3591_v50 }
 0x2fb   : > { %v3183_v11 = vadd.f32 %v3182_v53, %v3070_v57  ;;  %v3535_v54 = vmax.f32 %v3181_v2, 0.0  ;;  %v3220_v61 = vadd.f32 %v3219_v0, %v7015_v41 }
 0x2fc   : > { %v3332_v20 = vpop.f32.mrf.mxu1  ;;  %v3221_v25 = vpop.f32.mrf.mxu0 }
 0x2fd   : > { %v3536_v26 = vmax.f32 %v3183_v11, 0.0  ;;  %v3222_v52 = vadd.f32 %v3221_v25, %v7013_v38  ;;  %v3599_v28 = vpack.c.bf16 %v3535_v54, %v3527_v58  ;;  %v3333_v62 = vadd.f32 %v3332_v20, %v3220_v61 }
 0x2fe   : > { %v3334_v24 = vpop.f32.mrf.mxu1  ;;  %v3223_v7 = vpop.f32.mrf.mxu0 }
 0x2ff   : > { %v3600_v32 = vpack.c.bf16 %v3536_v26, %v3528_v39  ;;  %v3224_v13 = vadd.f32 %v3223_v7, %v7015_v41  ;;  %v3335_v1 = vadd.f32 %v3334_v24, %v3222_v52  ;;  %v3417_v3 = vmax.f32 %v3333_v62, 0.0 }
 0x300   : > { %v3336_v59 = vpop.f32.mrf.mxu1  ;;  %v3225_v31 = vpop.f32.mrf.mxu0 }
 0x301   : > { %v3337_v36 = vadd.f32 %v3336_v59, %v3224_v13  ;;  %v3226_v18 = vadd.f32 %v3225_v31, %v7013_v38  ;;  %4404 = vmatprep.mubr.bf16.mxu0 %v3600_v32  ;;  %v3418_v12 = vmax.f32 %v3335_v1, 0.0 }
 0x302   : > { %v3338_v6 = vpop.f32.mrf.mxu1  ;;  %v3229_v4 = vpop.f32.mrf.mxu0  ;;  %4405 = vmatmul.mubr.bf16.gmra.mxu0 %v3599_v28 }
 0x303   : > { %v3339_v29 = vadd.f32 %v3338_v6, %v3226_v18  ;;  %v3425_v48 = vmax.f32 %v3337_v36, 0.0  ;;  %v3230_v46 = vadd.f32 %v3229_v4, %v7015_v41 }
 0x304   : > { %v3342_v19 = vpop.f32.mrf.mxu1  ;;  %v3231_v45 = vpop.f32.mrf.mxu0 }
 0x305   : > { %v3426_v51 = vmax.f32 %v3339_v29, 0.0  ;;  %v3232_v16 = vadd.f32 %v3231_v45, %v7013_v38  ;;  %v3545_v40 = vpack.c.bf16 %v3425_v48, %v3417_v3  ;;  %v3343_v55 = vadd.f32 %v3342_v19, %v3230_v46 }
 0x306   : > { %v3344_v43 = vpop.f32.mrf.mxu1  ;;  %v3233_v10 = vpop.f32.mrf.mxu0 }
 0x307   : > { %v3546_v9 = vpack.c.bf16 %v3426_v51, %v3418_v12  ;;  %v3234_v30 = vadd.f32 %v3233_v10, %v7015_v41  ;;  %v3345_v17 = vadd.f32 %v3344_v43, %v3232_v16  ;;  %v3433_v15 = vmax.f32 %v3343_v55, 0.0 }
 0x308   : > { %v3346_v56 = vpop.f32.mrf.mxu1  ;;  %v3235_v44 = vpop.f32.mrf.mxu0 }
 0x309   : > { %v3347_v63 = vadd.f32 %v3346_v56, %v3234_v30  ;;  %v3236_v35 = vadd.f32 %v3235_v44, %v7013_v38  ;;  %4445 = vmatprep.mubr.bf16.mxu1 %v3546_v9  ;;  %v3434_v49 = vmax.f32 %v3345_v17, 0.0 }
 0x30a   : > { %v3348_v42 = vpop.f32.mrf.mxu1  ;;  %v3239_v23 = vpop.f32.mrf.mxu0  ;;  %4446 = vmatmul.mubr.bf16.vlgmr.msra.gmra.mxu1 %v3545_v40 }
 0x30b   : > { %v3349_v34 = vadd.f32 %v3348_v42, %v3236_v35  ;;  %v3441_v21 = vmax.f32 %v3347_v63, 0.0  ;;  %v3240_v50 = vadd.f32 %v3239_v23, %v7015_v41 }
 0x30c   : > { %v3352_v22 = vpop.f32.mrf.mxu1  ;;  %v3241_v60 = vpop.f32.mrf.mxu0 }
 0x30d   : > { %v3442_v5 = vmax.f32 %v3349_v34, 0.0  ;;  %v3242_v47 = vadd.f32 %v3241_v60, %v7013_v38  ;;  %v3553_v57 = vpack.c.bf16 %v3441_v21, %v3433_v15  ;;  %v3353_v54 = vadd.f32 %v3352_v22, %v3240_v50 }
 0x30e   : > { %v3354_v8 = vpop.f32.mrf.mxu1  ;;  %v3243_v27 = vpop.f32.mrf.mxu0 }
 0x30f   : > { %v3554_v14 = vpack.c.bf16 %v3442_v5, %v3434_v49  ;;  %v3244_v2 = vadd.f32 %v3243_v27, %v7015_v41  ;;  %v3355_v53 = vadd.f32 %v3354_v8, %v3242_v47  ;;  %v3449_v32 = vmax.f32 %v3353_v54, 0.0 }
 0x310   : > { %v3356_v37 = vpop.f32.mrf.mxu1  ;;  %v3245_v33 = vpop.f32.mrf.mxu0 }
 0x311   : > { %v3357_v0 = vadd.f32 %v3356_v37, %v3244_v2  ;;  %v3246_v11 = vadd.f32 %v3245_v33, %v7013_v38  ;;  %4453 = vmatprep.mubr.bf16.mxu1 %v3554_v14  ;;  %v3450_v61 = vmax.f32 %v3355_v53, 0.0 }
 0x312   : > { %v3358_v20 = vpop.f32.mrf.mxu1  ;;  %v3249_v25 = vpop.f32.mrf.mxu0  ;;  %4454 = vmatmul.mubr.bf16.gmra.mxu1 %v3553_v57 }
 0x313   : > { %v3359_v39 = vadd.f32 %v3358_v20, %v3246_v11  ;;  %v3457_v26 = vmax.f32 %v3357_v0, 0.0  ;;  %v3250_v13 = vadd.f32 %v3249_v25, %v7015_v41 }
 0x314   : > { %v3362_v52 = vpop.f32.mrf.mxu1  ;;  %v3251_v58 = vpop.f32.mrf.mxu0 }
 0x315   : > { %v3458_v24 = vmax.f32 %v3359_v39, 0.0  ;;  %v3252_v7 = vadd.f32 %v3251_v58, %v7013_v38  ;;  %v3561_v36 = vpack.c.bf16 %v3457_v26, %v3449_v32  ;;  %v3363_v48 = vadd.f32 %v3362_v52, %v3250_v13 }
 0x316   : > { %v3364_v28 = vpop.f32.mrf.mxu1  ;;  %v3253_v59 = vpop.f32.mrf.mxu0 }
 0x317   : > { %v3562_v31 = vpack.c.bf16 %v3458_v24, %v3450_v61  ;;  %v3254_v1 = vadd.f32 %v3253_v59, %v7015_v41  ;;  %v3365_v6 = vadd.f32 %v3364_v28, %v3252_v7  ;;  %v3465_v9 = vmax.f32 %v3363_v48, 0.0 }
 0x318   : > { %v3366_v18 = vpop.f32.mrf.mxu1  ;;  %v3255_v62 = vpop.f32.mrf.mxu0 }
 0x319   : > { %v3367_v4 = vadd.f32 %v3366_v18, %v3254_v1  ;;  %v3256_v29 = vadd.f32 %v3255_v62, %v7013_v38  ;;  %4461 = vmatprep.mubr.bf16.mxu1 %v3562_v31  ;;  %v3466_v46 = vmax.f32 %v3365_v6, 0.0 }
 0x31a   : > { %v3368_v19 = vpop.f32.mrf.mxu1  ;;  %v3259_v45 = vpop.f32.mrf.mxu0  ;;  %4462 = vmatmul.mubr.bf16.gmra.mxu1 %v3561_v36 }
 0x31b   : > { %v3369_v12 = vadd.f32 %v3368_v19, %v3256_v29  ;;  %v3473_v51 = vmax.f32 %v3367_v4, 0.0  ;;  %v3260_v30 = vadd.f32 %v3259_v45, %v7015_v41 }
 0x31c   : > { %v3372_v16 = vpop.f32.mrf.mxu1  ;;  %v3261_v3 = vpop.f32.mrf.mxu0 }
 0x31d   : > { %v3474_v43 = vmax.f32 %v3369_v12, 0.0  ;;  %v3262_v10 = vadd.f32 %v3261_v3, %v7013_v38  ;;  %v3569_v63 = vpack.c.bf16 %v3473_v51, %v3465_v9  ;;  %v3373_v21 = vadd.f32 %v3372_v16, %v3260_v30 }
 0x31e   : > { %v3374_v40 = vpop.f32.mrf.mxu1  ;;  %v3263_v56 = vpop.f32.mrf.mxu0 }
 0x31f   : > { %v3570_v44 = vpack.c.bf16 %v3474_v43, %v3466_v46  ;;  %v3264_v17 = vadd.f32 %v3263_v56, %v7015_v41  ;;  %v3375_v42 = vadd.f32 %v3374_v40, %v3262_v10  ;;  %v3481_v14 = vmax.f32 %v3373_v21, 0.0 }
 0x320   : > { %v3376_v35 = vpop.f32.mrf.mxu1  ;;  %v3265_v55 = vpop.f32.mrf.mxu0 }
 0x321   : > { %v3377_v23 = vadd.f32 %v3376_v35, %v3264_v17  ;;  %v3266_v34 = vadd.f32 %v3265_v55, %v7013_v38  ;;  %4469 = vmatprep.mubr.bf16.mxu1 %v3570_v44  ;;  %v3482_v50 = vmax.f32 %v3375_v42, 0.0 }
 0x322   : > { %v3378_v22 = vpop.f32.mrf.mxu1  ;;  %v3269_v60 = vpop.f32.mrf.mxu0  ;;  %4470 = vmatmul.mubr.bf16.gmra.mxu1 %v3569_v63 }
 0x323   : > { %v3379_v49 = vadd.f32 %v3378_v22, %v3266_v34  ;;  %v3489_v5 = vmax.f32 %v3377_v23, 0.0  ;;  %v3270_v2 = vadd.f32 %v3269_v60, %v7015_v41 }
 0x324   : > { %v3382_v47 = vpop.f32.mrf.mxu1  ;;  %v3271_v15 = vpop.f32.mrf.mxu0 }
 0x325   : > { %v3490_v8 = vmax.f32 %v3379_v49, 0.0  ;;  %v3272_v27 = vadd.f32 %v3271_v15, %v7013_v38  ;;  %v3577_v0 = vpack.c.bf16 %v3489_v5, %v3481_v14  ;;  %v3383_v26 = vadd.f32 %v3382_v47, %v3270_v2 }
 0x326   : > { %v3384_v57 = vpop.f32.mrf.mxu1  ;;  %v3273_v37 = vpop.f32.mrf.mxu0 }
 0x327   : > { %v3578_v33 = vpack.c.bf16 %v3490_v8, %v3482_v50  ;;  %v3274_v53 = vadd.f32 %v3273_v37, %v7015_v41  ;;  %v3385_v20 = vadd.f32 %v3384_v57, %v3272_v27  ;;  %v3497_v31 = vmax.f32 %v3383_v26, 0.0 }
 0x328   : > { %v3386_v11 = vpop.f32.mrf.mxu1  ;;  %v3275_v54 = vpop.f32.mrf.mxu0 }
 0x329   : > { %v3387_v25 = vadd.f32 %v3386_v11, %v3274_v53  ;;  %v3276_v39 = vadd.f32 %v3275_v54, %v7013_v38  ;;  %4477 = vmatprep.mubr.bf16.mxu1 %v3578_v33  ;;  %v3498_v13 = vmax.f32 %v3385_v20, 0.0 }
 0x32a   : > { %v3388_v52 = vpop.f32.mrf.mxu1  ;;  %v3279_v58 = vpop.f32.mrf.mxu0  ;;  %4478 = vmatmul.mubr.bf16.gmra.mxu1 %v3577_v0 }
 0x32b   : > { %v3389_v61 = vadd.f32 %v3388_v52, %v3276_v39  ;;  %v3505_v24 = vmax.f32 %v3387_v25, 0.0  ;;  %v3280_v1 = vadd.f32 %v3279_v58, %v7015_v41 }
 0x32c   : > { %v3392_v7 = vpop.f32.mrf.mxu1  ;;  %v3281_v32 = vpop.f32.mrf.mxu0 }
 0x32d   : > { %v3506_v28 = vmax.f32 %v3389_v61, 0.0  ;;  %v3282_v59 = vadd.f32 %v3281_v32, %v7013_v38  ;;  %v3585_v4 = vpack.c.bf16 %v3505_v24, %v3497_v31  ;;  %v3393_v51 = vadd.f32 %v3392_v7, %v3280_v1 }
 0x32e   : > { %v3394_v36 = vpop.f32.mrf.mxu1  ;;  %v3283_v18 = vpop.f32.mrf.mxu0 }
 0x32f   : > { %v3586_v62 = vpack.c.bf16 %v3506_v28, %v3498_v13  ;;  %v3284_v6 = vadd.f32 %v3283_v18, %v7015_v41  ;;  %v3395_v19 = vadd.f32 %v3394_v36, %v3282_v59  ;;  %v3513_v44 = vmax.f32 %v3393_v51, 0.0 }
 0x330   : > { %v3396_v29 = vpop.f32.mrf.mxu1  ;;  %v3285_v48 = vpop.f32.mrf.mxu0 }
 0x331   : > { %v3397_v45 = vadd.f32 %v3396_v29, %v3284_v6  ;;  %v3286_v12 = vadd.f32 %v3285_v48, %v7013_v38  ;;  %4485 = vmatprep.mubr.bf16.mxu1 %v3586_v62  ;;  %v3514_v30 = vmax.f32 %v3395_v19, 0.0 }
 0x332   : > { %v3398_v16 = vpop.f32.mrf.mxu1  ;;  %v3289_v3 = vpop.f32.mrf.mxu0  ;;  %4486 = vmatmul.mubr.bf16.gmra.mxu1 %v3585_v4 }
 0x333   : > { %v3399_v46 = vadd.f32 %v3398_v16, %v3286_v12  ;;  %v3521_v43 = vmax.f32 %v3397_v45, 0.0  ;;  %v3290_v17 = vadd.f32 %v3289_v3, %v7015_v41 }
 0x334   : > { %v3402_v10 = vpop.f32.mrf.mxu1  ;;  %v3291_v9 = vpop.f32.mrf.mxu0 }
 0x335   : > { %v3522_v40 = vmax.f32 %v3399_v46, 0.0  ;;  %v3292_v56 = vadd.f32 %v3291_v9, %v7013_v38  ;;  %v3593_v23 = vpack.c.bf16 %v3521_v43, %v3513_v44  ;;  %v3403_v5 = vadd.f32 %v3402_v10, %v3290_v17 }
 0x336   : > { %v3404_v63 = vpop.f32.mrf.mxu1  ;;  %v3293_v35 = vpop.f32.mrf.mxu0 }
 0x337   : > { %v3594_v55 = vpack.c.bf16 %v3522_v40, %v3514_v30  ;;  %v3294_v42 = vadd.f32 %v3293_v35, %v7015_v41  ;;  %v3405_v22 = vadd.f32 %v3404_v63, %v3292_v56  ;;  %v3529_v41 = vmax.f32 %v3403_v5, 0.0 }
 0x338   : > { %v3406_v34 = vpop.f32.mrf.mxu1  ;;  %v3295_v21 = vpop.f32.mrf.mxu0 }
 0x339   : > { %v3407_v60 = vadd.f32 %v3406_v34, %v3294_v42  ;;  %v3296_v49 = vadd.f32 %v3295_v21, %v7013_v38  ;;  %4493 = vmatprep.mubr.bf16.mxu1 %v3594_v55  ;;  %v3530_v14 = vmax.f32 %v3405_v22, 0.0 }
 0x33a   : > { %v3408_v47 = vpop.f32.mrf.mxu1  ;;  %v7049_v15 = vpop.f32.mrf.mxu0  ;;  %4494 = vmatmul.mubr.bf16.gmra.mxu1 %v3593_v23 }
 0x33b   : > { %v3409_v50 = vadd.f32 %v3408_v47, %v3296_v49  ;;  %v3537_v8 = vmax.f32 %v3407_v60, 0.0 }
 0x33c   : > { %v7051_v27 = vpop.f32.mrf.mxu0 }
 0x33d   : > { %v3538_v2 = vmax.f32 %v3409_v50, 0.0  ;;  %v3601_v33 = vpack.c.bf16 %v3537_v8, %v3529_v41 }
 0x33e   : > { %v7053_v57 = vpop.f32.mrf.mxu0 }
 0x33f   : > { %v3602_v37 = vpack.c.bf16 %v3538_v2, %v3530_v14 }
 0x340   : > { %v7055_v53 = vpop.f32.mrf.mxu0 }
 0x341   : > { %4501 = vmatprep.mubr.bf16.mxu1 %v3602_v37 }
 0x342   : > { %v7057_v38 = vpop.f32.mrf.mxu0  ;;  %4502 = vmatmul.mubr.bf16.gmra.mxu1 %v3601_v33 }
 0x344   : > { %v7059_v0 = vpop.f32.mrf.mxu0 }
 0x346   : > { %v7061_v11 = vpop.f32.mrf.mxu0 }
 0x348   : > { %v7063_v54 = vpop.f32.mrf.mxu0 }
 0x34a   : > { %v7065_v20 = vpop.f32.mrf.mxu0  ;;  %v7067_v25 = vpop.f32.mrf.mxu1 }
 0x34c   : > { %v7069_v39 = vpop.f32.mrf.mxu0  ;;  %v7073_v52 = vpop.f32.mrf.mxu1 }
 0x34e   : > { %v7071_v26 = vpop.f32.mrf.mxu0  ;;  %v7079_v24 = vpop.f32.mrf.mxu1 }
 0x350   : > { %v7075_v58 = vpop.f32.mrf.mxu0  ;;  %v7085_v13 = vpop.f32.mrf.mxu1 }
 0x352   : > { %v7077_v61 = vpop.f32.mrf.mxu0  ;;  %v7091_v31 = vpop.f32.mrf.mxu1 }
 0x354   : > { %v7081_v7 = vpop.f32.mrf.mxu0  ;;  %v7097_v18 = vpop.f32.mrf.mxu1 }
 0x356   : > { %v7083_v32 = vpop.f32.mrf.mxu0  ;;  %v7103_v4 = vpop.f32.mrf.mxu1 }
 0x358   : > { %v7087_v28 = vpop.f32.mrf.mxu0  ;;  %v7109_v19 = vpop.f32.mrf.mxu1 }
 0x35a   : > { %v7089_v59 = vpop.f32.mrf.mxu0  ;;  %v7113_v12 = vpop.f32.mrf.mxu1 }
 0x35c   : > { %v7093_v1 = vpop.f32.mrf.mxu0  ;;  %v7117_v16 = vpop.f32.mrf.mxu1 }
 0x35e   : > { %v7095_v36 = vpop.f32.mrf.mxu0  ;;  %v7121_v46 = vpop.f32.mrf.mxu1 }
 0x35f   : > { %7567 = vst [vmem:[#allocation23_spill] sm:$0xff] %v7095_v36 }
 0x360   : > { %v7099_v62 = vpop.f32.mrf.mxu0  ;;  %v7125_v10 = vpop.f32.mrf.mxu1 }
 0x361   : > { %7568 = vst [vmem:[#allocation24_spill] sm:$0xff] %v7099_v62 }
 0x362   : > { %v7101_v6 = vpop.f32.mrf.mxu0  ;;  %v7129_v30 = vpop.f32.mrf.mxu1 }
 0x363   : > { %7569 = vst [vmem:[#allocation21_spill] sm:$0xff] %v7101_v6 }
 0x364   : > { %v7105_v29 = vpop.f32.mrf.mxu0  ;;  %v7133_v56 = vpop.f32.mrf.mxu1 }
 0x365   : > { %7570 = vst [vmem:[#allocation22_spill] sm:$0xff] %v7105_v29 }
 0x366   : > { %v7107_v48 = vpop.f32.mrf.mxu0  ;;  %v7137_v17 = vpop.f32.mrf.mxu1 }
 0x367   : > { %7571 = vst [vmem:[#allocation27_spill] sm:$0xff] %v7107_v48 }
 0x368   : > { %v7111_v45 = vpop.f32.mrf.mxu0  ;;  %v7141_v35 = vpop.f32.mrf.mxu1 }
 0x369   : > { %7572 = vst [vmem:[#allocation28_spill] sm:$0xff] %v7111_v45 }
 0x36a   : > { %v7115_v51 = vpop.f32.mrf.mxu0  ;;  %v7145_v23 = vpop.f32.mrf.mxu1 }
 0x36b   : > { %7573 = vst [vmem:[#allocation25_spill] sm:$0xff] %v7115_v51 }
 0x36c   : > { %v7119_v3 = vpop.f32.mrf.mxu0  ;;  %v7147_v22 = vpop.f32.mrf.mxu1 }
 0x36d   : > { %7574 = vst [vmem:[#allocation29_spill] sm:$0xff] %v7119_v3 }
 0x36e   : > { %v7123_v43 = vpop.f32.mrf.mxu0  ;;  %v7149_v49 = vpop.f32.mrf.mxu1 }
 0x36f   : > { %7575 = vst [vmem:[#allocation26_spill] sm:$0xff] %v7123_v43  ;;  %7581 = vst [vmem:[#allocation33_spill] sm:$0xff] %v7149_v49  ;;  %v5269_v49 = vadd.f32 %v7085_v13, %v7079_v24 }
 0x370   : > { %v7127_v9 = vpop.f32.mrf.mxu0  ;;  %v7151_v47 = vpop.f32.mrf.mxu1 }
 0x371   : > { %7576 = vst [vmem:[#allocation19_spill] sm:$0xff] %v7127_v9  ;;  %7582 = vst [vmem:[#allocation34_spill] sm:$0xff] %v7151_v47 }
 0x372   : > { %v7131_v40 = vpop.f32.mrf.mxu0  ;;  %v7153_v8 = vpop.f32.mrf.mxu1 }
 0x373   : > { %7577 = vst [vmem:[#allocation20_spill] sm:$0xff] %v7131_v40  ;;  %7583 = vst [vmem:[#allocation35_spill] sm:$0xff] %v7153_v8 }
 0x374   : > { %v7135_v44 = vpop.f32.mrf.mxu0  ;;  %v7155_v2 = vpop.f32.mrf.mxu1 }
 0x375   : > { %7578 = vst [vmem:[#allocation30_spill] sm:$0xff] %v7135_v44  ;;  %7584 = vst [vmem:[#allocation36_spill] sm:$0xff] %v7155_v2 }
 0x376   : > { %v7139_v63 = vpop.f32.mrf.mxu0  ;;  %v7157_v37 = vpop.f32.mrf.mxu1 }
 0x377   : > { %7579 = vst [vmem:[#allocation31_spill] sm:$0xff] %v7139_v63  ;;  %7585 = vst [vmem:[#allocation37_spill] sm:$0xff] %v7157_v37 }
 0x378   : > { %v7143_v55 = vpop.f32.mrf.mxu0 }
 0x379   : > { %7580 = vst [vmem:[#allocation32_spill] sm:$0xff] %v7143_v55  ;;  %v7161_v55 = vpop.f32.mrf.mxu1 }
 0x37a   : > { %7586 = vst [vmem:[#allocation38_spill] sm:$0xff] %v7161_v55 }
 0x37b   : > { %v7165_v44 = vpop.f32.mrf.mxu1 }
 0x37c   : > { %7587 = vst [vmem:[#allocation39_spill] sm:$0xff] %v7165_v44 }
 0x37d   : > { %v7169_v9 = vpop.f32.mrf.mxu1 }
 0x37e   : > { %7588 = vst [vmem:[#allocation40_spill] sm:$0xff] %v7169_v9  ;;  %v5202_v9 = vadd.f32 %v7051_v27, %v7049_v15 }
 0x37f   : > { %v7173_v3 = vpop.f32.mrf.mxu1 }
 0x380   : > { %7589 = vst [vmem:[#allocation41_spill] sm:$0xff] %v7173_v3  ;;  %v7196_v3 = vld [vmem:[%s7511_s6] ss:$0 sm:$0xff] }
 0x381   : > { %v7177_v45 = vpop.f32.mrf.mxu1 }
 0x382   : > { %7590 = vst [vmem:[#allocation42_spill] sm:$0xff] %v7177_v45 }
 0x383   : > { %v7181_v48 = vpop.f32.mrf.mxu1 }
 0x384   : > { %7591 = vst [vmem:[#allocation43_spill] sm:$0xff] %v7181_v48  ;;  %v5266_v48 = vadd.f32 %v7073_v52, %v7067_v25 }
 0x385   : > { %v7185_v2 = vpop.f32.mrf.mxu1 }
 0x386   : > { %7592 = vst [vmem:[#allocation44_spill] sm:$0xff] %v7185_v2  ;;  %v4157_v2 = vadd.f32 %v5202_v9, %v7196_v3 }
 0x387   : > { %v7189_v8 = vpop.f32.mrf.mxu1 }
 0x388   : > { %7593 = vst [vmem:[#allocation45_spill] sm:$0xff] %v7189_v8  ;;  %v5205_v8 = vadd.f32 %v7055_v53, %v7053_v57  ;;  %v4254_v27 = vadd.f32 %v5266_v48, %v4157_v2 }
 0x389   : > { %v7202_v29 = vpop.f32.mrf.mxu1 }
 0x38a   : > { %v5328_v42 = vpop.f32.mrf.mxu0  ;;  %7595 = vst [vmem:[#allocation47_spill] sm:$0xff] %v7202_v29  ;;  %v4160_v25 = vadd.f32 %v5205_v8, %v7196_v3 }
 0x38c   : > { %v5329_v34 = vpop.f32.mrf.mxu0  ;;  %v4257_v53 = vadd.f32 %v5269_v49, %v4160_v25 }
 0x38d   : > { %v5330_v6 = vadd.f32 %v5329_v34, %v5328_v42  ;;  %v5272_v42 = vadd.f32 %v7097_v18, %v7091_v31  ;;  %v5275_v31 = vadd.f32 %v7109_v19, %v7103_v4  ;;  %v5278_v4 = vadd.f32 %v7117_v16, %v7113_v12 }
 0x38e   : > { %v5331_v21 = vpop.f32.mrf.mxu0  ;;  %v5281_v12 = vadd.f32 %v7125_v10, %v7121_v46  ;;  %v5284_v46 = vadd.f32 %v7133_v56, %v7129_v30  ;;  %v5287_v30 = vadd.f32 %v7141_v35, %v7137_v17  ;;  %v5290_v17 = vadd.f32 %v7147_v22, %v7145_v23  ;;  %v7600_v23 = vld [vmem:[#allocation34_spill] sm:$0xff] }
 0x38f   : > { %v4351_v52 = vadd.f32 %v5330_v6, %v4254_v27 }
 0x390   : > { %v5332_v60 = vpop.f32.mrf.mxu0 }
 0x391   : > { %v5333_v29 = vadd.f32 %v5332_v60, %v5331_v21 }
 0x392   : > { %v5334_v5 = vpop.f32.mrf.mxu0 }
 0x394   : > { %v5335_v50 = vpop.f32.mrf.mxu0 }
 0x395   : > { %v5336_v34 = vadd.f32 %v5335_v50, %v5334_v5 }
 0x396   : > { %v5337_v14 = vpop.f32.mrf.mxu0 }
 0x398   : > { %v5338_v41 = vpop.f32.mrf.mxu0 }
 0x39a   : > { %v7159_v33 = vpop.f32.mrf.mxu0 }
 0x39c   : > { %v7163_v63 = vpop.f32.mrf.mxu0 }
 0x39e   : > { %v7167_v40 = vpop.f32.mrf.mxu0 }
 0x3a0   : > { %v7171_v43 = vpop.f32.mrf.mxu0 }
 0x3a2   : > { %v7175_v51 = vpop.f32.mrf.mxu0 }
 0x3a4   : > { %v7179_v37 = vpop.f32.mrf.mxu0 }
 0x3a6   : > { %v7183_v55 = vpop.f32.mrf.mxu0 }
 0x3a8   : > { %v7187_v44 = vpop.f32.mrf.mxu0 }
 0x3aa   : > { %v7198_v45 = vpop.f32.mrf.mxu0 }
 0x3ab   : > { %7594 = vst [vmem:[#allocation46_spill] sm:$0xff] %v7198_v45  ;;  %v5208_v45 = vadd.f32 %v7059_v0, %v7057_v38  ;;  %v5211_v38 = vadd.f32 %v7063_v54, %v7061_v11  ;;  %v4354_v0 = vadd.f32 %v5333_v29, %v4257_v53  ;;  %v5339_v29 = vadd.f32 %v5338_v41, %v5337_v14 }
 0x3ac   : > { %v7207_v47 = vpop.f32.mrf.mxu0  ;;  %v5342_v14 = vadd.f32 %v7163_v63, %v7159_v33  ;;  %v5345_v63 = vadd.f32 %v7171_v43, %v7167_v40  ;;  %v5348_v43 = vadd.f32 %v7179_v37, %v7175_v51  ;;  %v5351_v51 = vadd.f32 %v7187_v44, %v7183_v55 }
 0x3ad   : > { %v4165_v24 = vadd.f32 %v5208_v45, %v7196_v3  ;;  %v5214_v45 = vadd.f32 %v7069_v39, %v7065_v20  ;;  %v4168_v11 = vadd.f32 %v5211_v38, %v7196_v3  ;;  %v5217_v39 = vadd.f32 %v7075_v58, %v7071_v26 }
 0x3ae   : > { %v7214_v36 = vpop.f32.mrf.mxu0  ;;  %v5223_v38 = vadd.f32 %v7087_v28, %v7083_v32 }
 0x3af   : > { %v4262_v60 = vadd.f32 %v5272_v42, %v4165_v24  ;;  %v4265_v2 = vadd.f32 %v5275_v31, %v4168_v11  ;;  %v4176_v58 = vadd.f32 %v5217_v39, %v7196_v3  ;;  %v7599_v39 = vld [vmem:[#allocation33_spill] sm:$0xff] }
 0x3b0   : > { %v4184_v32 = vadd.f32 %v5223_v38, %v7196_v3  ;;  %v5293_v22 = vadd.f32 %v7600_v23, %v7599_v39  ;;  %v7605_v38 = vld [vmem:[#allocation27_spill] sm:$0xff] }
 0x3b1   : > { %v4359_v54 = vadd.f32 %v5336_v34, %v4262_v60  ;;  %v4362_v27 = vadd.f32 %v5339_v29, %v4265_v2  ;;  %v5226_v60 = vadd.f32 %v7093_v1, %v7089_v59  ;;  %v7597_v29 = vld [vmem:[#allocation24_spill] sm:$0xff]  ;;  %v7614_v39 = vld [vmem:[#allocation19_spill] sm:$0xff] }
 0x3b2   : > { %v4281_v11 = vadd.f32 %v5287_v30, %v4184_v32  ;;  %v7598_v2 = vld [vmem:[#allocation46_spill] sm:$0xff] }
 0x3b3   : > { %v4189_v59 = vadd.f32 %v5226_v60, %v7196_v3  ;;  %v5354_v44 = vadd.f32 %v7207_v47, %v7598_v2  ;;  %v7607_v60 = vld [vmem:[#allocation37_spill] sm:$0xff] }
 0x3ca   : > { %v5392_v15 = vpop.f32.mrf.mxu1 }
 0x3cc   : > { %v5393_v62 = vpop.f32.mrf.mxu1 }
 0x3cd   : > { %v5394_v9 = vadd.f32 %v5393_v62, %v5392_v15  ;;  %v7224_v62 = vpop.f32.mrf.mxu0  ;;  %v4173_v15 = vadd.f32 %v5214_v45, %v7196_v3 }
 0x3ce   : > { %v5395_v57 = vpop.f32.mrf.mxu1  ;;  %v5357_v47 = vadd.f32 %v7224_v62, %v7214_v36 }
 0x3cf   : > { %v7218_v48 = vadd.f32 %v5394_v9, %v4351_v52  ;;  %v7234_v50 = vpop.f32.mrf.mxu0  ;;  %v4270_v9 = vadd.f32 %v5278_v4, %v4173_v15 }
 0x3d0   : > { %v5396_v13 = vpop.f32.mrf.mxu1 }
 0x3d1   : > { %v5397_v6 = vadd.f32 %v5396_v13, %v5395_v57  ;;  %4510 = vmax.xlane.f32.xlu0 %v7218_v48  ;;  %v7246_v25 = vpop.f32.mrf.mxu0  ;;  %v5220_v57 = vadd.f32 %v7081_v7, %v7077_v61  ;;  %v4367_v53 = vadd.f32 %v5342_v14, %v4270_v9  ;;  %v4273_v13 = vadd.f32 %v5281_v12, %v4176_v58  ;;  %v7601_v14 = vld [vmem:[#allocation21_spill] sm:$0xff] }
 0x3d2   : > { %v5398_v21 = vpop.f32.mrf.mxu1  ;;  %v5360_v36 = vadd.f32 %v7246_v25, %v7234_v50 }
 0x3d3   : > { %v7228_v18 = vadd.f32 %v5397_v6, %v4354_v0  ;;  %v7258_v42 = vpop.f32.mrf.mxu0  ;;  %v4181_v61 = vadd.f32 %v5220_v57, %v7196_v3  ;;  %v4370_v0 = vadd.f32 %v5345_v63, %v4273_v13 }
 0x3d4   : > { %v5399_v49 = vpop.f32.mrf.mxu1 }
 0x3d5   : > { %v5400_v5 = vadd.f32 %v5399_v49, %v5398_v21  ;;  %4512 = vmax.xlane.f32.xlu0 %v7228_v18  ;;  %v5362_v34 = vpop.f32.mrf.mxu0  ;;  %v4278_v21 = vadd.f32 %v5284_v46, %v4181_v61 }
 0x3d6   : > { %v5401_v8 = vpop.f32.mrf.mxu1  ;;  %v5363_v50 = vadd.f32 %v5362_v34, %v7258_v42 }
 0x3d7   : > { %v7238_v19 = vadd.f32 %v5400_v5, %v4359_v54  ;;  %v4375_v28 = vadd.f32 %v5348_v43, %v4278_v21  ;;  %v5364_v45 = vpop.f32.mrf.mxu0  ;;  %v7596_v54 = vld [vmem:[#allocation23_spill] sm:$0xff] }
 0x3d8   : > { %v5402_v20 = vpop.f32.mrf.mxu1  ;;  %v5229_v5 = vadd.f32 %v7597_v29, %v7596_v54 }
 0x3d9   : > { %v5403_v41 = vadd.f32 %v5402_v20, %v5401_v8  ;;  %4514 = vmax.xlane.f32.xlu1 %v7238_v19  ;;  %v4378_v8 = vadd.f32 %v5351_v51, %v4281_v11  ;;  %v5365_v4 = vpop.f32.mrf.mxu0  ;;  %v4286_v20 = vadd.f32 %v5290_v17, %v4189_v59  ;;  %v7609_v51 = vld [vmem:[#allocation25_spill] sm:$0xff] }
 0x3da   : > { %v5404_v52 = vpop.f32.mrf.mxu1  ;;  %v4192_v12 = vadd.f32 %v5229_v5, %v7196_v3  ;;  %v7611_v5 = vld [vmem:[#allocation39_spill] sm:$0xff] }
 0x3db   : > { %v7250_v16 = vadd.f32 %v5403_v41, %v4362_v27  ;;  %v7602_v41 = vld [vmem:[#allocation22_spill] sm:$0xff]  ;;  %v4383_v57 = vadd.f32 %v5354_v44, %v4286_v20  ;;  %v5367_v58 = vpop.f32.mrf.mxu0 }
 0x3dc   : > { %v5405_v26 = vpop.f32.mrf.mxu1  ;;  %v4289_v63 = vadd.f32 %v5293_v22, %v4192_v12  ;;  %v7613_v20 = vld [vmem:[#allocation26_spill] sm:$0xff] }
 0x3dd   : > { %v5406_v33 = vadd.f32 %v5405_v26, %v5404_v52  ;;  %4516 = vmax.xlane.f32.xlu1 %v7250_v16  ;;  %v5232_v52 = vadd.f32 %v7602_v41, %v7601_v14  ;;  %v5241_v23 = vadd.f32 %v7614_v39, %v7613_v20  ;;  %v5366_v14 = vadd.f32 %v5365_v4, %v5364_v45  ;;  %v7616_v12 = vld [vmem:[#allocation42_spill] sm:$0xff] }
 0x3de   : > { %v5407_v24 = vpop.f32.mrf.mxu1 }
 0x3df   : > { %v7262_v10 = vadd.f32 %v5406_v33, %v4367_v53  ;;  %v7603_v33 = vld [vmem:[#allocation35_spill] sm:$0xff]  ;;  %v4197_v61 = vadd.f32 %v5232_v52, %v7196_v3 }
 0x3e0   : > { %v5408_v7 = vpop.f32.mrf.mxu1 }
 0x3e1   : > { %v5409_v40 = vadd.f32 %v5408_v7, %v5407_v24  ;;  %4518 = vmax.xlane.f32.xlu0 %v7262_v10  ;;  %v7604_v24 = vld [vmem:[#allocation36_spill] sm:$0xff] }
 0x3e2   : > { %v5410_v6 = vpop.f32.mrf.mxu1  ;;  %v5296_v13 = vadd.f32 %v7604_v24, %v7603_v33  ;;  %v4208_v24 = vadd.f32 %v5241_v23, %v7196_v3 }
 0x3e3   : > { %v7272_v56 = vadd.f32 %v5409_v40, %v4370_v0  ;;  %v7606_v0 = vld [vmem:[#allocation28_spill] sm:$0xff]  ;;  %v4386_v40 = vadd.f32 %v5357_v47, %v4289_v63 }
 0x3e4   : > { %v5411_v31 = vpop.f32.mrf.mxu1  ;;  %v5235_v43 = vadd.f32 %v7606_v0, %v7605_v38  ;;  %v4294_v30 = vadd.f32 %v5296_v13, %v4197_v61  ;;  %v7619_v0 = vld [vmem:[#allocation43_spill] sm:$0xff] }
 0x3e5   : > { %v5412_v37 = vadd.f32 %v5411_v31, %v5410_v6  ;;  %4520 = vmax.xlane.f32.xlu1 %v7272_v56  ;;  %v5368_v6 = vpop.f32.mrf.mxu0  ;;  %v7608_v31 = vld [vmem:[#allocation38_spill] sm:$0xff] }
 0x3e6   : > { %v5413_v49 = vpop.f32.mrf.mxu1  ;;  %v5299_v32 = vadd.f32 %v7608_v31, %v7607_v60  ;;  %v4200_v17 = vadd.f32 %v5235_v43, %v7196_v3  ;;  %v4391_v59 = vadd.f32 %v5360_v36, %v4294_v30  ;;  %v5369_v61 = vadd.f32 %v5368_v6, %v5367_v58  ;;  %v7620_v43 = vld [vmem:[#allocation44_spill] sm:$0xff]  ;;  %v7621_v30 = vld [vmem:[#allocation31_spill] sm:$0xff] }
 0x3e7   : > { %v7282_v35 = vadd.f32 %v5412_v37, %v4375_v28  ;;  %v7610_v37 = vld [vmem:[#allocation29_spill] sm:$0xff]  ;;  %v7622_v60 = vld [vmem:[#allocation32_spill] sm:$0xff] }
 0x3e8   : > { %v5414_v1 = vpop.f32.mrf.mxu1  ;;  %v4297_v29 = vadd.f32 %v5299_v32, %v4200_v17  ;;  %v5247_v31 = vadd.f32 %v7622_v60, %v7621_v30  ;;  %v7624_v17 = vld [vmem:[#allocation47_spill] sm:$0xff] }
 0x3e9   : > { %v5415_v55 = vadd.f32 %v5414_v1, %v5413_v49  ;;  %4522 = vmax.xlane.f32.xlu0 %v7282_v35  ;;  %v5238_v49 = vadd.f32 %v7610_v37, %v7609_v51  ;;  %v5370_v1 = vpop.f32.mrf.mxu0 }
 0x3ea   : > { %v5416_v15 = vpop.f32.mrf.mxu1  ;;  %v4394_v22 = vadd.f32 %v5363_v50, %v4297_v29 }
 0x3eb   : > { %v7292_v27 = vadd.f32 %v5415_v55, %v4378_v8  ;;  %v7612_v8 = vld [vmem:[#allocation40_spill] sm:$0xff]  ;;  %v4205_v55 = vadd.f32 %v5238_v49, %v7196_v3  ;;  %v5371_v34 = vpop.f32.mrf.mxu0 }
 0x3ec   : > { %v5417_v9 = vpop.f32.mrf.mxu1  ;;  %v5302_v2 = vadd.f32 %v7612_v8, %v7611_v5  ;;  %v5372_v51 = vadd.f32 %v5371_v34, %v5370_v1 }
 0x3ed   : > { %v5418_v26 = vadd.f32 %v5417_v9, %v5416_v15  ;;  %4524 = vmax.xlane.f32.xlu1 %v7292_v27  ;;  %v7615_v9 = vld [vmem:[#allocation41_spill] sm:$0xff]  ;;  %v5373_v4 = vpop.f32.mrf.mxu0 }
 0x3ee   : > { %v5419_v53 = vpop.f32.mrf.mxu1  ;;  %v4302_v52 = vadd.f32 %v5302_v2, %v4205_v55 }
 0x3ef   : > { %v7302_v46 = vadd.f32 %v5418_v26, %v4383_v57  ;;  %v5305_v57 = vadd.f32 %v7616_v12, %v7615_v9  ;;  %v7617_v26 = vld [vmem:[#allocation20_spill] sm:$0xff]  ;;  %v5374_v6 = vpop.f32.mrf.mxu0 }
 0x3f0   : > { %v5420_v7 = vpop.f32.mrf.mxu1  ;;  %v4399_v13 = vadd.f32 %v5366_v14, %v4302_v52  ;;  %v5375_v5 = vadd.f32 %v5374_v6, %v5373_v4 }
 0x3f1   : > { %v5421_v62 = vadd.f32 %v5420_v7, %v5419_v53  ;;  %4526 = vmax.xlane.f32.xlu0 %v7302_v46  ;;  %v7618_v53 = vld [vmem:[#allocation30_spill] sm:$0xff]  ;;  %v4305_v38 = vadd.f32 %v5305_v57, %v4208_v24 }
 0x3f2   : > { %v5422_v21 = vpop.f32.mrf.mxu1  ;;  %v5244_v63 = vadd.f32 %v7618_v53, %v7617_v26 }
 0x3f3   : > { %v7312_v28 = vadd.f32 %v5421_v62, %v4386_v40  ;;  %v5308_v40 = vadd.f32 %v7620_v43, %v7619_v0  ;;  %v4402_v32 = vadd.f32 %v5369_v61, %v4305_v38 }
 0x3f4   : > { %v5423_v11 = vpop.f32.mrf.mxu1  ;;  %v4213_v62 = vadd.f32 %v5244_v63, %v7196_v3 }
 0x3f5   : > { %v5424_v25 = vadd.f32 %v5423_v11, %v5422_v21  ;;  %4528 = vmax.xlane.f32.xlu1 %v7312_v28  ;;  %v7623_v11 = vld [vmem:[#allocation45_spill] sm:$0xff] }
 0x3f6   : > { %v5425_v54 = vpop.f32.mrf.mxu1  ;;  %v4310_v49 = vadd.f32 %v5308_v40, %v4213_v62 }
 0x3f7   : > { %v7321_v44 = vadd.f32 %v5424_v25, %v4391_v59  ;;  %v5311_v59 = vadd.f32 %v7624_v17, %v7623_v11 }
 0x3f8   : > { %v5426_v15 = vpop.f32.mrf.mxu1  ;;  %v4407_v29 = vadd.f32 %v5372_v51, %v4310_v49 }
 0x3f9   : > { %v5427_v42 = vadd.f32 %v5426_v15, %v5425_v54  ;;  %4530 = vmax.xlane.f32.xlu0 %v7321_v44  ;;  %v4216_v54 = vadd.f32 %v5247_v31, %v7196_v3 }
 0x3fa   : > { %v5428_v41 = vpop.f32.mrf.mxu1 }
 0x3fb   : > { %v7329_v47 = vadd.f32 %v5427_v42, %v4394_v22  ;;  %v4313_v2 = vadd.f32 %v5311_v59, %v4216_v54 }
 0x3fc   : > { %v5429_v33 = vpop.f32.mrf.mxu1 }
 0x3fd   : > { %v5430_v45 = vadd.f32 %v5429_v33, %v5428_v41  ;;  %4532 = vmax.xlane.f32.xlu1 %v7329_v47  ;;  %v4410_v20 = vadd.f32 %v5375_v5, %v4313_v2 }
 0x3fe   : > { %v5431_v7 = vpop.f32.mrf.mxu1 }
 0x3ff   : > { %v7337_v36 = vadd.f32 %v5430_v45, %v4399_v13 }
 0x400   : > { %v5432_v21 = vpop.f32.mrf.mxu1 }
 0x401   : > { %v5433_v58 = vadd.f32 %v5432_v21, %v5431_v7  ;;  %4534 = vmax.xlane.f32.xlu0 %v7337_v36 }
 0x402   : > { %v5434_v37 = vpop.f32.mrf.mxu1 }
 0x403   : > { %v7345_v50 = vadd.f32 %v5433_v58, %v4402_v32 }
 0x404   : > { %v5435_v25 = vpop.f32.mrf.mxu1 }
 0x405   : > { %v5436_v8 = vadd.f32 %v5435_v25, %v5434_v37  ;;  %4536 = vmax.xlane.f32.xlu1 %v7345_v50 }
 0x406   : > { %v5437_v1 = vpop.f32.mrf.mxu1 }
 0x407   : > { %v7349_v55 = vadd.f32 %v5436_v8, %v4407_v29 }
 0x408   : > { %v5438_v15 = vpop.f32.mrf.mxu1 }
 0x409   : > { %v5439_v39 = vadd.f32 %v5438_v15, %v5437_v1  ;;  %4538 = vmax.xlane.f32.xlu0 %v7349_v55 }
 0x40b   : > { %v7352_v23 = vadd.f32 %v5439_v39, %v4410_v20 }
 0x40d   : > { %4540 = vmax.xlane.f32.xlu1 %v7352_v23 }
 0x45a   : > { %v4511_v22 = vpop.xlane.xlu0 %4510 }
 0x45b   : > { %v4542_v3 = vsub.f32 %v7218_v48, %v4511_v22 }
 0x45d   : > { %v4558_v14 = vmul.f32 1.442695, %v4542_v3 }
 0x45e   : > { %v4513_v42 = vpop.xlane.xlu0 %4512 }
 0x45f   : > { %5660 = vpow2.f32 %v4558_v14  ;;  %v4543_v34 = vsub.f32 %v7228_v18, %v4513_v42 }
 0x461   : > { %v4560_v41 = vmul.f32 1.442695, %v4543_v34 }
 0x462   : > { %v4515_v52 = vpop.xlane.xlu1 %4514 }
 0x463   : > { %5662 = vpow2.f32 %v4560_v41  ;;  %v4544_v9 = vsub.f32 %v7238_v19, %v4515_v52 }
 0x465   : > { %v4562_v12 = vmul.f32 1.442695, %v4544_v9 }
 0x466   : > { %v4517_v57 = vpop.xlane.xlu1 %4516 }
 0x467   : > { %5664 = vpow2.f32 %v4562_v12  ;;  %v4545_v26 = vsub.f32 %v7250_v16, %v4517_v57 }
 0x469   : > { %v4564_v53 = vmul.f32 1.442695, %v4545_v26 }
 0x46a   : > { %v4519_v63 = vpop.xlane.xlu0 %4518 }
 0x46b   : > { %5666 = vpow2.f32 %v4564_v53  ;;  %v4546_v48 = vsub.f32 %v7262_v10, %v4519_v63 }
 0x46c   : > { %v7360_v33 = vpop.eup %5660 }
 0x46d   : > { %v4566_v24 = vmul.f32 1.442695, %v4546_v48  ;;  %4590 = vadd.xlane.f32.xlu0 %v7360_v33 }
 0x46e   : > { %v4521_v18 = vpop.xlane.xlu1 %4520 }
 0x46f   : > { %5668 = vpow2.f32 %v4566_v24  ;;  %v4547_v13 = vsub.f32 %v7272_v56, %v4521_v18 }
 0x470   : > { %v7364_v19 = vpop.eup %5662 }
 0x471   : > { %v4568_v61 = vmul.f32 1.442695, %v4547_v13  ;;  %4592 = vadd.xlane.f32.xlu1 %v7364_v19 }
 0x472   : > { %v4523_v16 = vpop.xlane.xlu0 %4522 }
 0x473   : > { %5670 = vpow2.f32 %v4568_v61  ;;  %v4548_v45 = vsub.f32 %v7282_v35, %v4523_v16 }
 0x474   : > { %v7368_v4 = vpop.eup %5664 }
 0x475   : > { %v4570_v10 = vmul.f32 1.442695, %v4548_v45  ;;  %4594 = vadd.xlane.f32.xlu0 %v7368_v4 }
 0x476   : > { %v4525_v7 = vpop.xlane.xlu1 %4524 }
 0x477   : > { %5672 = vpow2.f32 %v4570_v10  ;;  %v4549_v38 = vsub.f32 %v7292_v27, %v4525_v7 }
 0x478   : > { %v7372_v0 = vpop.eup %5666 }
 0x479   : > { %v4572_v56 = vmul.f32 1.442695, %v4549_v38  ;;  %4596 = vadd.xlane.f32.xlu1 %v7372_v0 }
 0x47a   : > { %v4527_v43 = vpop.xlane.xlu0 %4526 }
 0x47b   : > { %5674 = vpow2.f32 %v4572_v56  ;;  %v4550_v40 = vsub.f32 %v7302_v46, %v4527_v43 }
 0x47c   : > { %v7376_v62 = vpop.eup %5668 }
 0x47d   : > { %v4574_v35 = vmul.f32 1.442695, %v4550_v40  ;;  %4598 = vadd.xlane.f32.xlu0 %v7376_v62 }
 0x47e   : > { %v4529_v21 = vpop.xlane.xlu1 %4528 }
 0x47f   : > { %5676 = vpow2.f32 %v4574_v35  ;;  %v4551_v30 = vsub.f32 %v7312_v28, %v4529_v21 }
 0x480   : > { %v7380_v60 = vpop.eup %5670 }
 0x481   : > { %v4576_v27 = vmul.f32 1.442695, %v4551_v30  ;;  %4600 = vadd.xlane.f32.xlu1 %v7380_v60 }
 0x482   : > { %v4531_v31 = vpop.xlane.xlu0 %4530 }
 0x483   : > { %5678 = vpow2.f32 %v4576_v27  ;;  %v4552_v32 = vsub.f32 %v7321_v44, %v4531_v31 }
 0x484   : > { %v7384_v51 = vpop.eup %5672 }
 0x485   : > { %v4578_v46 = vmul.f32 1.442695, %v4552_v32  ;;  %4602 = vadd.xlane.f32.xlu0 %v7384_v51 }
 0x486   : > { %v4533_v58 = vpop.xlane.xlu1 %4532 }
 0x487   : > { %5680 = vpow2.f32 %v4578_v46  ;;  %v4553_v6 = vsub.f32 %v7329_v47, %v4533_v58 }
 0x488   : > { %v7388_v37 = vpop.eup %5674 }
 0x489   : > { %v4580_v28 = vmul.f32 1.442695, %v4553_v6  ;;  %4604 = vadd.xlane.f32.xlu1 %v7388_v37 }
 0x48a   : > { %v4535_v49 = vpop.xlane.xlu0 %4534 }
 0x48b   : > { %5682 = vpow2.f32 %v4580_v28  ;;  %v4554_v11 = vsub.f32 %v7337_v36, %v4535_v49 }
 0x48c   : > { %v7392_v17 = vpop.eup %5676 }
 0x48d   : > { %v4582_v44 = vmul.f32 1.442695, %v4554_v11  ;;  %4606 = vadd.xlane.f32.xlu0 %v7392_v17 }
 0x48e   : > { %v4537_v59 = vpop.xlane.xlu1 %4536 }
 0x48f   : > { %5684 = vpow2.f32 %v4582_v44  ;;  %v4555_v25 = vsub.f32 %v7345_v50, %v4537_v59 }
 0x490   : > { %v7396_v54 = vpop.eup %5678 }
 0x491   : > { %v4584_v47 = vmul.f32 1.442695, %v4555_v25  ;;  %4608 = vadd.xlane.f32.xlu1 %v7396_v54 }
 0x492   : > { %v4539_v29 = vpop.xlane.xlu0 %4538 }
 0x493   : > { %5686 = vpow2.f32 %v4584_v47  ;;  %v4556_v5 = vsub.f32 %v7349_v55, %v4539_v29 }
 0x494   : > { %v7400_v8 = vpop.eup %5680 }
 0x495   : > { %v4586_v36 = vmul.f32 1.442695, %v4556_v5  ;;  %4610 = vadd.xlane.f32.xlu0 %v7400_v8 }
 0x496   : > { %v4541_v1 = vpop.xlane.xlu1 %4540 }
 0x497   : > { %5688 = vpow2.f32 %v4586_v36  ;;  %v4557_v2 = vsub.f32 %v7352_v23, %v4541_v1 }
 0x498   : > { %v7404_v15 = vpop.eup %5682 }
 0x499   : > { %v4588_v50 = vmul.f32 1.442695, %v4557_v2  ;;  %4612 = vadd.xlane.f32.xlu1 %v7404_v15 }
 0x49b   : > { %5690 = vpow2.f32 %v4588_v50 }
 0x49c   : > { %v7407_v20 = vpop.eup %5684 }
 0x49d   : > { %4614 = vadd.xlane.f32.xlu0 %v7407_v20 }
 0x4a0   : > { %v7410_v55 = vpop.eup %5686 }
 0x4a1   : > { %4616 = vadd.xlane.f32.xlu1 %v7410_v55 }
 0x4a4   : > { %v7413_v39 = vpop.eup %5688 }
 0x4a5   : > { %4618 = vadd.xlane.f32.xlu0 %v7413_v39 }
 0x4a8   : > { %v7416_v23 = vpop.eup %5690 }
 0x4a9   : > { %4620 = vadd.xlane.f32.xlu1 %v7416_v23 }
 0x4f6   : > { %v4591_v22 = vpop.xlane.xlu0 %4590 }
 0x4f7   : > { %5692 = vrcp.f32 %v4591_v22 }
 0x4fa   : > { %v4593_v3 = vpop.xlane.xlu1 %4592 }
 0x4fb   : > { %5694 = vrcp.f32 %v4593_v3 }
 0x4fe   : > { %v4595_v14 = vpop.xlane.xlu0 %4594 }
 0x4ff   : > { %5696 = vrcp.f32 %v4595_v14 }
 0x502   : > { %v4597_v42 = vpop.xlane.xlu1 %4596 }
 0x503   : > { %5698 = vrcp.f32 %v4597_v42 }
 0x504   : > { %v5693_v34 = vpop.eup %5692 }
 0x505   : > { %v4638_v41 = vmul.f32 %v5693_v34, %v7360_v33 }
 0x506   : > { %v4599_v52 = vpop.xlane.xlu0 %4598 }
 0x507   : > { %4654 = vst [vmem:[%s7422_s21] sm:$0xff] %v4638_v41  ;;  %5700 = vrcp.f32 %v4599_v52 }
 0x508   : > { %v5695_v9 = vpop.eup %5694 }
 0x509   : > { %v4639_v12 = vmul.f32 %v5695_v9, %v7364_v19 }
 0x50a   : > { %v4601_v57 = vpop.xlane.xlu1 %4600 }
 0x50b   : > { %4655 = vst [vmem:[%s7422_s21 + $0x8] sm:$0xff] %v4639_v12  ;;  %5702 = vrcp.f32 %v4601_v57 }
 0x50c   : > { %v5697_v26 = vpop.eup %5696 }
 0x50d   : > { %v4640_v53 = vmul.f32 %v5697_v26, %v7368_v4 }
 0x50e   : > { %v4603_v63 = vpop.xlane.xlu0 %4602 }
 0x50f   : > { %4656 = vst [vmem:[%s7422_s21 + $0x10] sm:$0xff] %v4640_v53  ;;  %5704 = vrcp.f32 %v4603_v63 }
 0x510   : > { %v5699_v48 = vpop.eup %5698 }
 0x511   : > { %v4641_v33 = vmul.f32 %v5699_v48, %v7372_v0 }
 0x512   : > { %v4605_v24 = vpop.xlane.xlu1 %4604 }
 0x513   : > { %4657 = vst [vmem:[%s7422_s21 + $0x18] sm:$0xff] %v4641_v33  ;;  %5706 = vrcp.f32 %v4605_v24 }
 0x514   : > { %v5701_v18 = vpop.eup %5700 }
 0x515   : > { %v4642_v13 = vmul.f32 %v5701_v18, %v7376_v62 }
 0x516   : > { %v4607_v19 = vpop.xlane.xlu0 %4606 }
 0x517   : > { %4658 = vst [vmem:[%s7422_s21 + $0x20] sm:$0xff] %v4642_v13  ;;  %5708 = vrcp.f32 %v4607_v19 }
 0x518   : > { %v5703_v61 = vpop.eup %5702 }
 0x519   : > { %v4643_v16 = vmul.f32 %v5703_v61, %v7380_v60 }
 0x51a   : > { %v4609_v45 = vpop.xlane.xlu1 %4608 }
 0x51b   : > { %4659 = vst [vmem:[%s7422_s21 + $0x28] sm:$0xff] %v4643_v16  ;;  %5710 = vrcp.f32 %v4609_v45 }
 0x51c   : > { %v5705_v4 = vpop.eup %5704 }
 0x51d   : > { %v4644_v10 = vmul.f32 %v5705_v4, %v7384_v51 }
 0x51e   : > { %v4611_v7 = vpop.xlane.xlu0 %4610 }
 0x51f   : > { %4660 = vst [vmem:[%s7422_s21 + $0x30] sm:$0xff] %v4644_v10  ;;  %5712 = vrcp.f32 %v4611_v7 }
 0x520   : > { %v5707_v38 = vpop.eup %5706 }
 0x521   : > { %v4645_v0 = vmul.f32 %v5707_v38, %v7388_v37 }
 0x522   : > { %v4613_v56 = vpop.xlane.xlu1 %4612 }
 0x523   : > { %4661 = vst [vmem:[%s7422_s21 + $0x38] sm:$0xff] %v4645_v0  ;;  %5714 = vrcp.f32 %v4613_v56 }
 0x524   : > { %v5709_v43 = vpop.eup %5708 }
 0x525   : > { %v4646_v40 = vmul.f32 %v5709_v43, %v7392_v17 }
 0x526   : > { %v4615_v62 = vpop.xlane.xlu0 %4614 }
 0x527   : > { %4662 = vst [vmem:[%s7422_s21 + $0x40] sm:$0xff] %v4646_v40  ;;  %5716 = vrcp.f32 %v4615_v62 }
 0x528   : > { %v5711_v35 = vpop.eup %5710 }
 0x529   : > { %v4647_v21 = vmul.f32 %v5711_v35, %v7396_v54 }
 0x52a   : > { %v4617_v30 = vpop.xlane.xlu1 %4616 }
 0x52b   : > { %4663 = vst [vmem:[%s7422_s21 + $0x48] sm:$0xff] %v4647_v21  ;;  %5718 = vrcp.f32 %v4617_v30 }
 0x52c   : > { %v5713_v60 = vpop.eup %5712 }
 0x52d   : > { %v4648_v27 = vmul.f32 %v5713_v60, %v7400_v8 }
 0x52e   : > { %v4619_v31 = vpop.xlane.xlu0 %4618 }
 0x52f   : > { %4664 = vst [vmem:[%s7422_s21 + $0x50] sm:$0xff] %v4648_v27  ;;  %5720 = vrcp.f32 %v4619_v31 }
 0x530   : > { %v5715_v32 = vpop.eup %5714 }
 0x531   : > { %v4649_v51 = vmul.f32 %v5715_v32, %v7404_v15 }
 0x532   : > { %v4621_v46 = vpop.xlane.xlu1 %4620 }
 0x533   : > { %4665 = vst [vmem:[%s7422_s21 + $0x58] sm:$0xff] %v4649_v51  ;;  %5722 = vrcp.f32 %v4621_v46 }
 0x534   : > { %v5717_v58 = vpop.eup %5716 }
 0x535   : > { %v4650_v6 = vmul.f32 %v5717_v58, %v7407_v20 }
 0x537   : > { %4666 = vst [vmem:[%s7422_s21 + $0x60] sm:$0xff] %v4650_v6 }
 0x538   : > { %v5719_v37 = vpop.eup %5718 }
 0x539   : > { %v4651_v28 = vmul.f32 %v5719_v37, %v7410_v55 }
 0x53b   : > { %4667 = vst [vmem:[%s7422_s21 + $0x68] sm:$0xff] %v4651_v28 }
 0x53c   : > { %v5721_v49 = vpop.eup %5720 }
 0x53d   : > { %v4652_v11 = vmul.f32 %v5721_v49, %v7413_v39 }
 0x53f   : > { %4668 = vst [vmem:[%s7422_s21 + $0x70] sm:$0xff] %v4652_v11 }
 0x540   : > { %v5723_v17 = vpop.eup %5722 }
 0x541   : > { %v4653_v44 = vmul.f32 %v5723_v17, %v7416_v23 }
 0x543   : > { %4669 = vst [vmem:[%s7422_s21 + $0x78] sm:$0xff] %v4653_v44 }
 0x544   : > { %5896 = shalt.err (!%p5893_p5)
}
 0x545   : > { %s5897_s20 = scalar_lea.hbm %s7458_s14, 2048  ;;  %s5901_s11 = scalar_lea.hbm %s7512_s7, 4096 }
 0x546   : > { %p5898_p6 = scmp.ne.s32.totalorder %s7458_s14, %s5897_s20  ;;  %p5902_p4 = scmp.lt.s32.totalorder %s7458_s14, %s7512_s7 }
 0x547   : > { %p5903_p7 = scmp.lt.s32.totalorder %s5901_s11, %s5897_s20 }
 0x548   : > { %p5899_p10 = pnand %p5898_p6, %p7625_p2 }
 0x549   : > { %p5904_p13 = por %p5903_p7, %p5902_p4 }
 0x54a   : > { %p5900_p11 = pneg %p5899_p10 }
 0x54c   : > { %p5905_p0 = pnand %p5904_p13, %p5900_p11 }
 0x54e   : > { %5908 = shalt.err (!%p5905_p0)
}
 0x54f   : > { %s5977_s28 = smov 128   ;;  %s5978_s16 = smov 8  }
 0x550   : > { %5462 = dma.vmem_to_hbm [thread:$0]  (%p7625_p2), %s7460_s23, 2048, %s7458_s14, %s4671_s12, %s5977_s28, %s5977_s28, %s5978_s16  }
 0x551 PF: > { %s4699_s9 = sand.u32 1, %s5947_s24   ;;  %p7626_p8 = scmp.ne.s32.totalorder %s7532_s17, 0 }
 0x552   : > { %p7627_p9 = scmp.ge.s32.totalorder %s5959_s27, 2  ;;  %s4700_s30 = scalar_lea.sflag [#allocation4], %s4699_s9 }
 0x554   : > { %p5485_p12 = pnand %p7627_p9, %p7626_p8 }
 0x556   : > { %p5486_p3 = pneg %p5485_p12 }
 0x558   : > { %5942 = dma.done.wait (%p5486_p3), %s4700_s30, 2048  }
 0x559   : > { %5944 = vsyncadd (%p5486_p3), %s4700_s30, 4294965248  ;;  %p23_p1 = scmp.ge.s32.totalorder %s6111_s29, 4   ;;  %s7628_s24 = smov %s5951_s25 }
 0x55a   : > { %s7629_s25 = smov %s5955_s26  ;;  %s7630_s26 = smov %s6123_s15 }
 0x55b   : > { %s7631_s27 = smov %s6111_s29  ;;  %25 = sbr.rel (!%p23_p1) target bundleno = 10 (0xa), region = 113 }
 0x560   :  { %4705 = vsyncpa [#allocation3], 1 }
 0x561   :  { %4707 = vsyncpa [#allocation3 + $0x1], 1 }
 0x562   :  { %4708 = vsyncpa [#allocation6], 1 }
 0x563   :  { %4709 = vsyncpa [#allocation9], 1 }
 0x564   :  { %4710 = vsyncpa [#allocation12], 1 }
 0x565   :  { %4711 = vsyncpa [#allocation4], 1 }
 0x566   :  { %4713 = vsyncpa [#allocation4 + $0x1], 1 }

</bundles_post_ra>
